<compile_context>
chip_gen: v6e
topology: v6e:2x2x1
jax: 0.10.0
libtpu: 0.0.40
codegen_flags: <defaults>
</compile_context>

<pallas_src>
import functools

import jax
import jax.numpy as jnp
from jax.experimental import pallas as pl
from jax.experimental.pallas import tpu as pltpu

D_IN = 28 * 28      # 784
D_IN_PAD = 896      # 7 * 128 : zero-padded K for an unmasked MXU feed
HID = 512
D_OUT = 10
D_OUT_PAD = 128     # lane-dense output; sliced back to 10 in the wrapper


def _mlp_kernel(x_ref, w1_ref, b1_ref, w2_ref, b2_ref, w3_ref, b3_ref, o_ref):
    # bf16 operands feed the MXU at full rate; accumulate in f32.
    # sigmoid(z) = 0.5 * tanh(0.5 * z) + 0.5  -> one EUP transcendental/elem.
    x = x_ref[...]                                                    # (tb, 896) bf16

    z1 = jnp.dot(x, w1_ref[...], preferred_element_type=jnp.float32) + b1_ref[...]
    h1 = 0.5 * jnp.tanh(0.5 * z1) + 0.5                               # (tb, 512) f32

    z2 = jnp.dot(h1.astype(jnp.bfloat16), w2_ref[...],
                 preferred_element_type=jnp.float32) + b2_ref[...]
    h2 = 0.5 * jnp.tanh(0.5 * z2) + 0.5                               # (tb, 512) f32

    z3 = jnp.dot(h2.astype(jnp.bfloat16), w3_ref[...],
                 preferred_element_type=jnp.float32) + b3_ref[...]
    o_ref[...] = z3.astype(o_ref.dtype)                               # (tb, 128) f32


def _round_up(n, m):
    return ((n + m - 1) // m) * m


def prepare_params(params):
    """One-time padding / bf16-casting of the weights (hoisted out of forward)."""
    w1 = jnp.pad(params["w1"].astype(jnp.bfloat16),
                 ((0, D_IN_PAD - D_IN), (0, 0)))                      # (896, 512) bf16
    w2 = params["w2"].astype(jnp.bfloat16)                            # (512, 512) bf16
    w3 = jnp.pad(params["w3"].astype(jnp.bfloat16),
                 ((0, 0), (0, D_OUT_PAD - D_OUT)))                    # (512, 128) bf16
    b1 = params["b1"].reshape(1, HID).astype(jnp.float32)
    b2 = params["b2"].reshape(1, HID).astype(jnp.float32)
    b3 = jnp.pad(params["b3"].reshape(1, D_OUT).astype(jnp.float32),
                 ((0, 0), (0, D_OUT_PAD - D_OUT)))                    # (1, 128) f32
    return {"w1": w1, "b1": b1, "w2": w2, "b2": b2, "w3": w3, "b3": b3}


def _choose_tile(B, batch_tile):
    """Pick a batch tile (multiple of 128); prefer a grid of >= 2 steps."""
    tb_cap = _round_up(B, 128)
    tb = min(_round_up(batch_tile, 128), tb_cap)
    # Keep >= 2 grid steps when the batch allows it, so the x-tile DMA
    # pipelines against compute and v7x megacore has work for both cores.
    if tb_cap >= 2 * 128 and _round_up(B, tb) // tb < 2:
        tb = _round_up((tb_cap + 1) // 2, 128)
    return tb


@functools.partial(jax.jit, static_argnames=("batch_tile",))
def net_forward(x, prepared, *, batch_tile=512):
    """Forward pass of `Net`.

    x: (B, 28, 28), (B, 1, 28, 28) or (B, 784) float32
    prepared: output of prepare_params()
    returns logits (B, 10) float32
    """
    B = x.shape[0]
    x2d = x.reshape(B, -1)                                            # nn.Flatten()
    assert x2d.shape[1] == D_IN

    tb = _choose_tile(B, batch_tile)
    B_pad = _round_up(B, tb)
    grid = (B_pad // tb,)

    # Cast first, then pad in bf16 (no padded f32 intermediate).
    x_bf = jnp.pad(x2d.astype(jnp.bfloat16),
                   ((0, B_pad - B), (0, D_IN_PAD - D_IN)))            # (B_pad, 896) bf16

    w1, b1 = prepared["w1"], prepared["b1"]
    w2, b2 = prepared["w2"], prepared["b2"]
    w3, b3 = prepared["w3"], prepared["b3"]

    in_specs = [
        pl.BlockSpec((tb, D_IN_PAD), lambda i: (i, 0)),           # streams with grid
        # Weights/biases are grid-invariant -> stay resident in VMEM.
        pl.BlockSpec((D_IN_PAD, HID), lambda i: (0, 0)),
        pl.BlockSpec((1, HID), lambda i: (0, 0)),
        pl.BlockSpec((HID, HID), lambda i: (0, 0)),
        pl.BlockSpec((1, HID), lambda i: (0, 0)),
        pl.BlockSpec((HID, D_OUT_PAD), lambda i: (0, 0)),
        pl.BlockSpec((1, D_OUT_PAD), lambda i: (0, 0)),
    ]
    out_spec = pl.BlockSpec((tb, D_OUT_PAD), lambda i: (i, 0))

    flops = 2 * B_pad * (D_IN_PAD * HID + HID * HID + HID * D_OUT_PAD)
    bytes_accessed = (
        x_bf.size * 2 + w1.size * 2 + w2.size * 2 + w3.size * 2
        + (b1.size + b2.size + b3.size) * 4 + B_pad * D_OUT_PAD * 4)
    cost = pl.CostEstimate(
        flops=flops,
        transcendentals=B_pad * 2 * HID,      # one tanh/elem, two 512-wide layers
        bytes_accessed=bytes_accessed)

    out = pl.pallas_call(
        _mlp_kernel,
        out_shape=jax.ShapeDtypeStruct((B_pad, D_OUT_PAD), jnp.float32),
        grid_spec=pltpu.PrefetchScalarGridSpec(
            num_scalar_prefetch=0,
            grid=grid,
            in_specs=in_specs,
            out_specs=out_spec,
        ),
        compiler_params=pltpu.CompilerParams(
            dimension_semantics=("parallel",),    # batch axis -> megacore split
        ),
        cost_estimate=cost,
    )(x_bf, w1, b1, w2, b2, w3, b3)

    return out[:B, :D_OUT]


def init_params(key):
    """Deterministic init matching the torch layer shapes (Kaiming-uniform-ish)."""
    k1, k2, k3, k4, k5, k6 = jax.random.split(key, 6)

    def lin_init(kw, kb, fan_in, fan_out):
        bound = 1.0 / jnp.sqrt(fan_in)
        w = jax.random.uniform(kw, (fan_in, fan_out), jnp.float32, -bound, bound)
        b = jax.random.uniform(kb, (fan_out,), jnp.float32, -bound, bound)
        return w, b

    w1, b1 = lin_init(k1, k2, D_IN, HID)
    w2, b2 = lin_init(k3, k4, HID, HID)
    w3, b3 = lin_init(k5, k6, HID, D_OUT)
    return {"w1": w1, "b1": b1, "w2": w2, "b2": b2, "w3": w3, "b3": b3}


def _reference(x, params):
    """Pure-JAX reference with the same bf16 matmul / f32 accumulate recipe."""
    B = x.shape[0]
    h = x.reshape(B, -1).astype(jnp.float32)
    w1 = params["w1"].astype(jnp.bfloat16)
    w2 = params["w2"].astype(jnp.bfloat16)
    w3 = params["w3"].astype(jnp.bfloat16)
    h1 = jax.nn.sigmoid(
        jnp.dot(h.astype(jnp.bfloat16), w1, preferred_element_type=jnp.float32)
        + params["b1"])
    h2 = jax.nn.sigmoid(
        jnp.dot(h1.astype(jnp.bfloat16), w2, preferred_element_type=jnp.float32)
        + params["b2"])
    return (jnp.dot(h2.astype(jnp.bfloat16), w3, preferred_element_type=jnp.float32)
            + params["b3"])


if __name__ == "__main__":
    key = jax.random.PRNGKey(0)
    k_param, k_x1, k_x2 = jax.random.split(key, 3)
    params = init_params(k_param)
    prepared = prepare_params(params)     # one-time pad/cast of weights

    # Small MNIST-like NCHW batch (padded up to one 128-row tile internally).
    x_small = jax.random.normal(k_x1, (8, 1, 28, 28), dtype=jnp.float32)
    out_small = jax.block_until_ready(net_forward(x_small, prepared))
    ref_small = _reference(x_small, params)
    assert out_small.shape == (8, 10)
    assert jnp.allclose(out_small, ref_small, atol=2e-2, rtol=2e-2), \
        "mismatch vs reference (small batch)"

    # Larger batch exercising the multi-step pipelined grid (>= 2 tiles).
    x_big = jax.random.normal(k_x2, (512, D_IN), dtype=jnp.float32)
    out_big = jax.block_until_ready(net_forward(x_big, prepared))
    ref_big = _reference(x_big, params)
    assert out_big.shape == (512, 10)
    assert jnp.allclose(out_big, ref_big, atol=2e-2, rtol=2e-2), \
        "mismatch vs reference (large batch)"

    print("KERNEL_OK")
</pallas_src>

<mosaic_0001>
module attributes {stable_mosaic.version = 11 : i64} {
  func.func @_mlp_kernel(%arg0: i32, %arg1: memref<128x896xbf16, #tpu.memory_space<vmem>>, %arg2: memref<896x512xbf16, #tpu.memory_space<vmem>>, %arg3: memref<1x512xf32, #tpu.memory_space<vmem>>, %arg4: memref<512x512xbf16, #tpu.memory_space<vmem>>, %arg5: memref<1x512xf32, #tpu.memory_space<vmem>>, %arg6: memref<512x128xbf16, #tpu.memory_space<vmem>>, %arg7: memref<1x128xf32, #tpu.memory_space<vmem>>, %arg8: memref<128x128xf32, #tpu.memory_space<vmem>>) attributes {dimension_semantics = [#tpu.dimension_semantics<parallel>], iteration_bounds = array<i64: 1>, scalar_prefetch = 0 : i64, scratch_operands = 0 : i64, tpu.core_type = #tpu.core_type<tc>, window_params = [{transform_indices = @transform_0, window_bounds = array<i64: 128, 896>}, {pipeline_mode = #tpu.pipeline_mode<synchronous>, transform_indices = @transform_1, window_bounds = array<i64: 896, 512>}, {pipeline_mode = #tpu.pipeline_mode<synchronous>, transform_indices = @transform_2, window_bounds = array<i64: 1, 512>}, {pipeline_mode = #tpu.pipeline_mode<synchronous>, transform_indices = @transform_3, window_bounds = array<i64: 512, 512>}, {pipeline_mode = #tpu.pipeline_mode<synchronous>, transform_indices = @transform_4, window_bounds = array<i64: 1, 512>}, {pipeline_mode = #tpu.pipeline_mode<synchronous>, transform_indices = @transform_5, window_bounds = array<i64: 512, 128>}, {pipeline_mode = #tpu.pipeline_mode<synchronous>, transform_indices = @transform_6, window_bounds = array<i64: 1, 128>}, {transform_indices = @transform_7, window_bounds = array<i64: 128, 128>}]} {
    %c0 = arith.constant 0 : index
    %c0_0 = arith.constant 0 : index
    %0 = vector.load %arg1[%c0, %c0_0] : memref<128x896xbf16, #tpu.memory_space<vmem>>, vector<128x896xbf16>
    %c0_1 = arith.constant 0 : index
    %c0_2 = arith.constant 0 : index
    %1 = vector.load %arg2[%c0_1, %c0_2] : memref<896x512xbf16, #tpu.memory_space<vmem>>, vector<896x512xbf16>
    %cst = arith.constant dense<0.000000e+00> : vector<128x512xf32>
    %2 = tpu.matmul %0, %1, %cst {dimension_numbers = #tpu.dot_dimension_numbers<[1], [0], [0], [1], [0, 0, 1, 1], [], []>} : vector<128x896xbf16>, vector<896x512xbf16>, vector<128x512xf32> -> vector<128x512xf32>
    %c0_3 = arith.constant 0 : index
    %c0_4 = arith.constant 0 : index
    %3 = vector.load %arg3[%c0_3, %c0_4] : memref<1x512xf32, #tpu.memory_space<vmem>>, vector<1x512xf32>
    %4 = vector.broadcast %3 : vector<1x512xf32> to vector<128x512xf32>
    %5 = arith.addf %2, %4 : vector<128x512xf32>
    %cst_5 = arith.constant 5.000000e-01 : f32
    %6 = vector.broadcast %cst_5 : f32 to vector<128x512xf32>
    %7 = arith.mulf %6, %5 : vector<128x512xf32>
    %8 = math.tanh %7 : vector<128x512xf32>
    %cst_6 = arith.constant 5.000000e-01 : f32
    %9 = vector.broadcast %cst_6 : f32 to vector<128x512xf32>
    %10 = arith.mulf %9, %8 : vector<128x512xf32>
    %cst_7 = arith.constant 5.000000e-01 : f32
    %11 = vector.broadcast %cst_7 : f32 to vector<128x512xf32>
    %12 = arith.addf %10, %11 : vector<128x512xf32>
    %13 = arith.truncf %12 : vector<128x512xf32> to vector<128x512xbf16>
    %c0_8 = arith.constant 0 : index
    %c0_9 = arith.constant 0 : index
    %14 = vector.load %arg4[%c0_8, %c0_9] : memref<512x512xbf16, #tpu.memory_space<vmem>>, vector<512x512xbf16>
    %cst_10 = arith.constant dense<0.000000e+00> : vector<128x512xf32>
    %15 = tpu.matmul %13, %14, %cst_10 {dimension_numbers = #tpu.dot_dimension_numbers<[1], [0], [0], [1], [0, 0, 1, 1], [], []>} : vector<128x512xbf16>, vector<512x512xbf16>, vector<128x512xf32> -> vector<128x512xf32>
    %c0_11 = arith.constant 0 : index
    %c0_12 = arith.constant 0 : index
    %16 = vector.load %arg5[%c0_11, %c0_12] : memref<1x512xf32, #tpu.memory_space<vmem>>, vector<1x512xf32>
    %17 = vector.broadcast %16 : vector<1x512xf32> to vector<128x512xf32>
    %18 = arith.addf %15, %17 : vector<128x512xf32>
    %cst_13 = arith.constant 5.000000e-01 : f32
    %19 = vector.broadcast %cst_13 : f32 to vector<128x512xf32>
    %20 = arith.mulf %19, %18 : vector<128x512xf32>
    %21 = math.tanh %20 : vector<128x512xf32>
    %cst_14 = arith.constant 5.000000e-01 : f32
    %22 = vector.broadcast %cst_14 : f32 to vector<128x512xf32>
    %23 = arith.mulf %22, %21 : vector<128x512xf32>
    %cst_15 = arith.constant 5.000000e-01 : f32
    %24 = vector.broadcast %cst_15 : f32 to vector<128x512xf32>
    %25 = arith.addf %23, %24 : vector<128x512xf32>
    %26 = arith.truncf %25 : vector<128x512xf32> to vector<128x512xbf16>
    %c0_16 = arith.constant 0 : index
    %c0_17 = arith.constant 0 : index
    %27 = vector.load %arg6[%c0_16, %c0_17] : memref<512x128xbf16, #tpu.memory_space<vmem>>, vector<512x128xbf16>
    %cst_18 = arith.constant dense<0.000000e+00> : vector<128x128xf32>
    %28 = tpu.matmul %26, %27, %cst_18 {dimension_numbers = #tpu.dot_dimension_numbers<[1], [0], [0], [1], [0, 0, 1, 1], [], []>} : vector<128x512xbf16>, vector<512x128xbf16>, vector<128x128xf32> -> vector<128x128xf32>
    %c0_19 = arith.constant 0 : index
    %c0_20 = arith.constant 0 : index
    %29 = vector.load %arg7[%c0_19, %c0_20] : memref<1x128xf32, #tpu.memory_space<vmem>>, vector<1x128xf32>
    %30 = vector.broadcast %29 : vector<1x128xf32> to vector<128x128xf32>
    %31 = arith.addf %28, %30 : vector<128x128xf32>
    %c0_21 = arith.constant 0 : index
    %c0_22 = arith.constant 0 : index
    %32 = vector.load %arg8[%c0_21, %c0_22] : memref<128x128xf32, #tpu.memory_space<vmem>>, vector<128x128xf32>
    tpu.vector_store %arg8[%c0_21, %c0_22], %31 {strides = array<i32>} : memref<128x128xf32, #tpu.memory_space<vmem>>, vector<128x128xf32>,
    return
  }
  func.func @transform_0(%arg0: i32) -> (i32, i32) {
    %c0_i32 = arith.constant 0 : i32
    %c0_i32_0 = arith.constant 0 : i32
    return %arg0, %c0_i32 : i32, i32
  }
  func.func @transform_1(%arg0: i32) -> (i32, i32) {
    %c0_i32 = arith.constant 0 : i32
    %c0_i32_0 = arith.constant 0 : i32
    %c0_i32_1 = arith.constant 0 : i32
    return %c0_i32, %c0_i32_0 : i32, i32
  }
  func.func @transform_2(%arg0: i32) -> (i32, i32) {
    %c0_i32 = arith.constant 0 : i32
    %c0_i32_0 = arith.constant 0 : i32
    %c0_i32_1 = arith.constant 0 : i32
    return %c0_i32, %c0_i32_0 : i32, i32
  }
  func.func @transform_3(%arg0: i32) -> (i32, i32) {
    %c0_i32 = arith.constant 0 : i32
    %c0_i32_0 = arith.constant 0 : i32
    %c0_i32_1 = arith.constant 0 : i32
    return %c0_i32, %c0_i32_0 : i32, i32
  }
  func.func @transform_4(%arg0: i32) -> (i32, i32) {
    %c0_i32 = arith.constant 0 : i32
    %c0_i32_0 = arith.constant 0 : i32
    %c0_i32_1 = arith.constant 0 : i32
    return %c0_i32, %c0_i32_0 : i32, i32
  }
  func.func @transform_5(%arg0: i32) -> (i32, i32) {
    %c0_i32 = arith.constant 0 : i32
    %c0_i32_0 = arith.constant 0 : i32
    %c0_i32_1 = arith.constant 0 : i32
    return %c0_i32, %c0_i32_0 : i32, i32
  }
  func.func @transform_6(%arg0: i32) -> (i32, i32) {
    %c0_i32 = arith.constant 0 : i32
    %c0_i32_0 = arith.constant 0 : i32
    %c0_i32_1 = arith.constant 0 : i32
    return %c0_i32, %c0_i32_0 : i32, i32
  }
  func.func @transform_7(%arg0: i32) -> (i32, i32) {
    %c0_i32 = arith.constant 0 : i32
    %c0_i32_0 = arith.constant 0 : i32
    return %arg0, %c0_i32 : i32, i32
  }
}

</mosaic_0001>

<bundles_post_ra>
// kernel: net_forward.1
= control target key start
LH: loop header
LB: loop body
LE: loop exit
PB: predicated region body
PF: predicated region fallthrough
CT: control target
= control target key end

     0   :  { %12 = vsyncpa [#allocation3], 0  ;;  %s7884_s0 = inlined_call_operand.vmem [shape: bf16[128,896], index: 0, kind: input, shape index: {}]   ;;  %s7885_s1 = inlined_call_operand.hbm [shape: bf16[896,512], index: 1, kind: input, shape index: {}]   ;;  %s7886_s2 = inlined_call_operand.vmem [shape: f32[1,512], index: 2, kind: input, shape index: {}]   ;;  %s7887_s3 = inlined_call_operand.hbm [shape: bf16[512,512], index: 3, kind: input, shape index: {}]   ;;  %s7888_s4 = inlined_call_operand.vmem [shape: f32[1,512], index: 4, kind: input, shape index: {}]   ;;  %s7889_s5 = inlined_call_operand.vmem [shape: bf16[512,128], index: 5, kind: input, shape index: {}]   ;;  %s7890_s6 = inlined_call_operand.vmem [shape: f32[1,128], index: 6, kind: input, shape index: {}]   ;;  %s7891_s7 = inlined_call_operand.vmem [shape: f32[128,128], index: 7, kind: output, shape index: {}]  }
   0x1   :  { %13 = vsyncpa [#allocation5], 0  ;;  %s6545_s24 = smov [#allocation2]  }
   0x2   :  { %s21_s25 = sshll.u32 %s6545_s24, 4  ;;  %s22_s25 = int_to_ptr.vmem [resolvable:$true] %s21_s25 }
   0x3   :  { %s6509_s26 = scalar_lea.vmem %s22_s25, 28672  ;;  %p6514_p1 = scmp.lt.s32.totalorder %s22_s25, %s22_s25 }
   0x4   :  { %p6510_p0 = scmp.ne.s32.totalorder %s22_s25, %s6509_s26  ;;  %p6515_p2 = scmp.lt.s32.totalorder %s6509_s26, %s6509_s26 }
   0x6   :  { %p6516_p3 = por %p6515_p2, %p6514_p1 }
   0x8   :  { %p6517_p4 = pnand %p6516_p3, %p6510_p0 }
   0xa   :  { %6520 = shalt.err (!%p6517_p4)
}
   0xb   :  { %s6546_s27 = smov 256   ;;  %s6547_s28 = smov 16  }
   0xc   :  { %27 = dma.hbm_to_vmem [thread:$0]  %s7885_s1, 28672, %s22_s25, [#allocation3], %s6546_s27, %s6546_s27, %s6547_s28  }
   0xd   :  { %s6548_s8 = smov [#allocation4]  }
   0xe   :  { %s35_s9 = sshll.u32 %s6548_s8, 4  ;;  %s36_s9 = int_to_ptr.vmem [resolvable:$true] %s35_s9 }
   0xf   :  { %s6529_s10 = scalar_lea.vmem %s36_s9, 16384  ;;  %p6534_p6 = scmp.lt.s32.totalorder %s36_s9, %s36_s9 }
  0x10   :  { %p6530_p5 = scmp.ne.s32.totalorder %s36_s9, %s6529_s10  ;;  %p6535_p7 = scmp.lt.s32.totalorder %s6529_s10, %s6529_s10 }
  0x12   :  { %p6536_p8 = por %p6535_p7, %p6534_p6 }
  0x14   :  { %p6537_p9 = pnand %p6536_p8, %p6530_p5 }
  0x16   :  { %6540 = shalt.err (!%p6537_p9)
}
  0x17   :  { %41 = dma.hbm_to_vmem [thread:$0]  %s7887_s3, 16384, %s36_s9, [#allocation5], %s6546_s27, %s6546_s27, %s6547_s28  }
  0x18   :  { %6541 = dma.done.wait [#allocation3], 28672  }
  0x19   :  { %6542 = vsyncadd [#allocation3], 4294938624 }
  0x1a   :  { %6543 = dma.done.wait [#allocation5], 16384  }
  0x1b   :  { %6544 = vsyncadd [#allocation5], 4294950912  ;;  %v5548_v0 = vld [vmem:[#allocation2 + $0xe4] ss:$16 sps:$4 sm:$0xff]   ;;  %v5552_v2 = vld [vmem:[#allocation2 + $0xe0] ss:$16 sps:$4 sm:$0xff]  }
  0x1c   :  { %v5550_v1 = vld [vmem:[#allocation2 + $0x2e4] ss:$16 sps:$4 sm:$0xff]   ;;  %1773 = vmatprep.subr.bf16.mxu0 %v5548_v0  ;;  %v5553_v3 = vld [vmem:[#allocation2 + $0x2e0] ss:$16 sps:$4 sm:$0xff]   ;;  %v5649_v51 = vld [vmem:[%s7884_s0 + $0xc] ss:$28 sps:$4 sm:$0xff]  }
  0x1d   :  { %1886 = vmatprep.subr.bf16.mxu1 %v5550_v1  ;;  %v5554_v4 = vld [vmem:[#allocation2 + $0xc4] ss:$16 sps:$4 sm:$0xff]   ;;  %1774 = vmatpush1.bf16.msra.mxu0 %v5552_v2  ;;  %v5558_v6 = vld [vmem:[#allocation2 + $0xc0] ss:$16 sps:$4 sm:$0xff]  }
  0x1e   :  { %1887 = vmatpush1.bf16.msra.mxu1 %v5553_v3  ;;  %v5556_v5 = vld [vmem:[#allocation2 + $0x2c4] ss:$16 sps:$4 sm:$0xff]   ;;  %1775 = vmatprep.subr.bf16.mxu0 %v5554_v4  ;;  %v5559_v7 = vld [vmem:[#allocation2 + $0x2c0] ss:$16 sps:$4 sm:$0xff]  }
  0x1f   :  { %1888 = vmatprep.subr.bf16.mxu1 %v5556_v5  ;;  %v5560_v8 = vld [vmem:[#allocation2 + $0xa4] ss:$16 sps:$4 sm:$0xff]   ;;  %v5564_v10 = vld [vmem:[#allocation2 + $0xa0] ss:$16 sps:$4 sm:$0xff]   ;;  %1918 = vmatprep.mubr.bf16.mxu1 %v5649_v51 }
  0x20   :  { %v5562_v9 = vld [vmem:[#allocation2 + $0x2a4] ss:$16 sps:$4 sm:$0xff]   ;;  %v5565_v11 = vld [vmem:[#allocation2 + $0x2a0] ss:$16 sps:$4 sm:$0xff]  }
  0x21   :  { %1776 = vmatpush1.bf16.msra.mxu0 %v5558_v6  ;;  %v5566_v12 = vld [vmem:[#allocation2 + $0x84] ss:$16 sps:$4 sm:$0xff]   ;;  %v5570_v14 = vld [vmem:[#allocation2 + $0x80] ss:$16 sps:$4 sm:$0xff]  }
  0x22   :  { %1889 = vmatpush1.bf16.msra.mxu1 %v5559_v7  ;;  %1777 = vmatprep.subr.bf16.mxu0 %v5560_v8  ;;  %v5568_v13 = vld [vmem:[#allocation2 + $0x284] ss:$16 sps:$4 sm:$0xff]   ;;  %v5571_v15 = vld [vmem:[#allocation2 + $0x280] ss:$16 sps:$4 sm:$0xff]  }
  0x23   :  { %1890 = vmatprep.subr.bf16.mxu1 %v5562_v9  ;;  %v5572_v16 = vld [vmem:[#allocation2 + $0x64] ss:$16 sps:$4 sm:$0xff]   ;;  %v5576_v18 = vld [vmem:[#allocation2 + $0x60] ss:$16 sps:$4 sm:$0xff]   ;;  %v5659_v9 = vld [vmem:[%s7884_s0 + $0x3c] ss:$28 sps:$4 sm:$0xff]  }
  0x24   :  { %v5574_v17 = vld [vmem:[#allocation2 + $0x264] ss:$16 sps:$4 sm:$0xff]   ;;  %v5577_v19 = vld [vmem:[#allocation2 + $0x260] ss:$16 sps:$4 sm:$0xff]  }
  0x25   :  { %1778 = vmatpush1.bf16.msra.mxu0 %v5564_v10  ;;  %v5578_v20 = vld [vmem:[#allocation2 + $0x44] ss:$16 sps:$4 sm:$0xff]   ;;  %v5582_v22 = vld [vmem:[#allocation2 + $0x40] ss:$16 sps:$4 sm:$0xff]  }
  0x26   :  { %1891 = vmatpush1.bf16.msra.mxu1 %v5565_v11  ;;  %1779 = vmatprep.subr.bf16.mxu0 %v5566_v12  ;;  %v5580_v21 = vld [vmem:[#allocation2 + $0x244] ss:$16 sps:$4 sm:$0xff]   ;;  %v5583_v23 = vld [vmem:[#allocation2 + $0x240] ss:$16 sps:$4 sm:$0xff]  }
  0x27   :  { %1892 = vmatprep.subr.bf16.mxu1 %v5568_v13  ;;  %v5584_v24 = vld [vmem:[#allocation2 + $0x24] ss:$16 sps:$4 sm:$0xff]   ;;  %v5588_v26 = vld [vmem:[#allocation2 + $0x20] ss:$16 sps:$4 sm:$0xff]  }
  0x28   :  { %v5586_v25 = vld [vmem:[#allocation2 + $0x224] ss:$16 sps:$4 sm:$0xff]   ;;  %v5589_v27 = vld [vmem:[#allocation2 + $0x220] ss:$16 sps:$4 sm:$0xff]  }
  0x29   :  { %1780 = vmatpush1.bf16.msra.mxu0 %v5570_v14  ;;  %v5590_v28 = vld [vmem:[#allocation2 + $0x4] ss:$16 sps:$4 sm:$0xff]   ;;  %v5594_v30 = vld [vmem:[#allocation2] ss:$16 sps:$4 sm:$0xff]  }
  0x2a   :  { %1893 = vmatpush1.bf16.msra.mxu1 %v5571_v15  ;;  %1781 = vmatprep.subr.bf16.mxu0 %v5572_v16  ;;  %v5592_v29 = vld [vmem:[#allocation2 + $0x204] ss:$16 sps:$4 sm:$0xff]   ;;  %v5595_v31 = vld [vmem:[#allocation2 + $0x200] ss:$16 sps:$4 sm:$0xff]  }
  0x2b   :  { %1894 = vmatprep.subr.bf16.mxu1 %v5574_v17  ;;  %v5596_v32 = vld [vmem:[#allocation2 + $0x1e4] ss:$16 sps:$4 sm:$0xff]   ;;  %v5600_v34 = vld [vmem:[#allocation2 + $0x1e0] ss:$16 sps:$4 sm:$0xff]  }
  0x2c   :  { %v5598_v33 = vld [vmem:[#allocation2 + $0x3e4] ss:$16 sps:$4 sm:$0xff]   ;;  %v5601_v35 = vld [vmem:[#allocation2 + $0x3e0] ss:$16 sps:$4 sm:$0xff]  }
  0x2d   :  { %1782 = vmatpush1.bf16.msra.mxu0 %v5576_v18  ;;  %v5602_v36 = vld [vmem:[#allocation2 + $0x1c4] ss:$16 sps:$4 sm:$0xff]   ;;  %v5606_v38 = vld [vmem:[#allocation2 + $0x1c0] ss:$16 sps:$4 sm:$0xff]  }
  0x2e   :  { %1895 = vmatpush1.bf16.msra.mxu1 %v5577_v19  ;;  %1783 = vmatprep.subr.bf16.mxu0 %v5578_v20  ;;  %v5604_v37 = vld [vmem:[#allocation2 + $0x3c4] ss:$16 sps:$4 sm:$0xff]   ;;  %v5607_v39 = vld [vmem:[#allocation2 + $0x3c0] ss:$16 sps:$4 sm:$0xff]  }
  0x2f   :  { %1896 = vmatprep.subr.bf16.mxu1 %v5580_v21  ;;  %v5608_v40 = vld [vmem:[#allocation2 + $0x1a4] ss:$16 sps:$4 sm:$0xff]   ;;  %v5612_v42 = vld [vmem:[#allocation2 + $0x1a0] ss:$16 sps:$4 sm:$0xff]   ;;  %v5676_v21 = vld [vmem:[%s7884_s0 + $0x7c] ss:$28 sps:$4 sm:$0xff]  }
  0x30   :  { %v5610_v41 = vld [vmem:[#allocation2 + $0x3a4] ss:$16 sps:$4 sm:$0xff]   ;;  %v5613_v43 = vld [vmem:[#allocation2 + $0x3a0] ss:$16 sps:$4 sm:$0xff]  }
  0x31   :  { %1784 = vmatpush1.bf16.msra.mxu0 %v5582_v22  ;;  %v5614_v44 = vld [vmem:[#allocation2 + $0x184] ss:$16 sps:$4 sm:$0xff]   ;;  %v5618_v46 = vld [vmem:[#allocation2 + $0x180] ss:$16 sps:$4 sm:$0xff]  }
  0x32   :  { %1897 = vmatpush1.bf16.msra.mxu1 %v5583_v23  ;;  %1785 = vmatprep.subr.bf16.mxu0 %v5584_v24  ;;  %v5616_v45 = vld [vmem:[#allocation2 + $0x384] ss:$16 sps:$4 sm:$0xff]   ;;  %v5619_v47 = vld [vmem:[#allocation2 + $0x380] ss:$16 sps:$4 sm:$0xff]  }
  0x33   :  { %1898 = vmatprep.subr.bf16.mxu1 %v5586_v25  ;;  %v5620_v48 = vld [vmem:[#allocation2 + $0x164] ss:$16 sps:$4 sm:$0xff]   ;;  %v5624_v52 = vld [vmem:[#allocation2 + $0x160] ss:$16 sps:$4 sm:$0xff]  }
  0x34   :  { %v5646_v49 = vld [vmem:[%s7884_s0 + $0x4] ss:$28 sps:$4 sm:$0xff]   ;;  %v5663_v16 = vld [vmem:[%s7884_s0 + $0x38] ss:$28 sps:$4 sm:$0xff]   ;;  %v5678_v25 = vld [vmem:[%s7884_s0 + $0x70] ss:$28 sps:$4 sm:$0xff]  }
  0x35   :  { %1786 = vmatpush1.bf16.msra.mxu0 %v5588_v26  ;;  %v5622_v50 = vld [vmem:[#allocation2 + $0x364] ss:$16 sps:$4 sm:$0xff]   ;;  %1805 = vmatprep.mubr.bf16.mxu0 %v5646_v49  ;;  %v5625_v53 = vld [vmem:[#allocation2 + $0x360] ss:$16 sps:$4 sm:$0xff]  }
  0x36   :  { %1899 = vmatpush1.bf16.msra.mxu1 %v5589_v27  ;;  %1787 = vmatprep.subr.bf16.mxu0 %v5590_v28  ;;  %v5626_v54 = vld [vmem:[#allocation2 + $0x144] ss:$16 sps:$4 sm:$0xff]   ;;  %v5630_v56 = vld [vmem:[#allocation2 + $0x140] ss:$16 sps:$4 sm:$0xff]  }
  0x37   :  { %1900 = vmatprep.subr.bf16.mxu1 %v5592_v29  ;;  %v5628_v55 = vld [vmem:[#allocation2 + $0x344] ss:$16 sps:$4 sm:$0xff]   ;;  %v5631_v57 = vld [vmem:[#allocation2 + $0x340] ss:$16 sps:$4 sm:$0xff]  }
  0x38   :  { %v5632_v58 = vld [vmem:[#allocation2 + $0x124] ss:$16 sps:$4 sm:$0xff]   ;;  %v5636_v60 = vld [vmem:[#allocation2 + $0x120] ss:$16 sps:$4 sm:$0xff]  }
  0x39   :  { %1788 = vmatpush1.bf16.msra.mxu0 %v5594_v30  ;;  %v5634_v59 = vld [vmem:[#allocation2 + $0x324] ss:$16 sps:$4 sm:$0xff]   ;;  %v5637_v61 = vld [vmem:[#allocation2 + $0x320] ss:$16 sps:$4 sm:$0xff]  }
  0x3a   :  { %1901 = vmatpush1.bf16.msra.mxu1 %v5595_v31  ;;  %1789 = vmatprep.subr.bf16.mxu0 %v5596_v32  ;;  %v5638_v62 = vld [vmem:[#allocation2 + $0x104] ss:$16 sps:$4 sm:$0xff]   ;;  %v5642_v0 = vld [vmem:[#allocation2 + $0x100] ss:$16 sps:$4 sm:$0xff]   ;;  %v5689_v31 = vld [vmem:[%s7884_s0 + $0xac] ss:$28 sps:$4 sm:$0xff]  }
  0x3b   :  { %1902 = vmatprep.subr.bf16.mxu1 %v5598_v33  ;;  %v5640_v63 = vld [vmem:[#allocation2 + $0x304] ss:$16 sps:$4 sm:$0xff]   ;;  %v5643_v1 = vld [vmem:[#allocation2 + $0x300] ss:$16 sps:$4 sm:$0xff]  }
  0x3c   :  { %v5652_v2 = vld [vmem:[#allocation2 + $0x4e4] ss:$16 sps:$4 sm:$0xff]   ;;  %v5644_v4 = vld [vmem:[%s7884_s0] ss:$28 sps:$4 sm:$0xff]  }
  0x3d   :  { %1790 = vmatpush2.bf16.msra.mxu0 %v5600_v34  ;;  %v5655_v3 = vld [vmem:[#allocation2 + $0x6e4] ss:$16 sps:$4 sm:$0xff]   ;;  %v5650_v6 = vld [vmem:[#allocation2 + $0x4e0] ss:$16 sps:$4 sm:$0xff]  }
  0x3e   :  { %1903 = vmatpush2.bf16.msra.mxu1 %v5601_v35  ;;  %1791 = vmatprep.subr.bf16.mxu0 %v5602_v36  ;;  %v5647_v5 = vld [vmem:[%s7884_s0 + $0x8] ss:$28 sps:$4 sm:$0xff]   ;;  %v5653_v7 = vld [vmem:[#allocation2 + $0x6e0] ss:$16 sps:$4 sm:$0xff]   ;;  %v5679_v27 = vld [vmem:[%s7884_s0 + $0x78] ss:$28 sps:$4 sm:$0xff]  }
  0x3f   :  { %1904 = vmatprep.subr.bf16.mxu1 %v5604_v37  ;;  %v5658_v8 = vld [vmem:[#allocation2 + $0x4c4] ss:$16 sps:$4 sm:$0xff]   ;;  %v5656_v12 = vld [vmem:[#allocation2 + $0x4c0] ss:$16 sps:$4 sm:$0xff]  }
  0x40   :  { %v5661_v10 = vld [vmem:[%s7884_s0 + $0x44] ss:$28 sps:$4 sm:$0xff]   ;;  %v5674_v20 = vld [vmem:[%s7884_s0 + $0x74] ss:$28 sps:$4 sm:$0xff]  }
  0x41   :  { %1792 = vmatpush2.bf16.msra.mxu0 %v5606_v38  ;;  %v5670_v11 = vld [vmem:[#allocation2 + $0x6c4] ss:$16 sps:$4 sm:$0xff]   ;;  %v5668_v14 = vld [vmem:[#allocation2 + $0x6c0] ss:$16 sps:$4 sm:$0xff]  }
  0x42   :  { %1905 = vmatpush2.bf16.msra.mxu1 %v5607_v39  ;;  %1793 = vmatprep.subr.bf16.mxu0 %v5608_v40  ;;  %v5667_v13 = vld [vmem:[#allocation2 + $0x4a4] ss:$16 sps:$4 sm:$0xff]   ;;  %v5664_v17 = vld [vmem:[%s7884_s0 + $0x40] ss:$28 sps:$4 sm:$0xff]   ;;  %v5694_v39 = vld [vmem:[%s7884_s0 + $0xb0] ss:$28 sps:$4 sm:$0xff]  }
  0x43   :  { %1906 = vmatprep.subr.bf16.mxu1 %v5610_v41  ;;  %v5685_v15 = vld [vmem:[#allocation2 + $0x6a4] ss:$16 sps:$4 sm:$0xff]   ;;  %v5665_v18 = vld [vmem:[#allocation2 + $0x4a0] ss:$16 sps:$4 sm:$0xff]  }
  0x44   :  { %v5673_v19 = vld [vmem:[#allocation2 + $0x484] ss:$16 sps:$4 sm:$0xff]   ;;  %v5683_v22 = vld [vmem:[#allocation2 + $0x6a0] ss:$16 sps:$4 sm:$0xff]  }
  0x45   :  { %1794 = vmatpush2.bf16.msra.mxu0 %v5612_v42  ;;  %v5700_v23 = vld [vmem:[#allocation2 + $0x684] ss:$16 sps:$4 sm:$0xff]   ;;  %v5671_v24 = vld [vmem:[#allocation2 + $0x480] ss:$16 sps:$4 sm:$0xff]  }
  0x46   :  { %1907 = vmatpush2.bf16.msra.mxu1 %v5613_v43  ;;  %1795 = vmatprep.subr.bf16.mxu0 %v5614_v44  ;;  %v5682_v26 = vld [vmem:[#allocation2 + $0x464] ss:$16 sps:$4 sm:$0xff]   ;;  %v5698_v28 = vld [vmem:[#allocation2 + $0x680] ss:$16 sps:$4 sm:$0xff]   ;;  %v5706_v43 = vld [vmem:[%s7884_s0 + $0xec] ss:$28 sps:$4 sm:$0xff]  }
  0x47   :  { %1908 = vmatprep.subr.bf16.mxu1 %v5616_v45  ;;  %v5680_v29 = vld [vmem:[#allocation2 + $0x460] ss:$16 sps:$4 sm:$0xff]   ;;  %v5688_v30 = vld [vmem:[#allocation2 + $0x444] ss:$16 sps:$4 sm:$0xff]  }
  0x48   :  { %v5691_v32 = vld [vmem:[%s7884_s0 + $0xb4] ss:$28 sps:$4 sm:$0xff]   ;;  %v5693_v38 = vld [vmem:[%s7884_s0 + $0xa8] ss:$28 sps:$4 sm:$0xff]  }
  0x49   :  { %1796 = vmatpush2.bf16.msra.mxu0 %v5618_v46  ;;  %v5715_v33 = vld [vmem:[#allocation2 + $0x664] ss:$16 sps:$4 sm:$0xff]   ;;  %v5713_v34 = vld [vmem:[#allocation2 + $0x660] ss:$16 sps:$4 sm:$0xff]  }
  0x4a   :  { %1909 = vmatpush2.bf16.msra.mxu1 %v5619_v47  ;;  %1797 = vmatprep.subr.bf16.mxu0 %v5620_v48  ;;  %v5686_v35 = vld [vmem:[#allocation2 + $0x440] ss:$16 sps:$4 sm:$0xff]   ;;  %v5730_v36 = vld [vmem:[#allocation2 + $0x644] ss:$16 sps:$4 sm:$0xff]  }
  0x4b   :  { %1910 = vmatprep.subr.bf16.mxu1 %v5622_v50  ;;  %v5697_v37 = vld [vmem:[#allocation2 + $0x424] ss:$16 sps:$4 sm:$0xff]   ;;  %v5695_v40 = vld [vmem:[#allocation2 + $0x420] ss:$16 sps:$4 sm:$0xff]  }
  0x4c   :  { %v5703_v41 = vld [vmem:[#allocation2 + $0x404] ss:$16 sps:$4 sm:$0xff]   ;;  %v5728_v44 = vld [vmem:[#allocation2 + $0x640] ss:$16 sps:$4 sm:$0xff]  }
  0x4d   :  { %1798 = vmatpush2.bf16.msra.mxu0 %v5624_v52  ;;  %v5704_v42 = vld [vmem:[%s7884_s0 + $0xe4] ss:$28 sps:$4 sm:$0xff]  }
  0x4e   :  { %1911 = vmatpush2.bf16.msra.mxu1 %v5625_v53  ;;  %1799 = vmatprep.subr.bf16.mxu0 %v5626_v54  ;;  %v5745_v45 = vld [vmem:[#allocation2 + $0x624] ss:$16 sps:$4 sm:$0xff]   ;;  %v5701_v46 = vld [vmem:[#allocation2 + $0x400] ss:$16 sps:$4 sm:$0xff]   ;;  %v5719_v53 = vld [vmem:[%s7884_s0 + $0x11c] ss:$28 sps:$4 sm:$0xff]  }
  0x4f   :  { %1912 = vmatprep.subr.bf16.mxu1 %v5628_v55  ;;  %v5708_v47 = vld [vmem:[%s7884_s0 + $0xe0] ss:$28 sps:$4 sm:$0xff]   ;;  %v5712_v48 = vld [vmem:[#allocation2 + $0x5e4] ss:$16 sps:$4 sm:$0xff]  }
  0x50   :  { %v5709_v49 = vld [vmem:[%s7884_s0 + $0xe8] ss:$28 sps:$4 sm:$0xff]   ;;  %v5743_v50 = vld [vmem:[#allocation2 + $0x620] ss:$16 sps:$4 sm:$0xff]  }
  0x51   :  { %1800 = vmatpush2.bf16.msra.mxu0 %v5630_v56  ;;  %v5710_v51 = vld [vmem:[#allocation2 + $0x5e0] ss:$16 sps:$4 sm:$0xff]   ;;  %v5718_v52 = vld [vmem:[#allocation2 + $0x5c4] ss:$16 sps:$4 sm:$0xff]  }
  0x52   :  { %1913 = vmatpush2.bf16.msra.mxu1 %v5631_v57  ;;  %1801 = vmatprep.subr.bf16.mxu0 %v5632_v58  ;;  %v5721_v54 = vld [vmem:[%s7884_s0 + $0x124] ss:$28 sps:$4 sm:$0xff]   ;;  %v5773_v58 = vld [vmem:[#allocation2 + $0x2ec] ss:$16 sps:$4 sm:$0xff]  }
  0x53   :  { %1914 = vmatprep.subr.bf16.mxu1 %v5634_v59  ;;  %v5760_v55 = vld [vmem:[#allocation2 + $0x604] ss:$16 sps:$4 sm:$0xff]   ;;  %v5758_v56 = vld [vmem:[#allocation2 + $0x600] ss:$16 sps:$4 sm:$0xff]  }
  0x54   :  { %v5716_v57 = vld [vmem:[#allocation2 + $0x5c0] ss:$16 sps:$4 sm:$0xff]   ;;  %v5727_v59 = vld [vmem:[#allocation2 + $0x5a4] ss:$16 sps:$4 sm:$0xff]  }
  0x55   :  { %1802 = vmatpush2.bf16.msra.mxu0 %v5636_v60  ;;  %v5723_v60 = vld [vmem:[%s7884_s0 + $0x118] ss:$28 sps:$4 sm:$0xff]  }
  0x56   :  { %1915 = vmatpush2.bf16.msra.mxu1 %v5637_v61  ;;  %1803 = vmatprep.subr.bf16.mxu0 %v5638_v62  ;;  %v5724_v61 = vld [vmem:[%s7884_s0 + $0x120] ss:$28 sps:$4 sm:$0xff]  }
  0x57   :  { %1916 = vmatprep.subr.bf16.mxu1 %v5640_v63  ;;  %v5725_v62 = vld [vmem:[#allocation2 + $0x5a0] ss:$16 sps:$4 sm:$0xff]   ;;  %v5733_v63 = vld [vmem:[#allocation2 + $0x584] ss:$16 sps:$4 sm:$0xff]  }
  0x59   :  { %1804 = vmatpush2.bf16.msra.mxu0 %v5642_v0  ;;  %v5734_v0 = vld [vmem:[%s7884_s0 + $0x154] ss:$28 sps:$4 sm:$0xff]  }
  0x5a   :  { %1917 = vmatpush2.bf16.msra.mxu1 %v5643_v1  ;;  %1999 = vmatprep.subr.bf16.mxu0 %v5652_v2  ;;  %v5736_v1 = vld [vmem:[%s7884_s0 + $0x15c] ss:$28 sps:$4 sm:$0xff]   ;;  %v5731_v2 = vld [vmem:[#allocation2 + $0x580] ss:$16 sps:$4 sm:$0xff]  }
  0x5b   :  { %2112 = vmatprep.subr.bf16.mxu1 %v5655_v3  ;;  %v5738_v3 = vld [vmem:[%s7884_s0 + $0x150] ss:$28 sps:$4 sm:$0xff]  }
  0x5c   :  { %1806 = vmatmul.mubr.bf16.vlgmr.msra.gmra.mxu0 %v5644_v4  ;;  %v5742_v4 = vld [vmem:[#allocation2 + $0x564] ss:$16 sps:$4 sm:$0xff]  }
  0x5d   :  { %1919 = vmatmul.mubr.bf16.vlgmr.msra.gmra.mxu1 %v5647_v5  ;;  %2000 = vmatpush1.bf16.msra.mxu0 %v5650_v6  ;;  %v5739_v5 = vld [vmem:[%s7884_s0 + $0x158] ss:$28 sps:$4 sm:$0xff]   ;;  %v5740_v6 = vld [vmem:[#allocation2 + $0x560] ss:$16 sps:$4 sm:$0xff]  }
  0x5e   :  { %2113 = vmatpush1.bf16.msra.mxu1 %v5653_v7  ;;  %2001 = vmatprep.subr.bf16.mxu0 %v5658_v8  ;;  %v5748_v7 = vld [vmem:[#allocation2 + $0x544] ss:$16 sps:$4 sm:$0xff]   ;;  %v5749_v8 = vld [vmem:[%s7884_s0 + $0x18c] ss:$28 sps:$4 sm:$0xff]  }
  0x5f   :  { %1815 = vmatprep.mubr.bf16.mxu0 %v5659_v9  ;;  %1928 = vmatprep.mubr.bf16.mxu1 %v5661_v10  ;;  %v5751_v9 = vld [vmem:[%s7884_s0 + $0x194] ss:$28 sps:$4 sm:$0xff]  }
  0x60   :  { %2114 = vmatprep.subr.bf16.mxu1 %v5670_v11  ;;  %v5746_v10 = vld [vmem:[#allocation2 + $0x540] ss:$16 sps:$4 sm:$0xff]   ;;  %v5757_v11 = vld [vmem:[#allocation2 + $0x524] ss:$16 sps:$4 sm:$0xff]  }
  0x61   :  { %2002 = vmatpush1.bf16.msra.mxu0 %v5656_v12  ;;  %v5753_v12 = vld [vmem:[%s7884_s0 + $0x188] ss:$28 sps:$4 sm:$0xff]  }
  0x62   :  { %2115 = vmatpush1.bf16.msra.mxu1 %v5668_v14  ;;  %2003 = vmatprep.subr.bf16.mxu0 %v5667_v13  ;;  %v5754_v13 = vld [vmem:[%s7884_s0 + $0x190] ss:$28 sps:$4 sm:$0xff]  }
  0x63   :  { %2116 = vmatprep.subr.bf16.mxu1 %v5685_v15  ;;  %v5755_v14 = vld [vmem:[#allocation2 + $0x520] ss:$16 sps:$4 sm:$0xff]  }
  0x64   :  { %1816 = vmatmul.mubr.bf16.gmra.mxu0 %v5663_v16  ;;  %v5766_v15 = vld [vmem:[%s7884_s0 + $0x14] ss:$28 sps:$4 sm:$0xff]  }
  0x65   :  { %1929 = vmatmul.mubr.bf16.gmra.mxu1 %v5664_v17  ;;  %2004 = vmatpush1.bf16.msra.mxu0 %v5665_v18  ;;  %v5763_v16 = vld [vmem:[#allocation2 + $0x504] ss:$16 sps:$4 sm:$0xff]   ;;  %v5761_v17 = vld [vmem:[#allocation2 + $0x500] ss:$16 sps:$4 sm:$0xff]   ;;  %v6549_v18 = vmov 0  }
  0x66   :  { %1825 = vmatprep.mubr.bf16.mxu0 %v5674_v20  ;;  %2005 = vmatprep.subr.bf16.mxu0 %v5673_v19  ;;  %v5770_v19 = vld [vmem:[#allocation2 + $0xec] ss:$16 sps:$4 sm:$0xff]  }
  0x67   :  { %1938 = vmatprep.mubr.bf16.mxu1 %v5676_v21  ;;  %2117 = vmatpush1.bf16.msra.mxu1 %v5683_v22  ;;  %v5764_v20 = vld [vmem:[%s7884_s0 + $0x10] ss:$28 sps:$4 sm:$0xff]   ;;  %v5767_v21 = vld [vmem:[%s7884_s0 + $0x18] ss:$28 sps:$4 sm:$0xff]  }
  0x68   :  { %2118 = vmatprep.subr.bf16.mxu1 %v5700_v23  ;;  %v5768_v22 = vld [vmem:[#allocation2 + $0xe8] ss:$16 sps:$4 sm:$0xff]  }
  0x69   :  { %2006 = vmatpush1.bf16.msra.mxu0 %v5671_v24  ;;  %v5771_v23 = vld [vmem:[#allocation2 + $0x2e8] ss:$16 sps:$4 sm:$0xff]   ;;  %v5776_v24 = vld [vmem:[#allocation2 + $0xcc] ss:$16 sps:$4 sm:$0xff]  }
  0x6a   :  { %2007 = vmatprep.subr.bf16.mxu0 %v5682_v26  ;;  %v5780_v26 = vld [vmem:[%s7884_s0 + $0x4c] ss:$28 sps:$4 sm:$0xff]  }
  0x6b   :  { %2119 = vmatpush1.bf16.msra.mxu1 %v5698_v28  ;;  %v5777_v28 = vld [vmem:[#allocation2 + $0x2c8] ss:$16 sps:$4 sm:$0xff]  }
  0x6c   :  { %1826 = vmatmul.mubr.bf16.gmra.mxu0 %v5678_v25  ;;  %2120 = vmatprep.subr.bf16.mxu1 %v5715_v33  ;;  %v5779_v25 = vld [vmem:[#allocation2 + $0x2cc] ss:$16 sps:$4 sm:$0xff]   ;;  %v5784_v33 = vld [vmem:[#allocation2 + $0xa8] ss:$16 sps:$4 sm:$0xff]  }
  0x6d   :  { %1939 = vmatmul.mubr.bf16.gmra.mxu1 %v5679_v27  ;;  %2008 = vmatpush1.bf16.msra.mxu0 %v5680_v29  ;;  %v5774_v27 = vld [vmem:[#allocation2 + $0xc8] ss:$16 sps:$4 sm:$0xff]   ;;  %v5786_v29 = vld [vmem:[#allocation2 + $0xac] ss:$16 sps:$4 sm:$0xff]  }
  0x6e   :  { %1835 = vmatprep.mubr.bf16.mxu0 %v5689_v31  ;;  %2009 = vmatprep.subr.bf16.mxu0 %v5688_v30  ;;  %v5789_v30 = vld [vmem:[#allocation2 + $0x2ac] ss:$16 sps:$4 sm:$0xff]   ;;  %v5782_v31 = vld [vmem:[%s7884_s0 + $0x48] ss:$28 sps:$4 sm:$0xff]  }
  0x6f   :  { %1948 = vmatprep.mubr.bf16.mxu1 %v5691_v32  ;;  %2121 = vmatpush1.bf16.msra.mxu1 %v5713_v34  ;;  %v5783_v32 = vld [vmem:[%s7884_s0 + $0x50] ss:$28 sps:$4 sm:$0xff]   ;;  %v5787_v34 = vld [vmem:[#allocation2 + $0x2a8] ss:$16 sps:$4 sm:$0xff]  }
  0x70   :  { %2122 = vmatprep.subr.bf16.mxu1 %v5730_v36  ;;  %v5795_v36 = vld [vmem:[#allocation2 + $0x28c] ss:$16 sps:$4 sm:$0xff]  }
  0x71   :  { %2010 = vmatpush1.bf16.msra.mxu0 %v5686_v35  ;;  %v5792_v35 = vld [vmem:[#allocation2 + $0x8c] ss:$16 sps:$4 sm:$0xff]  }
  0x72   :  { %2011 = vmatprep.subr.bf16.mxu0 %v5697_v37  ;;  %v5796_v37 = vld [vmem:[%s7884_s0 + $0x84] ss:$28 sps:$4 sm:$0xff]  }
  0x73   :  { %2123 = vmatpush1.bf16.msra.mxu1 %v5728_v44  ;;  %v5800_v44 = vld [vmem:[#allocation2 + $0x68] ss:$16 sps:$4 sm:$0xff]  }
  0x74   :  { %1836 = vmatmul.mubr.bf16.gmra.mxu0 %v5693_v38  ;;  %2124 = vmatprep.subr.bf16.mxu1 %v5745_v45  ;;  %v5790_v38 = vld [vmem:[#allocation2 + $0x88] ss:$16 sps:$4 sm:$0xff]  }
  0x75   :  { %1949 = vmatmul.mubr.bf16.gmra.mxu1 %v5694_v39  ;;  %2012 = vmatpush1.bf16.msra.mxu0 %v5695_v40  ;;  %v5793_v39 = vld [vmem:[#allocation2 + $0x288] ss:$16 sps:$4 sm:$0xff]   ;;  %v5798_v40 = vld [vmem:[%s7884_s0 + $0x80] ss:$28 sps:$4 sm:$0xff]  }
  0x76   :  { %1845 = vmatprep.mubr.bf16.mxu0 %v5704_v42  ;;  %2013 = vmatprep.subr.bf16.mxu0 %v5703_v41  ;;  %v5802_v41 = vld [vmem:[#allocation2 + $0x6c] ss:$16 sps:$4 sm:$0xff]   ;;  %v5803_v45 = vld [vmem:[#allocation2 + $0x268] ss:$16 sps:$4 sm:$0xff]  }
  0x77   :  { %1958 = vmatprep.mubr.bf16.mxu1 %v5706_v43  ;;  %2125 = vmatpush1.bf16.msra.mxu1 %v5743_v50  ;;  %v5805_v42 = vld [vmem:[#allocation2 + $0x26c] ss:$16 sps:$4 sm:$0xff]   ;;  %v5799_v43 = vld [vmem:[%s7884_s0 + $0x88] ss:$28 sps:$4 sm:$0xff]  }
  0x78   :  { %2126 = vmatprep.subr.bf16.mxu1 %v5760_v55  ;;  %v5809_v50 = vld [vmem:[#allocation2 + $0x248] ss:$16 sps:$4 sm:$0xff]  }
  0x79   :  { %2014 = vmatpush1.bf16.msra.mxu0 %v5701_v46  ;;  %v5808_v46 = vld [vmem:[#allocation2 + $0x4c] ss:$16 sps:$4 sm:$0xff]   ;;  %v5816_v55 = vld [vmem:[#allocation2 + $0x28] ss:$16 sps:$4 sm:$0xff]  }
  0x7a   :  { %2015 = vmatprep.subr.bf16.mxu0 %v5712_v48  ;;  %v5812_v48 = vld [vmem:[%s7884_s0 + $0xbc] ss:$28 sps:$4 sm:$0xff]  }
  0x7b   :  { %2127 = vmatpush1.bf16.msra.mxu1 %v5758_v56  ;;  %v5819_v56 = vld [vmem:[#allocation2 + $0x228] ss:$16 sps:$4 sm:$0xff]  }
  0x7c   :  { %1846 = vmatmul.mubr.bf16.gmra.mxu0 %v5708_v47  ;;  %2338 = vmatprep.subr.bf16.mxu1 %v5773_v58  ;;  %v5811_v47 = vld [vmem:[#allocation2 + $0x24c] ss:$16 sps:$4 sm:$0xff]  }
  0x7d   :  { %1959 = vmatmul.mubr.bf16.gmra.mxu1 %v5709_v49  ;;  %2016 = vmatpush2.bf16.msra.mxu0 %v5710_v51  ;;  %v5806_v49 = vld [vmem:[#allocation2 + $0x48] ss:$16 sps:$4 sm:$0xff]   ;;  %v5827_v58 = vld [vmem:[#allocation2 + $0x20c] ss:$16 sps:$4 sm:$0xff]  }
  0x7e   :  { %1855 = vmatprep.mubr.bf16.mxu0 %v5719_v53  ;;  %2017 = vmatprep.subr.bf16.mxu0 %v5718_v52  ;;  %v5814_v51 = vld [vmem:[%s7884_s0 + $0xb8] ss:$28 sps:$4 sm:$0xff]   ;;  %v5818_v52 = vld [vmem:[#allocation2 + $0x2c] ss:$16 sps:$4 sm:$0xff]  }
  0x7f   :  { %1968 = vmatprep.mubr.bf16.mxu1 %v5721_v54  ;;  %v5821_v53 = vld [vmem:[#allocation2 + $0x22c] ss:$16 sps:$4 sm:$0xff]  }
  0x80   :  { %v5815_v54 = vld [vmem:[%s7884_s0 + $0xc0] ss:$28 sps:$4 sm:$0xff]  }
  0x81   :  { %2018 = vmatpush2.bf16.msra.mxu0 %v5716_v57  ;;  %v5824_v57 = vld [vmem:[#allocation2 + $0xc] ss:$16 sps:$4 sm:$0xff]  }
  0x82   :  { %2019 = vmatprep.subr.bf16.mxu0 %v5727_v59  ;;  %v5828_v59 = vld [vmem:[%s7884_s0 + $0xf4] ss:$28 sps:$4 sm:$0xff]  }
  0x84   :  { %1856 = vmatmul.mubr.bf16.gmra.mxu0 %v5723_v60  ;;  %v5822_v60 = vld [vmem:[#allocation2 + $0x8] ss:$16 sps:$4 sm:$0xff]  }
  0x85   :  { %1969 = vmatmul.mubr.bf16.gmra.mxu1 %v5724_v61  ;;  %2020 = vmatpush2.bf16.msra.mxu0 %v5725_v62  ;;  %v5825_v61 = vld [vmem:[#allocation2 + $0x208] ss:$16 sps:$4 sm:$0xff]   ;;  %v5834_v62 = vld [vmem:[#allocation2 + $0x1ec] ss:$16 sps:$4 sm:$0xff]  }
  0x86   :  { %1865 = vmatprep.mubr.bf16.mxu0 %v5734_v0  ;;  %2021 = vmatprep.subr.bf16.mxu0 %v5733_v63  ;;  %v5837_v63 = vld [vmem:[#allocation2 + $0x3ec] ss:$16 sps:$4 sm:$0xff]  }
  0x87   :  { %1978 = vmatprep.mubr.bf16.mxu1 %v5736_v1  ;;  %v5830_v0 = vld [vmem:[%s7884_s0 + $0xf0] ss:$28 sps:$4 sm:$0xff]   ;;  %v5831_v1 = vld [vmem:[%s7884_s0 + $0xf8] ss:$28 sps:$4 sm:$0xff]  }
  0x89   :  { %2022 = vmatpush2.bf16.msra.mxu0 %v5731_v2  ;;  %v5832_v2 = vld [vmem:[#allocation2 + $0x1e8] ss:$16 sps:$4 sm:$0xff]  }
  0x8a   :  { %2023 = vmatprep.subr.bf16.mxu0 %v5742_v4  ;;  %v5840_v4 = vld [vmem:[#allocation2 + $0x1cc] ss:$16 sps:$4 sm:$0xff]  }
  0x8c   :  { %1866 = vmatmul.mubr.bf16.gmra.mxu0 %v5738_v3  ;;  %v5835_v3 = vld [vmem:[#allocation2 + $0x3e8] ss:$16 sps:$4 sm:$0xff]  }
  0x8d   :  { %1979 = vmatmul.mubr.bf16.gmra.mxu1 %v5739_v5  ;;  %2024 = vmatpush2.bf16.msra.mxu0 %v5740_v6  ;;  %v5843_v5 = vld [vmem:[#allocation2 + $0x3cc] ss:$16 sps:$4 sm:$0xff]  }
  0x8e   :  { %1875 = vmatprep.mubr.bf16.mxu0 %v5749_v8  ;;  %2025 = vmatprep.subr.bf16.mxu0 %v5748_v7  ;;  %v5844_v6 = vld [vmem:[%s7884_s0 + $0x12c] ss:$28 sps:$4 sm:$0xff]  }
  0x8f   :  { %1988 = vmatprep.mubr.bf16.mxu1 %v5751_v9  ;;  %v5838_v7 = vld [vmem:[#allocation2 + $0x1c8] ss:$16 sps:$4 sm:$0xff]   ;;  %v5850_v9 = vld [vmem:[#allocation2 + $0x1ac] ss:$16 sps:$4 sm:$0xff]  }
  0x90   :  { %v5841_v8 = vld [vmem:[#allocation2 + $0x3c8] ss:$16 sps:$4 sm:$0xff]  }
  0x91   :  { %2026 = vmatpush2.bf16.msra.mxu0 %v5746_v10  ;;  %v5853_v10 = vld [vmem:[#allocation2 + $0x3ac] ss:$16 sps:$4 sm:$0xff]  }
  0x92   :  { %2027 = vmatprep.subr.bf16.mxu0 %v5757_v11  ;;  %v5846_v11 = vld [vmem:[%s7884_s0 + $0x128] ss:$28 sps:$4 sm:$0xff]  }
  0x94   :  { %1876 = vmatmul.mubr.bf16.gmra.mxu0 %v5753_v12  ;;  %v5847_v12 = vld [vmem:[%s7884_s0 + $0x130] ss:$28 sps:$4 sm:$0xff]  }
  0x95   :  { %1989 = vmatmul.mubr.bf16.gmra.mxu1 %v5754_v13  ;;  %2028 = vmatpush2.bf16.msra.mxu0 %v5755_v14  ;;  %v5848_v13 = vld [vmem:[#allocation2 + $0x1a8] ss:$16 sps:$4 sm:$0xff]  }
  0x96   :  { %2031 = vmatprep.mubr.bf16.mxu0 %v5766_v15  ;;  %2029 = vmatprep.subr.bf16.mxu0 %v5763_v16  ;;  %v5851_v14 = vld [vmem:[#allocation2 + $0x3a8] ss:$16 sps:$4 sm:$0xff]   ;;  %v5856_v15 = vld [vmem:[#allocation2 + $0x18c] ss:$16 sps:$4 sm:$0xff]  }
  0x97   :  { %2144 = vmatprep.mubr.bf16.mxu1 %v6549_v18  ;;  %v5859_v16 = vld [vmem:[#allocation2 + $0x38c] ss:$16 sps:$4 sm:$0xff]  }
  0x99   :  { %2030 = vmatpush2.bf16.msra.mxu0 %v5761_v17  ;;  %v5860_v17 = vld [vmem:[%s7884_s0 + $0x164] ss:$28 sps:$4 sm:$0xff]  }
  0x9a   :  { %2225 = vmatprep.subr.bf16.mxu0 %v5770_v19  ;;  %v5854_v19 = vld [vmem:[#allocation2 + $0x188] ss:$16 sps:$4 sm:$0xff]  }
  0x9c   :  { %2032 = vmatmul.mubr.bf16.vlgmr.msra.gmra.mxu0 %v5764_v20  ;;  %v5857_v20 = vld [vmem:[#allocation2 + $0x388] ss:$16 sps:$4 sm:$0xff]  }
  0x9d   :  { %2145 = vmatmul.mubr.bf16.vlgmr.msra.gmra.mxu1 %v5767_v21  ;;  %2226 = vmatpush1.bf16.msra.mxu0 %v5768_v22  ;;  %v5866_v21 = vld [vmem:[#allocation2 + $0x16c] ss:$16 sps:$4 sm:$0xff]  }
  0x9e   :  { %2339 = vmatpush1.bf16.msra.mxu1 %v5771_v23  ;;  %2227 = vmatprep.subr.bf16.mxu0 %v5776_v24  ;;  %v5869_v22 = vld [vmem:[#allocation2 + $0x36c] ss:$16 sps:$4 sm:$0xff]   ;;  %v5863_v24 = vld [vmem:[%s7884_s0 + $0x168] ss:$28 sps:$4 sm:$0xff]  }
  0x9f   :  { %2340 = vmatprep.subr.bf16.mxu1 %v5779_v25  ;;  %2041 = vmatprep.mubr.bf16.mxu0 %v5780_v26  ;;  %v5862_v23 = vld [vmem:[%s7884_s0 + $0x160] ss:$28 sps:$4 sm:$0xff]   ;;  %v5864_v25 = vld [vmem:[#allocation2 + $0x168] ss:$16 sps:$4 sm:$0xff]  }
  0xa0   :  { %2154 = vmatprep.mubr.bf16.mxu1 %v6549_v18  ;;  %v5867_v26 = vld [vmem:[#allocation2 + $0x368] ss:$16 sps:$4 sm:$0xff]  }
  0xa1   :  { %2228 = vmatpush1.bf16.msra.mxu0 %v5774_v27  ;;  %v5872_v27 = vld [vmem:[#allocation2 + $0x14c] ss:$16 sps:$4 sm:$0xff]  }
  0xa2   :  { %2341 = vmatpush1.bf16.msra.mxu1 %v5777_v28  ;;  %2229 = vmatprep.subr.bf16.mxu0 %v5786_v29  ;;  %v5875_v28 = vld [vmem:[#allocation2 + $0x34c] ss:$16 sps:$4 sm:$0xff]  }
  0xa3   :  { %2342 = vmatprep.subr.bf16.mxu1 %v5789_v30  ;;  %v5876_v29 = vld [vmem:[%s7884_s0 + $0x19c] ss:$28 sps:$4 sm:$0xff]  }
  0xa4   :  { %2042 = vmatmul.mubr.bf16.gmra.mxu0 %v5782_v31  ;;  %v5870_v30 = vld [vmem:[#allocation2 + $0x148] ss:$16 sps:$4 sm:$0xff]  }
  0xa5   :  { %2155 = vmatmul.mubr.bf16.gmra.mxu1 %v5783_v32  ;;  %2230 = vmatpush1.bf16.msra.mxu0 %v5784_v33  ;;  %v5873_v31 = vld [vmem:[#allocation2 + $0x348] ss:$16 sps:$4 sm:$0xff]   ;;  %v5882_v32 = vld [vmem:[#allocation2 + $0x12c] ss:$16 sps:$4 sm:$0xff]  }
  0xa6   :  { %2343 = vmatpush1.bf16.msra.mxu1 %v5787_v34  ;;  %2231 = vmatprep.subr.bf16.mxu0 %v5792_v35  ;;  %v5885_v33 = vld [vmem:[#allocation2 + $0x32c] ss:$16 sps:$4 sm:$0xff]   ;;  %v5878_v34 = vld [vmem:[%s7884_s0 + $0x198] ss:$28 sps:$4 sm:$0xff]  }
  0xa7   :  { %2344 = vmatprep.subr.bf16.mxu1 %v5795_v36  ;;  %2051 = vmatprep.mubr.bf16.mxu0 %v5796_v37  ;;  %v5879_v35 = vld [vmem:[%s7884_s0 + $0x1a0] ss:$28 sps:$4 sm:$0xff]   ;;  %v5880_v36 = vld [vmem:[#allocation2 + $0x128] ss:$16 sps:$4 sm:$0xff]  }
  0xa8   :  { %2164 = vmatprep.mubr.bf16.mxu1 %v6549_v18  ;;  %v5883_v37 = vld [vmem:[#allocation2 + $0x328] ss:$16 sps:$4 sm:$0xff]  }
  0xa9   :  { %2232 = vmatpush1.bf16.msra.mxu0 %v5790_v38  ;;  %v5888_v38 = vld [vmem:[#allocation2 + $0x10c] ss:$16 sps:$4 sm:$0xff]  }
  0xaa   :  { %2345 = vmatpush1.bf16.msra.mxu1 %v5793_v39  ;;  %2233 = vmatprep.subr.bf16.mxu0 %v5802_v41  ;;  %v5891_v39 = vld [vmem:[#allocation2 + $0x30c] ss:$16 sps:$4 sm:$0xff]   ;;  %v5889_v41 = vld [vmem:[#allocation2 + $0x308] ss:$16 sps:$4 sm:$0xff]  }
  0xab   :  { %2346 = vmatprep.subr.bf16.mxu1 %v5805_v42  ;;  %v5894_v42 = vld [vmem:[#allocation2 + $0x4ec] ss:$16 sps:$4 sm:$0xff]  }
  0xac   :  { %2052 = vmatmul.mubr.bf16.gmra.mxu0 %v5798_v40  ;;  %v5886_v40 = vld [vmem:[#allocation2 + $0x108] ss:$16 sps:$4 sm:$0xff]  }
  0xad   :  { %2165 = vmatmul.mubr.bf16.gmra.mxu1 %v5799_v43  ;;  %2234 = vmatpush1.bf16.msra.mxu0 %v5800_v44  ;;  %v5897_v43 = vld [vmem:[#allocation2 + $0x6ec] ss:$16 sps:$4 sm:$0xff]   ;;  %v6444_v44 = vld [vmem:[%s7884_s0 + $0x4] ss:$28 sps:$4 sm:$0xff]  }
  0xae   :  { %2347 = vmatpush1.bf16.msra.mxu1 %v5803_v45  ;;  %2235 = vmatprep.subr.bf16.mxu0 %v5808_v46  ;;  %v6445_v45 = vld [vmem:[%s7884_s0 + $0xc] ss:$28 sps:$4 sm:$0xff]  }
  0xaf   :  { %2348 = vmatprep.subr.bf16.mxu1 %v5811_v47  ;;  %2061 = vmatprep.mubr.bf16.mxu0 %v5812_v48  ;;  %v5892_v46 = vld [vmem:[#allocation2 + $0x4e8] ss:$16 sps:$4 sm:$0xff]   ;;  %v5900_v48 = vld [vmem:[#allocation2 + $0x4cc] ss:$16 sps:$4 sm:$0xff]  }
  0xb0   :  { %2174 = vmatprep.mubr.bf16.mxu1 %v6549_v18  ;;  %v5895_v47 = vld [vmem:[#allocation2 + $0x6e8] ss:$16 sps:$4 sm:$0xff]  }
  0xb1   :  { %2236 = vmatpush1.bf16.msra.mxu0 %v5806_v49  ;;  %v5906_v49 = vld [vmem:[#allocation2 + $0x6cc] ss:$16 sps:$4 sm:$0xff]  }
  0xb2   :  { %2349 = vmatpush1.bf16.msra.mxu1 %v5809_v50  ;;  %2237 = vmatprep.subr.bf16.mxu0 %v5818_v52  ;;  %v6446_v50 = vld [vmem:[%s7884_s0] ss:$28 sps:$4 sm:$0xff]   ;;  %v5898_v52 = vld [vmem:[#allocation2 + $0x4c8] ss:$16 sps:$4 sm:$0xff]  }
  0xb3   :  { %2350 = vmatprep.subr.bf16.mxu1 %v5821_v53  ;;  %v5904_v53 = vld [vmem:[#allocation2 + $0x6c8] ss:$16 sps:$4 sm:$0xff]  }
  0xb4   :  { %2062 = vmatmul.mubr.bf16.gmra.mxu0 %v5814_v51  ;;  %v6447_v51 = vld [vmem:[%s7884_s0 + $0x8] ss:$28 sps:$4 sm:$0xff]  }
  0xb5   :  { %2175 = vmatmul.mubr.bf16.gmra.mxu1 %v5815_v54  ;;  %2238 = vmatpush1.bf16.msra.mxu0 %v5816_v55  ;;  %v6448_v54 = vld [vmem:[%s7884_s0 + $0x3c] ss:$28 sps:$4 sm:$0xff]  }
  0xb6   :  { %2351 = vmatpush1.bf16.msra.mxu1 %v5819_v56  ;;  %2239 = vmatprep.subr.bf16.mxu0 %v5824_v57  ;;  %v5903_v55 = vld [vmem:[#allocation2 + $0x4ac] ss:$16 sps:$4 sm:$0xff]   ;;  %v6449_v57 = vld [vmem:[%s7884_s0 + $0x44] ss:$28 sps:$4 sm:$0xff]  }
  0xb7   :  { %2352 = vmatprep.subr.bf16.mxu1 %v5827_v58  ;;  %2071 = vmatprep.mubr.bf16.mxu0 %v5828_v59  ;;  %v5915_v56 = vld [vmem:[#allocation2 + $0x6ac] ss:$16 sps:$4 sm:$0xff]   ;;  %v5901_v58 = vld [vmem:[#allocation2 + $0x4a8] ss:$16 sps:$4 sm:$0xff]  }
  0xb8   :  { %2184 = vmatprep.mubr.bf16.mxu1 %v6549_v18  ;;  %v5909_v59 = vld [vmem:[#allocation2 + $0x48c] ss:$16 sps:$4 sm:$0xff]  }
  0xb9   :  { %2240 = vmatpush1.bf16.msra.mxu0 %v5822_v60  ;;  %v5907_v60 = vld [vmem:[#allocation2 + $0x488] ss:$16 sps:$4 sm:$0xff]  }
  0xba   :  { %2353 = vmatpush1.bf16.msra.mxu1 %v5825_v61  ;;  %2241 = vmatprep.subr.bf16.mxu0 %v5834_v62  ;;  %v5913_v61 = vld [vmem:[#allocation2 + $0x6a8] ss:$16 sps:$4 sm:$0xff]  }
  0xbb   :  { %2354 = vmatprep.subr.bf16.mxu1 %v5837_v63  ;;  %v6450_v62 = vld [vmem:[%s7884_s0 + $0x38] ss:$28 sps:$4 sm:$0xff]   ;;  %v6451_v63 = vld [vmem:[%s7884_s0 + $0x40] ss:$28 sps:$4 sm:$0xff]  }
  0xbc   :  { %2072 = vmatmul.mubr.bf16.gmra.mxu0 %v5830_v0  ;;  %v5912_v0 = vld [vmem:[#allocation2 + $0x46c] ss:$16 sps:$4 sm:$0xff]  }
  0xbd   :  { %2185 = vmatmul.mubr.bf16.gmra.mxu1 %v5831_v1  ;;  %2242 = vmatpush2.bf16.msra.mxu0 %v5832_v2  ;;  %v5924_v1 = vld [vmem:[#allocation2 + $0x68c] ss:$16 sps:$4 sm:$0xff]   ;;  %v6452_v2 = vld [vmem:[%s7884_s0 + $0x74] ss:$28 sps:$4 sm:$0xff]  }
  0xbe   :  { %2355 = vmatpush2.bf16.msra.mxu1 %v5835_v3  ;;  %2243 = vmatprep.subr.bf16.mxu0 %v5840_v4  ;;  %v5922_v3 = vld [vmem:[#allocation2 + $0x688] ss:$16 sps:$4 sm:$0xff]  }
  0xbf   :  { %2356 = vmatprep.subr.bf16.mxu1 %v5843_v5  ;;  %2081 = vmatprep.mubr.bf16.mxu0 %v5844_v6  ;;  %v6453_v4 = vld [vmem:[%s7884_s0 + $0x7c] ss:$28 sps:$4 sm:$0xff]  }
  0xc0   :  { %2194 = vmatprep.mubr.bf16.mxu1 %v6549_v18  ;;  %v5910_v5 = vld [vmem:[#allocation2 + $0x468] ss:$16 sps:$4 sm:$0xff]   ;;  %v5918_v6 = vld [vmem:[#allocation2 + $0x44c] ss:$16 sps:$4 sm:$0xff]  }
  0xc1   :  { %2244 = vmatpush2.bf16.msra.mxu0 %v5838_v7  ;;  %v5933_v7 = vld [vmem:[#allocation2 + $0x66c] ss:$16 sps:$4 sm:$0xff]  }
  0xc2   :  { %2357 = vmatpush2.bf16.msra.mxu1 %v5841_v8  ;;  %2245 = vmatprep.subr.bf16.mxu0 %v5850_v9  ;;  %v5916_v8 = vld [vmem:[#allocation2 + $0x448] ss:$16 sps:$4 sm:$0xff]   ;;  %v6454_v9 = vld [vmem:[%s7884_s0 + $0x70] ss:$28 sps:$4 sm:$0xff]  }
  0xc3   :  { %2358 = vmatprep.subr.bf16.mxu1 %v5853_v10  ;;  %v6455_v10 = vld [vmem:[%s7884_s0 + $0x78] ss:$28 sps:$4 sm:$0xff]  }
  0xc4   :  { %2082 = vmatmul.mubr.bf16.gmra.mxu0 %v5846_v11  ;;  %v5921_v11 = vld [vmem:[#allocation2 + $0x42c] ss:$16 sps:$4 sm:$0xff]  }
  0xc5   :  { %2195 = vmatmul.mubr.bf16.gmra.mxu1 %v5847_v12  ;;  %2246 = vmatpush2.bf16.msra.mxu0 %v5848_v13  ;;  %v5931_v12 = vld [vmem:[#allocation2 + $0x668] ss:$16 sps:$4 sm:$0xff]  }
  0xc6   :  { %2359 = vmatpush2.bf16.msra.mxu1 %v5851_v14  ;;  %2247 = vmatprep.subr.bf16.mxu0 %v5856_v15  ;;  %v6456_v13 = vld [vmem:[%s7884_s0 + $0xac] ss:$28 sps:$4 sm:$0xff]   ;;  %v6457_v15 = vld [vmem:[%s7884_s0 + $0xb4] ss:$28 sps:$4 sm:$0xff]  }
  0xc7   :  { %2360 = vmatprep.subr.bf16.mxu1 %v5859_v16  ;;  %2091 = vmatprep.mubr.bf16.mxu0 %v5860_v17  ;;  %v5942_v14 = vld [vmem:[#allocation2 + $0x64c] ss:$16 sps:$4 sm:$0xff]   ;;  %v5919_v16 = vld [vmem:[#allocation2 + $0x428] ss:$16 sps:$4 sm:$0xff]  }
  0xc8   :  { %2204 = vmatprep.mubr.bf16.mxu1 %v6549_v18  ;;  %v5927_v17 = vld [vmem:[#allocation2 + $0x40c] ss:$16 sps:$4 sm:$0xff]  }
  0xc9   :  { %2248 = vmatpush2.bf16.msra.mxu0 %v5854_v19  ;;  %v5940_v19 = vld [vmem:[#allocation2 + $0x648] ss:$16 sps:$4 sm:$0xff]  }
  0xca   :  { %2361 = vmatpush2.bf16.msra.mxu1 %v5857_v20  ;;  %2249 = vmatprep.subr.bf16.mxu0 %v5866_v21  ;;  %v5951_v20 = vld [vmem:[#allocation2 + $0x62c] ss:$16 sps:$4 sm:$0xff]   ;;  %v5925_v21 = vld [vmem:[#allocation2 + $0x408] ss:$16 sps:$4 sm:$0xff]  }
  0xcb   :  { %2362 = vmatprep.subr.bf16.mxu1 %v5869_v22  ;;  %v6458_v22 = vld [vmem:[%s7884_s0 + $0xa8] ss:$28 sps:$4 sm:$0xff]  }
  0xcc   :  { %2092 = vmatmul.mubr.bf16.gmra.mxu0 %v5862_v23  ;;  %v6459_v23 = vld [vmem:[%s7884_s0 + $0xb0] ss:$28 sps:$4 sm:$0xff]  }
  0xcd   :  { %2205 = vmatmul.mubr.bf16.gmra.mxu1 %v5863_v24  ;;  %2250 = vmatpush2.bf16.msra.mxu0 %v5864_v25  ;;  %v6460_v24 = vld [vmem:[%s7884_s0 + $0xe4] ss:$28 sps:$4 sm:$0xff]   ;;  %v5930_v25 = vld [vmem:[#allocation2 + $0x5ec] ss:$16 sps:$4 sm:$0xff]  }
  0xce   :  { %2363 = vmatpush2.bf16.msra.mxu1 %v5867_v26  ;;  %2251 = vmatprep.subr.bf16.mxu0 %v5872_v27  ;;  %v6461_v26 = vld [vmem:[%s7884_s0 + $0xec] ss:$28 sps:$4 sm:$0xff]  }
  0xcf   :  { %2364 = vmatprep.subr.bf16.mxu1 %v5875_v28  ;;  %2101 = vmatprep.mubr.bf16.mxu0 %v5876_v29  ;;  %v5949_v27 = vld [vmem:[#allocation2 + $0x628] ss:$16 sps:$4 sm:$0xff]   ;;  %v5936_v29 = vld [vmem:[#allocation2 + $0x5cc] ss:$16 sps:$4 sm:$0xff]  }
  0xd0   :  { %2214 = vmatprep.mubr.bf16.mxu1 %v6549_v18  ;;  %v5928_v28 = vld [vmem:[#allocation2 + $0x5e8] ss:$16 sps:$4 sm:$0xff]  }
  0xd1   :  { %2252 = vmatpush2.bf16.msra.mxu0 %v5870_v30  ;;  %v5958_v30 = vld [vmem:[#allocation2 + $0x608] ss:$16 sps:$4 sm:$0xff]  }
  0xd2   :  { %2365 = vmatpush2.bf16.msra.mxu1 %v5873_v31  ;;  %2253 = vmatprep.subr.bf16.mxu0 %v5882_v32  ;;  %v5960_v31 = vld [vmem:[#allocation2 + $0x60c] ss:$16 sps:$4 sm:$0xff]  }
  0xd3   :  { %2366 = vmatprep.subr.bf16.mxu1 %v5885_v33  ;;  %v6462_v32 = vld [vmem:[%s7884_s0 + $0xe0] ss:$28 sps:$4 sm:$0xff]   ;;  %v6463_v33 = vld [vmem:[%s7884_s0 + $0xe8] ss:$28 sps:$4 sm:$0xff]  }
  0xd4   :  { %2102 = vmatmul.mubr.bf16.gmra.mxu0 %v5878_v34  ;;  %v5934_v34 = vld [vmem:[#allocation2 + $0x5c8] ss:$16 sps:$4 sm:$0xff]  }
  0xd5   :  { %2215 = vmatmul.mubr.bf16.gmra.mxu1 %v5879_v35  ;;  %2254 = vmatpush2.bf16.msra.mxu0 %v5880_v36  ;;  %v6464_v35 = vld [vmem:[%s7884_s0 + $0x11c] ss:$28 sps:$4 sm:$0xff]   ;;  %v6465_v36 = vld [vmem:[%s7884_s0 + $0x124] ss:$28 sps:$4 sm:$0xff]  }
  0xd6   :  { %2367 = vmatpush2.bf16.msra.mxu1 %v5883_v37  ;;  %2255 = vmatprep.subr.bf16.mxu0 %v5888_v38  ;;  %v5939_v37 = vld [vmem:[#allocation2 + $0x5ac] ss:$16 sps:$4 sm:$0xff]   ;;  %v5937_v38 = vld [vmem:[#allocation2 + $0x5a8] ss:$16 sps:$4 sm:$0xff]  }
  0xd7   :  { %2368 = vmatprep.subr.bf16.mxu1 %v5891_v39  ;;  %2257 = vmatprep.mubr.bf16.mxu0 %v6444_v44  ;;  %v5945_v39 = vld [vmem:[#allocation2 + $0x58c] ss:$16 sps:$4 sm:$0xff]  }
  0xd8   :  { %2370 = vmatprep.mubr.bf16.mxu1 %v6445_v45  ;;  %v6469_v44 = vld [vmem:[%s7884_s0 + $0x15c] ss:$28 sps:$4 sm:$0xff]  }
  0xd9   :  { %2256 = vmatpush2.bf16.msra.mxu0 %v5886_v40  ;;  %v6466_v40 = vld [vmem:[%s7884_s0 + $0x118] ss:$28 sps:$4 sm:$0xff]   ;;  %v5948_v45 = vld [vmem:[#allocation2 + $0x56c] ss:$16 sps:$4 sm:$0xff]  }
  0xda   :  { %2369 = vmatpush2.bf16.msra.mxu1 %v5889_v41  ;;  %2451 = vmatprep.subr.bf16.mxu0 %v5894_v42  ;;  %v6467_v41 = vld [vmem:[%s7884_s0 + $0x120] ss:$28 sps:$4 sm:$0xff]   ;;  %v5943_v42 = vld [vmem:[#allocation2 + $0x588] ss:$16 sps:$4 sm:$0xff]  }
  0xdb   :  { %2564 = vmatprep.subr.bf16.mxu1 %v5897_v43  ;;  %v6468_v43 = vld [vmem:[%s7884_s0 + $0x154] ss:$28 sps:$4 sm:$0xff]  }
  0xdc   :  { %2258 = vmatmul.mubr.bf16.vlgmr.msra.gmra.mxu0 %v6446_v50  ;;  %v6470_v50 = vld [vmem:[%s7884_s0 + $0x150] ss:$28 sps:$4 sm:$0xff]  }
  0xdd   :  { %2371 = vmatmul.mubr.bf16.vlgmr.msra.gmra.mxu1 %v6447_v51  ;;  %2452 = vmatpush1.bf16.msra.mxu0 %v5892_v46  ;;  %v345_v46 = vlaneseq  ;;  %v6471_v51 = vld [vmem:[%s7884_s0 + $0x158] ss:$28 sps:$4 sm:$0xff]  }
  0xde   :  { %2565 = vmatpush1.bf16.msra.mxu1 %v5895_v47  ;;  %2453 = vmatprep.subr.bf16.mxu0 %v5900_v48  ;;  %v5946_v47 = vld [vmem:[#allocation2 + $0x568] ss:$16 sps:$4 sm:$0xff]   ;;  %v5954_v48 = vld [vmem:[#allocation2 + $0x54c] ss:$16 sps:$4 sm:$0xff]  }
  0xdf   :  { %2267 = vmatprep.mubr.bf16.mxu0 %v6448_v54  ;;  %2380 = vmatprep.mubr.bf16.mxu1 %v6449_v57  ;;  %v6473_v54 = vld [vmem:[%s7884_s0 + $0x194] ss:$28 sps:$4 sm:$0xff]  }
  0xe0   :  { %2566 = vmatprep.subr.bf16.mxu1 %v5906_v49  ;;  %v6850_v49 = vshrl.u32 %v345_v46, 7 }
  0xe1   :  { %2454 = vmatpush1.bf16.msra.mxu0 %v5898_v52  ;;  %v5952_v52 = vld [vmem:[#allocation2 + $0x548] ss:$16 sps:$4 sm:$0xff]  }
  0xe2   :  { %2567 = vmatpush1.bf16.msra.mxu1 %v5904_v53  ;;  %2455 = vmatprep.subr.bf16.mxu0 %v5903_v55  ;;  %7898 = vst [vmem:[#allocation8_spill] sm:$0xff] %v6850_v49  ;;  %v6472_v53 = vld [vmem:[%s7884_s0 + $0x18c] ss:$28 sps:$4 sm:$0xff]   ;;  %v7892_v57 = vsub.s32 1, %v6850_v49 }
  0xe3   :  { %2568 = vmatprep.subr.bf16.mxu1 %v5915_v56  ;;  %v5957_v55 = vld [vmem:[#allocation2 + $0x52c] ss:$16 sps:$4 sm:$0xff]   ;;  %v7893_v56 = vsub.s32 0, %v6850_v49 }
  0xe4   :  { %2268 = vmatmul.mubr.bf16.gmra.mxu0 %v6450_v62  ;;  %v6475_v62 = vld [vmem:[%s7884_s0 + $0x190] ss:$28 sps:$4 sm:$0xff]  }
  0xe5   :  { %2381 = vmatmul.mubr.bf16.gmra.mxu1 %v6451_v63  ;;  %2456 = vmatpush1.bf16.msra.mxu0 %v5901_v58  ;;  %v5955_v58 = vld [vmem:[#allocation2 + $0x528] ss:$16 sps:$4 sm:$0xff]   ;;  %v6476_v63 = vld [vmem:[%s7884_s0 + $0x14] ss:$28 sps:$4 sm:$0xff]  }
  0xe6   :  { %2277 = vmatprep.mubr.bf16.mxu0 %v6452_v2  ;;  %2457 = vmatprep.subr.bf16.mxu0 %v5909_v59  ;;  %v5963_v59 = vld [vmem:[#allocation2 + $0x50c] ss:$16 sps:$4 sm:$0xff]  }
  0xe7   :  { %2390 = vmatprep.mubr.bf16.mxu1 %v6453_v4  ;;  %2569 = vmatpush1.bf16.msra.mxu1 %v5913_v61  ;;  %v6474_v61 = vld [vmem:[%s7884_s0 + $0x188] ss:$28 sps:$4 sm:$0xff]  }
  0xe8   :  { %2570 = vmatprep.subr.bf16.mxu1 %v5924_v1  ;;  %v5966_v1 = vld [vmem:[#allocation4 + $0xe4] ss:$16 sps:$4 sm:$0xff]  }
  0xe9   :  { %2458 = vmatpush1.bf16.msra.mxu0 %v5907_v60  ;;  %v5961_v60 = vld [vmem:[#allocation2 + $0x508] ss:$16 sps:$4 sm:$0xff]   ;;  %v5969_v4 = vld [vmem:[#allocation4 + $0xc4] ss:$16 sps:$4 sm:$0xff]  }
  0xea   :  { %2459 = vmatprep.subr.bf16.mxu0 %v5912_v0  ;;  %v343_v0 = vld [vmem:[%s7886_s2] sm:$0xf] }
  0xeb   :  { %2571 = vmatpush1.bf16.msra.mxu1 %v5922_v3  ;;  %v6881_v2 = vrot.slane %v343_v0, %v7893_v56  ;;  %v5964_v3 = vld [vmem:[#allocation4 + $0xe0] ss:$16 sps:$4 sm:$0xff]  }
  0xec   :  { %2278 = vmatmul.mubr.bf16.gmra.mxu0 %v6454_v9  ;;  %2572 = vmatprep.subr.bf16.mxu1 %v5933_v7  ;;  %v6478_v9 = vld [vmem:[%s7884_s0 + $0x18] ss:$28 sps:$4 sm:$0xff]  }
  0xed   :  { %2391 = vmatmul.mubr.bf16.gmra.mxu1 %v6455_v10  ;;  %2460 = vmatpush1.bf16.msra.mxu0 %v5910_v5  ;;  %v6885_v5 = vrot.slane %v343_v0, %v7892_v57 }
  0xee   :  { %2287 = vmatprep.mubr.bf16.mxu0 %v6456_v13  ;;  %2461 = vmatprep.subr.bf16.mxu0 %v5918_v6 }
  0xef   :  { %2400 = vmatprep.mubr.bf16.mxu1 %v6457_v15  ;;  %2573 = vmatpush1.bf16.msra.mxu1 %v5931_v12  ;;  %v5967_v12 = vld [vmem:[#allocation4 + $0xc0] ss:$16 sps:$4 sm:$0xff]   ;;  %v5972_v15 = vld [vmem:[#allocation4 + $0xa4] ss:$16 sps:$4 sm:$0xff]  }
  0xf0   :  { %2574 = vmatprep.subr.bf16.mxu1 %v5942_v14 }
  0xf1   :  { %2462 = vmatpush1.bf16.msra.mxu0 %v5916_v8  ;;  %v6477_v8 = vld [vmem:[%s7884_s0 + $0x10] ss:$28 sps:$4 sm:$0xff]  }
  0xf2   :  { %2463 = vmatprep.subr.bf16.mxu0 %v5921_v11  ;;  %v6479_v11 = vld [vmem:[%s7884_s0 + $0x4c] ss:$28 sps:$4 sm:$0xff]  }
  0xf3   :  { %2575 = vmatpush1.bf16.msra.mxu1 %v5940_v19 }
  0xf4   :  { %2288 = vmatmul.mubr.bf16.gmra.mxu0 %v6458_v22  ;;  %2576 = vmatprep.subr.bf16.mxu1 %v5951_v20  ;;  %v5970_v22 = vld [vmem:[#allocation4 + $0xa0] ss:$16 sps:$4 sm:$0xff]  }
  0xf5   :  { %2401 = vmatmul.mubr.bf16.gmra.mxu1 %v6459_v23  ;;  %2464 = vmatpush1.bf16.msra.mxu0 %v5919_v16 }
  0xf6   :  { %2297 = vmatprep.mubr.bf16.mxu0 %v6460_v24  ;;  %2465 = vmatprep.subr.bf16.mxu0 %v5927_v17 }
  0xf7   :  { %2410 = vmatprep.mubr.bf16.mxu1 %v6461_v26  ;;  %2577 = vmatpush1.bf16.msra.mxu1 %v5949_v27 }
  0xf8   :  { %2578 = vmatprep.subr.bf16.mxu1 %v5960_v31  ;;  %v6482_v31 = vld [vmem:[%s7884_s0 + $0x84] ss:$28 sps:$4 sm:$0xff]  }
  0xf9   :  { %2466 = vmatpush1.bf16.msra.mxu0 %v5925_v21 }
  0xfa   :  { %2467 = vmatprep.subr.bf16.mxu0 %v5930_v25  ;;  %v5975_v25 = vld [vmem:[#allocation4 + $0x84] ss:$16 sps:$4 sm:$0xff]  }
  0xfb   :  { %2579 = vmatpush1.bf16.msra.mxu1 %v5958_v30 }
  0xfc   :  { %2298 = vmatmul.mubr.bf16.gmra.mxu0 %v6462_v32  ;;  %v5973_v32 = vld [vmem:[#allocation4 + $0x80] ss:$16 sps:$4 sm:$0xff]  }
  0xfd   :  { %2411 = vmatmul.mubr.bf16.gmra.mxu1 %v6463_v33  ;;  %2468 = vmatpush2.bf16.msra.mxu0 %v5928_v28  ;;  %v6480_v28 = vld [vmem:[%s7884_s0 + $0x48] ss:$28 sps:$4 sm:$0xff]  }
  0xfe   :  { %2307 = vmatprep.mubr.bf16.mxu0 %v6464_v35  ;;  %2469 = vmatprep.subr.bf16.mxu0 %v5936_v29  ;;  %v6481_v29 = vld [vmem:[%s7884_s0 + $0x50] ss:$28 sps:$4 sm:$0xff]   ;;  %v5978_v35 = vld [vmem:[#allocation4 + $0x64] ss:$16 sps:$4 sm:$0xff]  }
  0xff   :  { %2420 = vmatprep.mubr.bf16.mxu1 %v6465_v36 }
 0x101   :  { %2470 = vmatpush2.bf16.msra.mxu0 %v5934_v34 }
 0x102   :  { %2471 = vmatprep.subr.bf16.mxu0 %v5939_v37 }
 0x104   :  { %2308 = vmatmul.mubr.bf16.gmra.mxu0 %v6466_v40 }
 0x105   :  { %2421 = vmatmul.mubr.bf16.gmra.mxu1 %v6467_v41  ;;  %2472 = vmatpush2.bf16.msra.mxu0 %v5937_v38 }
 0x106   :  { %2317 = vmatprep.mubr.bf16.mxu0 %v6468_v43  ;;  %2473 = vmatprep.subr.bf16.mxu0 %v5945_v39  ;;  %v5976_v43 = vld [vmem:[#allocation4 + $0x60] ss:$16 sps:$4 sm:$0xff]  }
 0x107   :  { %2430 = vmatprep.mubr.bf16.mxu1 %v6469_v44  ;;  %v5981_v44 = vld [vmem:[#allocation4 + $0x44] ss:$16 sps:$4 sm:$0xff]  }
 0x109   :  { %2474 = vmatpush2.bf16.msra.mxu0 %v5943_v42 }
 0x10a   :  { %2475 = vmatprep.subr.bf16.mxu0 %v5948_v45 }
 0x10c   :  { %2318 = vmatmul.mubr.bf16.gmra.mxu0 %v6470_v50 }
 0x10d   :  { %2431 = vmatmul.mubr.bf16.gmra.mxu1 %v6471_v51  ;;  %2476 = vmatpush2.bf16.msra.mxu0 %v5946_v47  ;;  %v6483_v47 = vld [vmem:[%s7884_s0 + $0x80] ss:$28 sps:$4 sm:$0xff]  }
 0x10e   :  { %2327 = vmatprep.mubr.bf16.mxu0 %v6472_v53  ;;  %2477 = vmatprep.subr.bf16.mxu0 %v5954_v48  ;;  %v6484_v48 = vld [vmem:[%s7884_s0 + $0x88] ss:$28 sps:$4 sm:$0xff]   ;;  %v6485_v51 = vld [vmem:[%s7884_s0 + $0xbc] ss:$28 sps:$4 sm:$0xff]  }
 0x10f   :  { %2440 = vmatprep.mubr.bf16.mxu1 %v6473_v54  ;;  %v5979_v54 = vld [vmem:[#allocation4 + $0x40] ss:$16 sps:$4 sm:$0xff]  }
 0x111   :  { %2478 = vmatpush2.bf16.msra.mxu0 %v5952_v52 }
 0x112   :  { %2479 = vmatprep.subr.bf16.mxu0 %v5957_v55 }
 0x114   :  { %2328 = vmatmul.mubr.bf16.gmra.mxu0 %v6474_v61 }
 0x115   :  { %2441 = vmatmul.mubr.bf16.gmra.mxu1 %v6475_v62  ;;  %2480 = vmatpush2.bf16.msra.mxu0 %v5955_v58 }
 0x116   :  { %2483 = vmatprep.mubr.bf16.mxu0 %v6476_v63  ;;  %2481 = vmatprep.subr.bf16.mxu0 %v5963_v59  ;;  %v5984_v59 = vld [vmem:[#allocation4 + $0x24] ss:$16 sps:$4 sm:$0xff]  }
 0x117   :  { %2596 = vmatprep.mubr.bf16.mxu1 %v6549_v18 }
 0x119   :  { %2482 = vmatpush2.bf16.msra.mxu0 %v5961_v60 }
 0x11a   :  { %3755 = vmatprep.subr.bf16.mxu0 %v5966_v1  ;;  %v5982_v1 = vld [vmem:[#allocation4 + $0x20] ss:$16 sps:$4 sm:$0xff]  }
 0x11c   :  { %v1807_v6 = vpop.f32.mrf.mxu0  ;;  %2484 = vmatmul.mubr.bf16.vlgmr.msra.gmra.mxu0 %v6477_v8  ;;  %v6487_v8 = vld [vmem:[%s7884_s0 + $0xc0] ss:$28 sps:$4 sm:$0xff]  }
 0x11d   :  { %v1920_v7 = vpop.f32.mrf.mxu1  ;;  %2597 = vmatmul.mubr.bf16.vlgmr.msra.gmra.mxu1 %v6478_v9  ;;  %v1808_v10 = vadd.f32 %v1807_v6, %v6881_v2  ;;  %2493 = vmatprep.mubr.bf16.mxu0 %v6479_v11 }
 0x11e   :  { %2606 = vmatprep.mubr.bf16.mxu1 %v6549_v18  ;;  %v1809_v13 = vpop.f32.mrf.mxu0  ;;  %3756 = vmatpush1.bf16.msra.mxu0 %v5964_v3  ;;  %v5987_v3 = vld [vmem:[#allocation4 + $0x4] ss:$16 sps:$4 sm:$0xff]  }
 0x11f   :  { %v1922_v14 = vpop.f32.mrf.mxu1  ;;  %v6898_v16 = vadd.f32 %v1920_v7, %v1808_v10  ;;  %v1810_v17 = vadd.f32 %v1809_v13, %v6885_v5  ;;  %3757 = vmatprep.subr.bf16.mxu0 %v5969_v4  ;;  %v6486_v7 = vld [vmem:[%s7884_s0 + $0xb8] ss:$28 sps:$4 sm:$0xff]   ;;  %v5985_v13 = vld [vmem:[#allocation4] ss:$16 sps:$4 sm:$0xff]  }
 0x120   :  { %v6901_v19 = vpop.f32.mrf.mxu0  ;;  %v6488_v10 = vld [vmem:[%s7884_s0 + $0xf4] ss:$28 sps:$4 sm:$0xff]  }
 0x121   :  { %v6903_v20 = vpop.f32.mrf.mxu1  ;;  %v6905_v21 = vadd.f32 %v1922_v14, %v1810_v17  ;;  %v5990_v17 = vld [vmem:[#allocation4 + $0x1e4] ss:$16 sps:$4 sm:$0xff]  }
 0x122   :  { %v6907_v23 = vpop.f32.mrf.mxu0  ;;  %3758 = vmatpush1.bf16.msra.mxu0 %v5967_v12 }
 0x123   :  { %v6909_v24 = vpop.f32.mrf.mxu1  ;;  %3759 = vmatprep.subr.bf16.mxu0 %v5972_v15 }
 0x124   :  { %v1817_v26 = vpop.f32.mrf.mxu0  ;;  %2494 = vmatmul.mubr.bf16.gmra.mxu0 %v6480_v28 }
 0x125   :  { %v1930_v27 = vpop.f32.mrf.mxu1  ;;  %2607 = vmatmul.mubr.bf16.gmra.mxu1 %v6481_v29  ;;  %v1818_v30 = vadd.f32 %v1817_v26, %v6881_v2  ;;  %2503 = vmatprep.mubr.bf16.mxu0 %v6482_v31  ;;  %v5988_v29 = vld [vmem:[#allocation4 + $0x1e0] ss:$16 sps:$4 sm:$0xff]  }
 0x126   :  { %2616 = vmatprep.mubr.bf16.mxu1 %v6549_v18  ;;  %v1819_v33 = vpop.f32.mrf.mxu0  ;;  %3760 = vmatpush1.bf16.msra.mxu0 %v5970_v22 }
 0x127   :  { %v1932_v34 = vpop.f32.mrf.mxu1  ;;  %v6922_v36 = vadd.f32 %v1930_v27, %v1818_v30  ;;  %v1820_v37 = vadd.f32 %v1819_v33, %v6885_v5  ;;  %3761 = vmatprep.subr.bf16.mxu0 %v5975_v25  ;;  %v5993_v30 = vld [vmem:[#allocation4 + $0x1c4] ss:$16 sps:$4 sm:$0xff]   ;;  %v6489_v33 = vld [vmem:[%s7884_s0 + $0xf0] ss:$28 sps:$4 sm:$0xff]  }
 0x128   :  { %v6925_v38 = vpop.f32.mrf.mxu0 }
 0x129   :  { %v6927_v39 = vpop.f32.mrf.mxu1  ;;  %v6929_v40 = vadd.f32 %v1932_v34, %v1820_v37  ;;  %v6490_v34 = vld [vmem:[%s7884_s0 + $0xf8] ss:$28 sps:$4 sm:$0xff]   ;;  %v6491_v37 = vld [vmem:[%s7884_s0 + $0x12c] ss:$28 sps:$4 sm:$0xff]  }
 0x12a   :  { %v6931_v41 = vpop.f32.mrf.mxu0  ;;  %3762 = vmatpush1.bf16.msra.mxu0 %v5973_v32 }
 0x12b   :  { %v6933_v42 = vpop.f32.mrf.mxu1  ;;  %3763 = vmatprep.subr.bf16.mxu0 %v5978_v35 }
 0x12c   :  { %v1827_v45 = vpop.f32.mrf.mxu0  ;;  %2504 = vmatmul.mubr.bf16.gmra.mxu0 %v6483_v47  ;;  %v6060_v47 = vld [vmem:[#allocation4 + $0x2e0] ss:$16 sps:$4 sm:$0xff]  }
 0x12d   :  { %v1940_v46 = vpop.f32.mrf.mxu1  ;;  %2617 = vmatmul.mubr.bf16.gmra.mxu1 %v6484_v48  ;;  %v1828_v50 = vadd.f32 %v1827_v45, %v6881_v2  ;;  %2513 = vmatprep.mubr.bf16.mxu0 %v6485_v51  ;;  %v5996_v51 = vld [vmem:[#allocation4 + $0x1a4] ss:$16 sps:$4 sm:$0xff]  }
 0x12e   :  { %2626 = vmatprep.mubr.bf16.mxu1 %v6549_v18  ;;  %v1829_v52 = vpop.f32.mrf.mxu0  ;;  %3764 = vmatpush1.bf16.msra.mxu0 %v5976_v43  ;;  %v6062_v43 = vld [vmem:[#allocation4 + $0x2e4] ss:$16 sps:$4 sm:$0xff]  }
 0x12f   :  { %v1942_v53 = vpop.f32.mrf.mxu1  ;;  %v6946_v55 = vadd.f32 %v1940_v46, %v1828_v50  ;;  %v1830_v58 = vadd.f32 %v1829_v52, %v6885_v5  ;;  %3765 = vmatprep.subr.bf16.mxu0 %v5981_v44  ;;  %v5991_v46 = vld [vmem:[#allocation4 + $0x1c0] ss:$16 sps:$4 sm:$0xff]   ;;  %3868 = vmatprep.subr.bf16.mxu1 %v6062_v43  ;;  %v6071_v43 = vld [vmem:[#allocation4 + $0x284] ss:$16 sps:$4 sm:$0xff]  }
 0x130   :  { %v6949_v60 = vpop.f32.mrf.mxu0  ;;  %3869 = vmatpush1.bf16.msra.mxu1 %v6060_v47  ;;  %v6069_v47 = vld [vmem:[#allocation4 + $0x280] ss:$16 sps:$4 sm:$0xff]  }
 0x131   :  { %v6951_v61 = vpop.f32.mrf.mxu1  ;;  %v6953_v62 = vadd.f32 %v1942_v53, %v1830_v58  ;;  %v6065_v58 = vld [vmem:[#allocation4 + $0x2c4] ss:$16 sps:$4 sm:$0xff]  }
 0x132   :  { %v6955_v63 = vpop.f32.mrf.mxu0  ;;  %3766 = vmatpush1.bf16.msra.mxu0 %v5979_v54  ;;  %3870 = vmatprep.subr.bf16.mxu1 %v6065_v58 }
 0x133   :  { %v6957_v0 = vpop.f32.mrf.mxu1  ;;  %3767 = vmatprep.subr.bf16.mxu0 %v5984_v59 }
 0x134   :  { %v1837_v4 = vpop.f32.mrf.mxu0  ;;  %2514 = vmatmul.mubr.bf16.gmra.mxu0 %v6486_v7 }
 0x135   :  { %v1950_v6 = vpop.f32.mrf.mxu1  ;;  %2627 = vmatmul.mubr.bf16.gmra.mxu1 %v6487_v8  ;;  %v1838_v9 = vadd.f32 %v1837_v4, %v6881_v2  ;;  %2523 = vmatprep.mubr.bf16.mxu0 %v6488_v10  ;;  %v6063_v4 = vld [vmem:[#allocation4 + $0x2c0] ss:$16 sps:$4 sm:$0xff]  }
 0x136   :  { %2636 = vmatprep.mubr.bf16.mxu1 %v6549_v18  ;;  %v1839_v11 = vpop.f32.mrf.mxu0  ;;  %3768 = vmatpush1.bf16.msra.mxu0 %v5982_v1  ;;  %v6493_v10 = vld [vmem:[%s7884_s0 + $0x130] ss:$28 sps:$4 sm:$0xff]  }
 0x137   :  { %v1952_v12 = vpop.f32.mrf.mxu1  ;;  %v6970_v14 = vadd.f32 %v1950_v6, %v1838_v9  ;;  %v1840_v15 = vadd.f32 %v1839_v11, %v6885_v5  ;;  %3769 = vmatprep.subr.bf16.mxu0 %v5987_v3  ;;  %v5994_v3 = vld [vmem:[#allocation4 + $0x1a0] ss:$16 sps:$4 sm:$0xff]   ;;  %v5999_v6 = vld [vmem:[#allocation4 + $0x184] ss:$16 sps:$4 sm:$0xff]   ;;  %3871 = vmatpush1.bf16.msra.mxu1 %v6063_v4 }
 0x138   :  { %v6973_v22 = vpop.f32.mrf.mxu0  ;;  %v6492_v9 = vld [vmem:[%s7884_s0 + $0x128] ss:$28 sps:$4 sm:$0xff]  }
 0x139   :  { %v6975_v25 = vpop.f32.mrf.mxu1  ;;  %v6977_v26 = vadd.f32 %v1952_v12, %v1840_v15  ;;  %v6494_v12 = vld [vmem:[%s7884_s0 + $0x164] ss:$28 sps:$4 sm:$0xff]  }
 0x13a   :  { %v6979_v27 = vpop.f32.mrf.mxu0  ;;  %3770 = vmatpush1.bf16.msra.mxu0 %v5985_v13  ;;  %v6068_v13 = vld [vmem:[#allocation4 + $0x2a4] ss:$16 sps:$4 sm:$0xff]  }
 0x13b   :  { %v6981_v28 = vpop.f32.mrf.mxu1  ;;  %3771 = vmatprep.subr.bf16.mxu0 %v5990_v17  ;;  %3872 = vmatprep.subr.bf16.mxu1 %v6068_v13  ;;  %v6496_v4 = vld [vmem:[%s7884_s0 + $0x168] ss:$28 sps:$4 sm:$0xff]  }
 0x13c   :  { %v1847_v31 = vpop.f32.mrf.mxu0  ;;  %2524 = vmatmul.mubr.bf16.gmra.mxu0 %v6489_v33  ;;  %v6002_v33 = vld [vmem:[#allocation4 + $0x164] ss:$16 sps:$4 sm:$0xff]  }
 0x13d   :  { %v1960_v32 = vpop.f32.mrf.mxu1  ;;  %2637 = vmatmul.mubr.bf16.gmra.mxu1 %v6490_v34  ;;  %v1848_v35 = vadd.f32 %v1847_v31, %v6881_v2  ;;  %2533 = vmatprep.mubr.bf16.mxu0 %v6491_v37 }
 0x13e   :  { %2646 = vmatprep.mubr.bf16.mxu1 %v6549_v18  ;;  %v1849_v44 = vpop.f32.mrf.mxu0  ;;  %3772 = vmatpush2.bf16.msra.mxu0 %v5988_v29  ;;  %v5997_v29 = vld [vmem:[#allocation4 + $0x180] ss:$16 sps:$4 sm:$0xff]  }
 0x13f   :  { %v1962_v45 = vpop.f32.mrf.mxu1  ;;  %v6994_v48 = vadd.f32 %v1960_v32, %v1848_v35  ;;  %v1850_v50 = vadd.f32 %v1849_v44, %v6885_v5  ;;  %3773 = vmatprep.subr.bf16.mxu0 %v5993_v30  ;;  %v6066_v30 = vld [vmem:[#allocation4 + $0x2a0] ss:$16 sps:$4 sm:$0xff]  }
 0x140   :  { %v6997_v52 = vpop.f32.mrf.mxu0  ;;  %3873 = vmatpush1.bf16.msra.mxu1 %v6066_v30 }
 0x141   :  { %v6999_v53 = vpop.f32.mrf.mxu1  ;;  %v7001_v54 = vadd.f32 %v1962_v45, %v1850_v50  ;;  %v6005_v50 = vld [vmem:[#allocation4 + $0x144] ss:$16 sps:$4 sm:$0xff]   ;;  %3874 = vmatprep.subr.bf16.mxu1 %v6071_v43 }
 0x142   :  { %v7003_v59 = vpop.f32.mrf.mxu0  ;;  %3774 = vmatpush2.bf16.msra.mxu0 %v5991_v46  ;;  %v6000_v46 = vld [vmem:[#allocation4 + $0x160] ss:$16 sps:$4 sm:$0xff]  }
 0x143   :  { %v7005_v1 = vpop.f32.mrf.mxu1  ;;  %3775 = vmatprep.subr.bf16.mxu0 %v5996_v51 }
 0x144   :  { %v1857_v7 = vpop.f32.mrf.mxu0  ;;  %2534 = vmatmul.mubr.bf16.gmra.mxu0 %v6492_v9  ;;  %3875 = vmatpush1.bf16.msra.mxu1 %v6069_v47  ;;  %v6075_v47 = vld [vmem:[#allocation4 + $0x240] ss:$16 sps:$4 sm:$0xff]  }
 0x145   :  { %v1970_v8 = vpop.f32.mrf.mxu1  ;;  %2647 = vmatmul.mubr.bf16.gmra.mxu1 %v6493_v10  ;;  %v1858_v11 = vadd.f32 %v1857_v7, %v6881_v2  ;;  %2543 = vmatprep.mubr.bf16.mxu0 %v6494_v12  ;;  %v6497_v7 = vld [vmem:[%s7884_s0 + $0x19c] ss:$28 sps:$4 sm:$0xff]   ;;  %v6072_v12 = vld [vmem:[#allocation4 + $0x260] ss:$16 sps:$4 sm:$0xff]  }
 0x146   :  { %2656 = vmatprep.mubr.bf16.mxu1 %v6549_v18  ;;  %v1859_v15 = vpop.f32.mrf.mxu0  ;;  %3776 = vmatpush2.bf16.msra.mxu0 %v5994_v3  ;;  %v6495_v3 = vld [vmem:[%s7884_s0 + $0x160] ss:$28 sps:$4 sm:$0xff]  }
 0x147   :  { %v1972_v17 = vpop.f32.mrf.mxu1  ;;  %v7018_v31 = vadd.f32 %v1970_v8, %v1858_v11  ;;  %v1860_v32 = vadd.f32 %v1859_v15, %v6885_v5  ;;  %3777 = vmatprep.subr.bf16.mxu0 %v5999_v6  ;;  %v6074_v8 = vld [vmem:[#allocation4 + $0x264] ss:$16 sps:$4 sm:$0xff]   ;;  %v6003_v11 = vld [vmem:[#allocation4 + $0x140] ss:$16 sps:$4 sm:$0xff]  }
 0x148   :  { %v7021_v34 = vpop.f32.mrf.mxu0  ;;  %3876 = vmatprep.subr.bf16.mxu1 %v6074_v8 }
 0x149   :  { %v7023_v35 = vpop.f32.mrf.mxu1  ;;  %v7025_v37 = vadd.f32 %v1972_v17, %v1860_v32  ;;  %v6008_v17 = vld [vmem:[#allocation4 + $0x124] ss:$16 sps:$4 sm:$0xff]   ;;  %3877 = vmatpush1.bf16.msra.mxu1 %v6072_v12 }
 0x14a   :  { %v7027_v44 = vpop.f32.mrf.mxu0  ;;  %3778 = vmatpush2.bf16.msra.mxu0 %v5997_v29 }
 0x14b   :  { %v7029_v45 = vpop.f32.mrf.mxu1  ;;  %3779 = vmatprep.subr.bf16.mxu0 %v6002_v33 }
 0x14c   :  { %v1867_v51 = vpop.f32.mrf.mxu0  ;;  %2544 = vmatmul.mubr.bf16.gmra.mxu0 %v6495_v3  ;;  %v6498_v3 = vld [vmem:[%s7884_s0 + $0x198] ss:$28 sps:$4 sm:$0xff]  }
 0x14d   :  { %v1980_v58 = vpop.f32.mrf.mxu1  ;;  %2657 = vmatmul.mubr.bf16.gmra.mxu1 %v6496_v4  ;;  %v1868_v6 = vadd.f32 %v1867_v51, %v6881_v2  ;;  %2553 = vmatprep.mubr.bf16.mxu0 %v6497_v7  ;;  %v6011_v51 = vld [vmem:[#allocation4 + $0x104] ss:$16 sps:$4 sm:$0xff]   ;;  %v6499_v4 = vld [vmem:[%s7884_s0 + $0x1a0] ss:$28 sps:$4 sm:$0xff]  }
 0x14e   :  { %2666 = vmatprep.mubr.bf16.mxu1 %v6549_v18  ;;  %v1869_v9 = vpop.f32.mrf.mxu0  ;;  %3780 = vmatpush2.bf16.msra.mxu0 %v6000_v46  ;;  %v6077_v18 = vld [vmem:[#allocation4 + $0x244] ss:$16 sps:$4 sm:$0xff]   ;;  %v6006_v46 = vld [vmem:[#allocation4 + $0x120] ss:$16 sps:$4 sm:$0xff]  }
 0x14f   :  { %v1982_v10 = vpop.f32.mrf.mxu1  ;;  %v7042_v13 = vadd.f32 %v1980_v58, %v1868_v6  ;;  %v1870_v15 = vadd.f32 %v1869_v9, %v6885_v5  ;;  %3781 = vmatprep.subr.bf16.mxu0 %v6005_v50  ;;  %3878 = vmatprep.subr.bf16.mxu1 %v6077_v18  ;;  %v6080_v7 = vld [vmem:[#allocation4 + $0x224] ss:$16 sps:$4 sm:$0xff]  }
 0x150   :  { %v7045_v29 = vpop.f32.mrf.mxu0  ;;  %3879 = vmatpush1.bf16.msra.mxu1 %v6075_v47  ;;  %v6081_v47 = vld [vmem:[#allocation4 + $0x200] ss:$16 sps:$4 sm:$0xff]  }
 0x151   :  { %v7047_v30 = vpop.f32.mrf.mxu1  ;;  %v7049_v32 = vadd.f32 %v1982_v10, %v1870_v15  ;;  %v6009_v10 = vld [vmem:[#allocation4 + $0x100] ss:$16 sps:$4 sm:$0xff]   ;;  %3880 = vmatprep.subr.bf16.mxu1 %v6080_v7  ;;  %v1814_v7 = vadd.f32 %v6907_v23, %v6885_v5 }
 0x152   :  { %v7051_v33 = vpop.f32.mrf.mxu0  ;;  %3782 = vmatpush2.bf16.msra.mxu0 %v6003_v11  ;;  %v6078_v11 = vld [vmem:[#allocation4 + $0x220] ss:$16 sps:$4 sm:$0xff]  }
 0x153   :  { %v7053_v43 = vpop.f32.mrf.mxu1  ;;  %3783 = vmatprep.subr.bf16.mxu0 %v6008_v17  ;;  %v6014_v17 = vld [vmem:[#allocation4 + $0xec] ss:$16 sps:$4 sm:$0xff]  }
 0x154   :  { %7899 = vst [vmem:[#allocation9_spill] sm:$0xff] %v7053_v43  ;;  %v1877_v50 = vpop.f32.mrf.mxu0  ;;  %2554 = vmatmul.mubr.bf16.gmra.mxu0 %v6498_v3  ;;  %3881 = vmatpush1.bf16.msra.mxu1 %v6078_v11  ;;  %v6087_v43 = vld [vmem:[#allocation4 + $0x3c0] ss:$16 sps:$4 sm:$0xff]  }
 0x155   :  { %v1990_v58 = vpop.f32.mrf.mxu1  ;;  %2667 = vmatmul.mubr.bf16.gmra.mxu1 %v6499_v4  ;;  %v1878_v6 = vadd.f32 %v1877_v50, %v6881_v2  ;;  %v6083_v50 = vld [vmem:[#allocation4 + $0x204] ss:$16 sps:$4 sm:$0xff]  }
 0x156   :  { %v1879_v8 = vpop.f32.mrf.mxu0  ;;  %3784 = vmatpush2.bf16.msra.mxu0 %v6006_v46  ;;  %3882 = vmatprep.subr.bf16.mxu1 %v6083_v50  ;;  %v1927_v50 = vadd.f32 %v6909_v24, %v1814_v7 }
 0x157   :  { %v1992_v9 = vpop.f32.mrf.mxu1  ;;  %v7062_v12 = vadd.f32 %v1990_v58, %v1878_v6  ;;  %v1880_v15 = vadd.f32 %v1879_v8, %v6885_v5  ;;  %3785 = vmatprep.subr.bf16.mxu0 %v6011_v51  ;;  %v1812_v58 = vadd.f32 %v6901_v19, %v6881_v2 }
 0x158   :  { %v7065_v18 = vpop.f32.mrf.mxu0  ;;  %3883 = vmatpush1.bf16.msra.mxu1 %v6081_v47 }
 0x159   :  { %7900 = vst [vmem:[#allocation10_spill] sm:$0xff] %v7062_v12  ;;  %v7067_v3 = vpop.f32.mrf.mxu1  ;;  %v7069_v4 = vadd.f32 %v1992_v9, %v1880_v15  ;;  %v6086_v9 = vld [vmem:[#allocation4 + $0x3e4] ss:$16 sps:$4 sm:$0xff]  }
 0x15a   :  { %7901 = vst [vmem:[#allocation11_spill] sm:$0xff] %v7067_v3  ;;  %v7071_v57 = vpop.f32.mrf.mxu0  ;;  %3786 = vmatpush2.bf16.msra.mxu0 %v6009_v10  ;;  %v1925_v10 = vadd.f32 %v6903_v20, %v1812_v58  ;;  %3884 = vmatprep.subr.bf16.mxu1 %v6086_v9  ;;  %v6089_v3 = vld [vmem:[#allocation4 + $0x3c4] ss:$16 sps:$4 sm:$0xff]  }
 0x15b   :  { %7902 = vst [vmem:[#allocation12_spill] sm:$0xff] %v7069_v4  ;;  %7903 = vst [vmem:[#allocation13_spill] sm:$0xff] %v7071_v57  ;;  %v7073_v46 = vpop.f32.mrf.mxu1  ;;  %3981 = vmatprep.subr.bf16.mxu0 %v6014_v17  ;;  %v6092_v9 = vld [vmem:[#allocation4 + $0x3a4] ss:$16 sps:$4 sm:$0xff]  }
 0x15c   :  { %7904 = vst [vmem:[#allocation14_spill] sm:$0xff] %v7073_v46  ;;  %v2033_v51 = vpop.f32.mrf.mxu0  ;;  %v6084_v46 = vld [vmem:[#allocation4 + $0x3e0] ss:$16 sps:$4 sm:$0xff]  }
 0x15d   :  { %v2146_v6 = vpop.f32.mrf.mxu1  ;;  %v2034_v8 = vadd.f32 %v2033_v51, %v6898_v16  ;;  %v1822_v16 = vadd.f32 %v6925_v38, %v6881_v2  ;;  %3885 = vmatpush2.bf16.msra.mxu1 %v6084_v46 }
 0x15e   :  { %v2035_v15 = vpop.f32.mrf.mxu0  ;;  %3886 = vmatprep.subr.bf16.mxu1 %v6089_v3 }
 0x15f   :  { %v2148_v56 = vpop.f32.mrf.mxu1  ;;  %v2147_v11 = vadd.f32 %v2146_v6, %v2034_v8  ;;  %v2036_v4 = vadd.f32 %v2035_v15, %v6905_v21  ;;  %v1824_v21 = vadd.f32 %v6931_v41, %v6885_v5  ;;  %v1935_v38 = vadd.f32 %v6927_v39, %v1822_v16  ;;  %v6095_v39 = vld [vmem:[#allocation4 + $0x384] ss:$16 sps:$4 sm:$0xff]  }
 0x160   :  { %v2037_v19 = vpop.f32.mrf.mxu0 }
 0x161   :  { %v2150_v17 = vpop.f32.mrf.mxu1  ;;  %v2677_v12 = vmul.f32 0.5, %v2147_v11  ;;  %v2149_v57 = vadd.f32 %v2148_v56, %v2036_v4  ;;  %v2038_v23 = vadd.f32 %v2037_v19, %v1925_v10  ;;  %3887 = vmatpush2.bf16.msra.mxu1 %v6087_v43  ;;  %v6093_v43 = vld [vmem:[#allocation4 + $0x380] ss:$16 sps:$4 sm:$0xff]  }
 0x162   :  { %v2039_v51 = vpop.f32.mrf.mxu0  ;;  %3888 = vmatprep.subr.bf16.mxu1 %v6092_v9  ;;  %v6096_v9 = vld [vmem:[#allocation4 + $0x360] ss:$16 sps:$4 sm:$0xff]  }
 0x163   :  { %v2152_v47 = vpop.f32.mrf.mxu1  ;;  %v2678_v20 = vmul.f32 0.5, %v2149_v57  ;;  %v2151_v58 = vadd.f32 %v2150_v17, %v2038_v23  ;;  %v2040_v6 = vadd.f32 %v2039_v51, %v1927_v50  ;;  %6188 = vtanh.f32 %v2677_v12  ;;  %v6090_v57 = vld [vmem:[#allocation4 + $0x3a0] ss:$16 sps:$4 sm:$0xff]  }
 0x164   :  { %v2043_v8 = vpop.f32.mrf.mxu0  ;;  %v1937_v12 = vadd.f32 %v6933_v42, %v1824_v21 }
 0x165   :  { %v2156_v24 = vpop.f32.mrf.mxu1  ;;  %v2681_v56 = vmul.f32 0.5, %v2151_v58  ;;  %v2153_v4 = vadd.f32 %v2152_v47, %v2040_v6  ;;  %v2044_v7 = vadd.f32 %v2043_v8, %v6922_v36  ;;  %6190 = vtanh.f32 %v2678_v20  ;;  %3889 = vmatpush2.bf16.msra.mxu1 %v6090_v57 }
 0x166   :  { %v2045_v46 = vpop.f32.mrf.mxu0  ;;  %3890 = vmatprep.subr.bf16.mxu1 %v6095_v39 }
 0x167   :  { %v2158_v15 = vpop.f32.mrf.mxu1  ;;  %6192 = vtanh.f32 %v2681_v56  ;;  %v2682_v3 = vmul.f32 0.5, %v2153_v4  ;;  %v2157_v10 = vadd.f32 %v2156_v24, %v2044_v7  ;;  %v2046_v41 = vadd.f32 %v2045_v46, %v6929_v40  ;;  %v6098_v24 = vld [vmem:[#allocation4 + $0x364] ss:$16 sps:$4 sm:$0xff]  }
 0x168   :  { %v2047_v11 = vpop.f32.mrf.mxu0  ;;  %v1832_v40 = vadd.f32 %v6949_v60, %v6881_v2  ;;  %v1834_v56 = vadd.f32 %v6955_v63, %v6885_v5 }
 0x169   :  { %v2160_v19 = vpop.f32.mrf.mxu1  ;;  %6194 = vtanh.f32 %v2682_v3  ;;  %v2685_v36 = vmul.f32 0.5, %v2157_v10  ;;  %v2159_v17 = vadd.f32 %v2158_v15, %v2046_v41  ;;  %v2048_v50 = vadd.f32 %v2047_v11, %v1935_v38  ;;  %3891 = vmatpush2.bf16.msra.mxu1 %v6093_v43  ;;  %v6101_v10 = vld [vmem:[#allocation4 + $0x344] ss:$16 sps:$4 sm:$0xff]  }
 0x16a   :  { %v2049_v23 = vpop.f32.mrf.mxu0  ;;  %3892 = vmatprep.subr.bf16.mxu1 %v6098_v24  ;;  %v1945_v15 = vadd.f32 %v6951_v61, %v1832_v40  ;;  %v1947_v63 = vadd.f32 %v6957_v0, %v1834_v56  ;;  %v1842_v61 = vadd.f32 %v6973_v22, %v6881_v2 }
 0x16b   :  { %v2162_v16 = vpop.f32.mrf.mxu1  ;;  %v2686_v51 = vmul.f32 0.5, %v2159_v17  ;;  %v2161_v47 = vadd.f32 %v2160_v19, %v2048_v50  ;;  %v2050_v20 = vadd.f32 %v2049_v23, %v1937_v12  ;;  %6196 = vtanh.f32 %v2685_v36  ;;  %v6099_v36 = vld [vmem:[#allocation4 + $0x340] ss:$16 sps:$4 sm:$0xff]  }
 0x16c   :  { %v2053_v58 = vpop.f32.mrf.mxu0  ;;  %v1844_v23 = vadd.f32 %v6979_v27, %v6885_v5  ;;  %v6102_v27 = vld [vmem:[#allocation4 + $0x320] ss:$16 sps:$4 sm:$0xff]  }
 0x16d   :  { %v2166_v42 = vpop.f32.mrf.mxu1  ;;  %v2689_v6 = vmul.f32 0.5, %v2161_v47  ;;  %v2163_v21 = vadd.f32 %v2162_v16, %v2050_v20  ;;  %v2054_v8 = vadd.f32 %v2053_v58, %v6946_v55  ;;  %6198 = vtanh.f32 %v2686_v51  ;;  %3893 = vmatpush2.bf16.msra.mxu1 %v6096_v9 }
 0x16e   :  { %v2055_v4 = vpop.f32.mrf.mxu0  ;;  %3894 = vmatprep.subr.bf16.mxu1 %v6101_v10  ;;  %v1852_v47 = vadd.f32 %v6997_v52, %v6881_v2  ;;  %v1955_v52 = vadd.f32 %v6975_v25, %v1842_v61 }
 0x16f   :  { %v2168_v7 = vpop.f32.mrf.mxu1  ;;  %6200 = vtanh.f32 %v2689_v6  ;;  %v2690_v38 = vmul.f32 0.5, %v2163_v21  ;;  %v2167_v46 = vadd.f32 %v2166_v42, %v2054_v8  ;;  %v2056_v60 = vadd.f32 %v2055_v4, %v6953_v62  ;;  %v6104_v42 = vld [vmem:[#allocation4 + $0x324] ss:$16 sps:$4 sm:$0xff]  }
 0x170   :  { %v2057_v57 = vpop.f32.mrf.mxu0  ;;  %v6189_v41 = vpop.eup %6188  ;;  %v1965_v25 = vadd.f32 %v6999_v53, %v1852_v47  ;;  %v6017_v47 = vld [vmem:[#allocation4 + $0xcc] ss:$16 sps:$4 sm:$0xff]  }
 0x171   :  { %v2170_v3 = vpop.f32.mrf.mxu1  ;;  %6202 = vtanh.f32 %v2690_v38  ;;  %v2169_v55 = vadd.f32 %v2168_v7, %v2056_v60  ;;  %v2058_v12 = vadd.f32 %v2057_v57, %v1945_v15  ;;  %v2693_v50 = vmul.f32 0.5, %v2167_v46  ;;  %3895 = vmatpush2.bf16.msra.mxu1 %v6099_v36 }
 0x172   :  { %v2059_v11 = vpop.f32.mrf.mxu0  ;;  %v6191_v17 = vpop.eup %6190  ;;  %v2805_v20 = vmul.f32 0.5, %v6189_v41  ;;  %3896 = vmatprep.subr.bf16.mxu1 %v6104_v42  ;;  %v1957_v60 = vadd.f32 %v6981_v28, %v1844_v23 }
 0x173   :  { %v2172_v19 = vpop.f32.mrf.mxu1  ;;  %v2694_v39 = vmul.f32 0.5, %v2169_v55  ;;  %v2171_v16 = vadd.f32 %v2170_v3, %v2058_v12  ;;  %v2060_v43 = vadd.f32 %v2059_v11, %v1947_v63  ;;  %v2806_v21 = vmul.f32 0.5, %v6191_v17  ;;  %v6107_v3 = vld [vmem:[#allocation4 + $0x304] ss:$16 sps:$4 sm:$0xff]  }
 0x174   :  { %v6193_v62 = vpop.eup %6192  ;;  %v2063_v51 = vpop.f32.mrf.mxu0  ;;  %v2869_v36 = vadd.f32 0.5, %v2805_v20  ;;  %v6110_v20 = vld [vmem:[#allocation4 + $0x2ec] ss:$16 sps:$4 sm:$0xff]  }
 0x175   :  { %v2176_v0 = vpop.f32.mrf.mxu1  ;;  %v2809_v40 = vmul.f32 0.5, %v6193_v62  ;;  %v2064_v58 = vadd.f32 %v2063_v51, %v6970_v14  ;;  %6204 = vtanh.f32 %v2694_v39  ;;  %v2697_v8 = vmul.f32 0.5, %v2171_v16  ;;  %3897 = vmatpush2.bf16.msra.mxu1 %v6102_v27  ;;  %v6012_v51 = vld [vmem:[#allocation4 + $0xe8] ss:$16 sps:$4 sm:$0xff]  }
 0x176   :  { %v6195_v6 = vpop.eup %6194  ;;  %v2173_v22 = vadd.f32 %v2172_v19, %v2060_v43  ;;  %v2065_v24 = vpop.f32.mrf.mxu0  ;;  %6206 = vtanh.f32 %v2693_v50  ;;  %v2870_v10 = vadd.f32 0.5, %v2806_v21  ;;  %3898 = vmatprep.subr.bf16.mxu1 %v6107_v3  ;;  %v1854_v39 = vadd.f32 %v7003_v59, %v6885_v5 }
 0x177   :  { %v2178_v56 = vpop.f32.mrf.mxu1  ;;  %v2810_v4 = vmul.f32 0.5, %v6195_v6  ;;  %v2177_v7 = vadd.f32 %v2176_v0, %v2064_v58  ;;  %v2066_v9 = vadd.f32 %v2065_v24, %v6977_v26  ;;  %6208 = vtanh.f32 %v2697_v8  ;;  %v6105_v26 = vld [vmem:[#allocation4 + $0x300] ss:$16 sps:$4 sm:$0xff]  }
 0x178   :  { %v2698_v14 = vmul.f32 0.5, %v2173_v22  ;;  %v2067_v38 = vpop.f32.mrf.mxu0  ;;  %v2873_v15 = vadd.f32 0.5, %v2809_v40  ;;  %v6197_v55 = vpop.eup %6196 }
 0x179   :  { %v2180_v46 = vpop.f32.mrf.mxu1  ;;  %v2179_v57 = vadd.f32 %v2178_v56, %v2066_v9  ;;  %v2068_v41 = vadd.f32 %v2067_v38, %v1955_v52  ;;  %v2874_v11 = vadd.f32 0.5, %v2810_v4  ;;  %v2701_v17 = vmul.f32 0.5, %v2177_v7  ;;  %3899 = vmatpush2.bf16.msra.mxu1 %v6105_v26  ;;  %v6015_v52 = vld [vmem:[#allocation4 + $0xc8] ss:$16 sps:$4 sm:$0xff]  }
 0x17a   :  { %6210 = vtanh.f32 %v2698_v14  ;;  %v2069_v63 = vpop.f32.mrf.mxu0  ;;  %v6199_v19 = vpop.eup %6198  ;;  %v7114_v0 = vpack.c.bf16 %v2873_v15, %v2869_v36  ;;  %v2813_v40 = vmul.f32 0.5, %v6197_v55  ;;  %4094 = vmatprep.subr.bf16.mxu1 %v6110_v20  ;;  %v1967_v15 = vadd.f32 %v7005_v1, %v1854_v39  ;;  %v6018_v1 = vld [vmem:[#allocation4 + $0xa8] ss:$16 sps:$4 sm:$0xff]  }
 0x17b   :  { %v2182_v12 = vpop.f32.mrf.mxu1  ;;  %v2702_v50 = vmul.f32 0.5, %v2179_v57  ;;  %v2181_v62 = vadd.f32 %v2180_v46, %v2068_v41  ;;  %v2070_v61 = vadd.f32 %v2069_v63, %v1957_v60  ;;  %v7112_v43 = vpack.c.bf16 %v2874_v11, %v2870_v10  ;;  %v6020_v60 = vld [vmem:[#allocation4 + $0xac] ss:$16 sps:$4 sm:$0xff]  }
 0x17c   :  { %v6201_v28 = vpop.eup %6200  ;;  %v2073_v23 = vpop.f32.mrf.mxu0  ;;  %v2814_v6 = vmul.f32 0.5, %v6199_v19 }
 0x17d   :  { %v2186_v16 = vpop.f32.mrf.mxu1  ;;  %v2817_v58 = vmul.f32 0.5, %v6201_v28  ;;  %v2074_v53 = vadd.f32 %v2073_v23, %v6994_v48  ;;  %6212 = vtanh.f32 %v2702_v50  ;;  %v2705_v21 = vmul.f32 0.5, %v2181_v62  ;;  %3787 = vmatprep.mubr.bf16.mxu0 %v7112_v43 }
 0x17e   :  { %v6203_v42 = vpop.eup %6202  ;;  %v2183_v59 = vadd.f32 %v2182_v12, %v2070_v61  ;;  %v2075_v8 = vpop.f32.mrf.mxu0  ;;  %6214 = vtanh.f32 %v2701_v17  ;;  %3788 = vmatmul.mubr.bf16.vlgmr.msra.gmra.mxu0 %v7114_v0  ;;  %v1862_v48 = vadd.f32 %v7021_v34, %v6881_v2  ;;  %v2877_v34 = vadd.f32 0.5, %v2813_v40  ;;  %v6023_v61 = vld [vmem:[#allocation4 + $0x8c] ss:$16 sps:$4 sm:$0xff]  }
 0x17f   :  { %v2188_v22 = vpop.f32.mrf.mxu1  ;;  %v2818_v24 = vmul.f32 0.5, %v6203_v42  ;;  %v2187_v56 = vadd.f32 %v2186_v16, %v2074_v53  ;;  %v2076_v27 = vadd.f32 %v2075_v8, %v7001_v54  ;;  %6216 = vtanh.f32 %v2705_v21  ;;  %3982 = vmatpush1.bf16.msra.mxu0 %v6012_v51  ;;  %v6021_v8 = vld [vmem:[#allocation4 + $0x88] ss:$16 sps:$4 sm:$0xff]  }
 0x180   :  { %v2706_v4 = vmul.f32 0.5, %v2183_v59  ;;  %v2077_v7 = vpop.f32.mrf.mxu0  ;;  %v2881_v14 = vadd.f32 0.5, %v2817_v58  ;;  %3983 = vmatprep.subr.bf16.mxu0 %v6017_v47  ;;  %v2878_v54 = vadd.f32 0.5, %v2814_v6  ;;  %v1975_v11 = vadd.f32 %v7023_v35, %v1862_v48 }
 0x181   :  { %v2190_v9 = vpop.f32.mrf.mxu1  ;;  %v2189_v38 = vadd.f32 %v2188_v22, %v2076_v27  ;;  %v2078_v46 = vadd.f32 %v2077_v7, %v1965_v25  ;;  %v2882_v55 = vadd.f32 0.5, %v2818_v24  ;;  %v2709_v41 = vmul.f32 0.5, %v2187_v56  ;;  %v6026_v27 = vld [vmem:[#allocation4 + $0x6c] ss:$16 sps:$4 sm:$0xff]  }
 0x182   :  { %6218 = vtanh.f32 %v2706_v4  ;;  %v2079_v57 = vpop.f32.mrf.mxu0  ;;  %v6205_v10 = vpop.eup %6204  ;;  %v1864_v28 = vadd.f32 %v7027_v44, %v6885_v5  ;;  %v7129_v62 = vpack.c.bf16 %v2881_v14, %v2877_v34  ;;  %v1874_v34 = vadd.f32 %v7051_v33, %v6885_v5 }
 0x183   :  { %v2192_v3 = vpop.f32.mrf.mxu1  ;;  %v2710_v63 = vmul.f32 0.5, %v2189_v38  ;;  %v6207_v12 = vpop.eup %6206  ;;  %v2191_v26 = vadd.f32 %v2190_v9, %v2078_v46  ;;  %v2080_v19 = vadd.f32 %v2079_v57, %v1967_v15  ;;  %3984 = vmatpush1.bf16.msra.mxu0 %v6015_v52  ;;  %v7124_v17 = vpack.c.bf16 %v2882_v55, %v2878_v54 }
 0x184   :  { %v2083_v25 = vpop.f32.mrf.mxu0  ;;  %v6209_v50 = vpop.eup %6208  ;;  %3985 = vmatprep.subr.bf16.mxu0 %v6020_v60  ;;  %v2822_v35 = vmul.f32 0.5, %v6205_v10  ;;  %v2821_v47 = vmul.f32 0.5, %v6207_v12  ;;  %v1977_v48 = vadd.f32 %v7029_v45, %v1864_v28  ;;  %v6024_v45 = vld [vmem:[#allocation4 + $0x68] ss:$16 sps:$4 sm:$0xff]   ;;  %v6029_v12 = vld [vmem:[#allocation4 + $0x4c] ss:$16 sps:$4 sm:$0xff]  }
 0x185   :  { %v2196_v36 = vpop.f32.mrf.mxu1  ;;  %6220 = vtanh.f32 %v2710_v63  ;;  %v2084_v39 = vadd.f32 %v2083_v25, %v7018_v31  ;;  %v2825_v23 = vmul.f32 0.5, %v6209_v50  ;;  %v2713_v16 = vmul.f32 0.5, %v2191_v26  ;;  %3797 = vmatprep.mubr.bf16.mxu0 %v7124_v17 }
 0x186   :  { %v2193_v51 = vadd.f32 %v2192_v3, %v2080_v19  ;;  %v2085_v40 = vpop.f32.mrf.mxu0  ;;  %6222 = vtanh.f32 %v2709_v41  ;;  %3798 = vmatmul.mubr.bf16.gmra.mxu0 %v7129_v62  ;;  %v1872_v31 = vadd.f32 %v7045_v29, %v6881_v2  ;;  %v2885_v52 = vadd.f32 0.5, %v2821_v47 }
 0x187   :  { %v2198_v58 = vpop.f32.mrf.mxu1  ;;  %v6211_v53 = vpop.eup %6210  ;;  %v2197_v20 = vadd.f32 %v2196_v36, %v2084_v39  ;;  %v2086_v44 = vadd.f32 %v2085_v40, %v7025_v37  ;;  %6224 = vtanh.f32 %v2713_v16  ;;  %3986 = vmatpush1.bf16.msra.mxu0 %v6018_v1  ;;  %v2889_v22 = vadd.f32 0.5, %v2825_v23  ;;  %v6027_v16 = vld [vmem:[#allocation4 + $0x48] ss:$16 sps:$4 sm:$0xff]  }
 0x188   :  { %v2826_v42 = vmul.f32 0.5, %v6211_v53  ;;  %v2714_v6 = vmul.f32 0.5, %v2193_v51  ;;  %v2087_v21 = vpop.f32.mrf.mxu0  ;;  %3987 = vmatprep.subr.bf16.mxu0 %v6023_v61  ;;  %v2886_v37 = vadd.f32 0.5, %v2822_v35  ;;  %v1985_v60 = vadd.f32 %v7047_v30, %v1872_v31  ;;  %v6032_v53 = vld [vmem:[#allocation4 + $0x2c] ss:$16 sps:$4 sm:$0xff]  }
 0x189   :  { %v2200_v59 = vpop.f32.mrf.mxu1  ;;  %v2199_v24 = vadd.f32 %v2198_v58, %v2086_v44  ;;  %v2088_v56 = vadd.f32 %v2087_v21, %v1975_v11  ;;  %v2717_v14 = vmul.f32 0.5, %v2197_v20  ;;  %v7143_v63 = vpack.c.bf16 %v2889_v22, %v2885_v52  ;;  %v7905_v20 = vld [vmem:[#allocation9_spill] sm:$0xff] }
 0x18a   :  { %6226 = vtanh.f32 %v2714_v6  ;;  %v2089_v4 = vpop.f32.mrf.mxu0  ;;  %v2890_v9 = vadd.f32 0.5, %v2826_v42  ;;  %v6213_v29 = vpop.eup %6212  ;;  %v7895_v47 = vsub.s32 2, %v6850_v49  ;;  %v1987_v44 = vadd.f32 %v7905_v20, %v1874_v34  ;;  %v7907_v52 = vld [vmem:[#allocation13_spill] sm:$0xff] }
 0x18b   :  { %v2202_v7 = vpop.f32.mrf.mxu1  ;;  %v2718_v38 = vmul.f32 0.5, %v2199_v24  ;;  %v6215_v46 = vpop.eup %6214  ;;  %v2201_v15 = vadd.f32 %v2200_v59, %v2088_v56  ;;  %v2090_v54 = vadd.f32 %v2089_v4, %v1977_v48  ;;  %3988 = vmatpush1.bf16.msra.mxu0 %v6021_v8  ;;  %v2830_v30 = vmul.f32 0.5, %v6213_v29  ;;  %v7906_v24 = vld [vmem:[#allocation11_spill] sm:$0xff] }
 0x18c   :  { %v2093_v57 = vpop.f32.mrf.mxu0  ;;  %v7138_v55 = vpack.c.bf16 %v2890_v9, %v2886_v37  ;;  %v6217_v10 = vpop.eup %6216  ;;  %3989 = vmatprep.subr.bf16.mxu0 %v6026_v27  ;;  %v2829_v50 = vmul.f32 0.5, %v6215_v46  ;;  %v7894_v8 = vsub.s32 3, %v6850_v49  ;;  %v6030_v9 = vld [vmem:[#allocation4 + $0x28] ss:$16 sps:$4 sm:$0xff]   ;;  %v7908_v46 = vld [vmem:[#allocation10_spill] sm:$0xff] }
 0x18d   :  { %v2206_v3 = vpop.f32.mrf.mxu1  ;;  %6228 = vtanh.f32 %v2718_v38  ;;  %v2094_v41 = vadd.f32 %v2093_v57, %v7042_v13  ;;  %v2833_v11 = vmul.f32 0.5, %v6217_v10  ;;  %v2721_v26 = vmul.f32 0.5, %v2201_v15 }
 0x18e   :  { %v2203_v19 = vadd.f32 %v2202_v7, %v2090_v54  ;;  %3807 = vmatprep.mubr.bf16.mxu0 %v7138_v55  ;;  %v2095_v25 = vpop.f32.mrf.mxu0  ;;  %6230 = vtanh.f32 %v2717_v14  ;;  %v1882_v13 = vadd.f32 %v7065_v18, %v6881_v2  ;;  %v2894_v31 = vadd.f32 0.5, %v2830_v30  ;;  %v6035_v54 = vld [vmem:[#allocation4 + $0xc] ss:$16 sps:$4 sm:$0xff]  }
 0x18f   :  { %v2208_v36 = vpop.f32.mrf.mxu1  ;;  %v6219_v1 = vpop.eup %6218  ;;  %v2207_v28 = vadd.f32 %v2206_v3, %v2094_v41  ;;  %v2096_v33 = vadd.f32 %v2095_v25, %v7049_v32  ;;  %3808 = vmatmul.mubr.bf16.gmra.mxu0 %v7143_v63  ;;  %6232 = vtanh.f32 %v2721_v26  ;;  %v2897_v51 = vadd.f32 0.5, %v2833_v11 }
 0x190   :  { %v2834_v39 = vmul.f32 0.5, %v6219_v1  ;;  %v2722_v61 = vmul.f32 0.5, %v2203_v19  ;;  %3990 = vmatpush1.bf16.msra.mxu0 %v6024_v45  ;;  %v2097_v35 = vpop.f32.mrf.mxu0  ;;  %v2893_v6 = vadd.f32 0.5, %v2829_v50  ;;  %v1995_v56 = vadd.f32 %v7906_v24, %v1882_v13  ;;  %v6033_v1 = vld [vmem:[#allocation4 + $0x8] ss:$16 sps:$4 sm:$0xff]  }
 0x191   :  { %v2210_v23 = vpop.f32.mrf.mxu1  ;;  %v2209_v40 = vadd.f32 %v2208_v36, %v2096_v33  ;;  %v2098_v58 = vadd.f32 %v2097_v35, %v1985_v60  ;;  %3991 = vmatprep.subr.bf16.mxu0 %v6029_v12  ;;  %v2725_v21 = vmul.f32 0.5, %v2207_v28  ;;  %v1884_v14 = vadd.f32 %v7907_v52, %v6885_v5  ;;  %v7909_v5 = vld [vmem:[#allocation12_spill] sm:$0xff] }
 0x192   :  { %v6221_v32 = vpop.eup %6220  ;;  %6234 = vtanh.f32 %v2722_v61  ;;  %v2099_v2 = vpop.f32.mrf.mxu0  ;;  %v2898_v42 = vadd.f32 0.5, %v2834_v39  ;;  %v7159_v15 = vpack.c.bf16 %v2897_v51, %v2893_v6  ;;  %v6500_v13 = vld [vmem:[%s7886_s2] sm:$0xf]  ;;  %v6038_v61 = vld [vmem:[#allocation4 + $0x1ec] ss:$16 sps:$4 sm:$0xff]  }
 0x193   :  { %v2212_v18 = vpop.f32.mrf.mxu1  ;;  %v2726_v59 = vmul.f32 0.5, %v2209_v40  ;;  %v6223_v22 = vpop.eup %6222  ;;  %v2211_v27 = vadd.f32 %v2210_v23, %v2098_v58  ;;  %v2100_v48 = vadd.f32 %v2099_v2, %v1987_v44  ;;  %v2838_v38 = vmul.f32 0.5, %v6221_v32  ;;  %v7910_v23 = vld [vmem:[#allocation14_spill] sm:$0xff] }
 0x194   :  { %3992 = vmatpush1.bf16.msra.mxu0 %v6027_v16  ;;  %v2103_v37 = vpop.f32.mrf.mxu0  ;;  %v7154_v7 = vpack.c.bf16 %v2898_v42, %v2894_v31  ;;  %v6225_v29 = vpop.eup %6224  ;;  %v2837_v12 = vmul.f32 0.5, %v6223_v22  ;;  %v7169_v39 = vrot.slane %v6500_v13, %v7895_v47  ;;  %v1997_v16 = vadd.f32 %v7910_v23, %v1884_v14  ;;  %v6036_v22 = vld [vmem:[#allocation4 + $0x1e8] ss:$16 sps:$4 sm:$0xff]  }
 0x195   :  { %v2216_v4 = vpop.f32.mrf.mxu1  ;;  %v2104_v60 = vadd.f32 %v2103_v37, %v7908_v46  ;;  %3993 = vmatprep.subr.bf16.mxu0 %v6032_v53  ;;  %v2841_v57 = vmul.f32 0.5, %v6225_v29  ;;  %6236 = vtanh.f32 %v2726_v59  ;;  %v2729_v3 = vmul.f32 0.5, %v2211_v27  ;;  %v6041_v37 = vld [vmem:[#allocation4 + $0x1cc] ss:$16 sps:$4 sm:$0xff]  }
 0x196   :  { %v2213_v45 = vadd.f32 %v2212_v18, %v2100_v48  ;;  %3817 = vmatprep.mubr.bf16.mxu0 %v7154_v7  ;;  %v2105_v10 = vpop.f32.mrf.mxu0  ;;  %6238 = vtanh.f32 %v2725_v21  ;;  %v2902_v51 = vadd.f32 0.5, %v2838_v38  ;;  %v2901_v32 = vadd.f32 0.5, %v2837_v12 }
 0x197   :  { %v2218_v34 = vpop.f32.mrf.mxu1  ;;  %v6227_v41 = vpop.eup %6226  ;;  %v2217_v30 = vadd.f32 %v2216_v4, %v2104_v60  ;;  %v2106_v11 = vadd.f32 %v2105_v10, %v7909_v5  ;;  %3818 = vmatmul.mubr.bf16.gmra.mxu0 %v7159_v15  ;;  %6240 = vtanh.f32 %v2729_v3  ;;  %v2905_v50 = vadd.f32 0.5, %v2841_v57 }
 0x198   :  { %v2842_v26 = vmul.f32 0.5, %v6227_v41  ;;  %v2730_v19 = vmul.f32 0.5, %v2213_v45  ;;  %3994 = vmatpush1.bf16.msra.mxu0 %v6030_v9  ;;  %v2107_v25 = vpop.f32.mrf.mxu0  ;;  %v7174_v31 = vrot.slane %v6500_v13, %v7894_v8  ;;  %v6042_v13 = vld [vmem:[#allocation4 + $0x1a8] ss:$16 sps:$4 sm:$0xff]  }
 0x199   :  { %v2220_v36 = vpop.f32.mrf.mxu1  ;;  %v2219_v28 = vadd.f32 %v2218_v34, %v2106_v11  ;;  %v2108_v33 = vadd.f32 %v2107_v25, %v1995_v56  ;;  %3995 = vmatprep.subr.bf16.mxu0 %v6035_v54  ;;  %v2733_v20 = vmul.f32 0.5, %v2217_v30  ;;  %v7179_v48 = vpack.c.bf16 %v2905_v50, %v2901_v32  ;;  %v6039_v34 = vld [vmem:[#allocation4 + $0x1c8] ss:$16 sps:$4 sm:$0xff]   ;;  %v6044_v30 = vld [vmem:[#allocation4 + $0x1ac] ss:$16 sps:$4 sm:$0xff]  }
 0x19a   :  { %v6229_v35 = vpop.eup %6228  ;;  %6242 = vtanh.f32 %v2730_v19  ;;  %v2109_v40 = vpop.f32.mrf.mxu0  ;;  %v2906_v53 = vadd.f32 0.5, %v2842_v26 }
 0x19b   :  { %v2222_v58 = vpop.f32.mrf.mxu1  ;;  %v2734_v44 = vmul.f32 0.5, %v2219_v28  ;;  %v6231_v2 = vpop.eup %6230  ;;  %v2221_v18 = vadd.f32 %v2220_v36, %v2108_v33  ;;  %v2110_v42 = vadd.f32 %v2109_v40, %v1997_v16  ;;  %v2846_v56 = vmul.f32 0.5, %v6229_v35  ;;  %v6047_v16 = vld [vmem:[#allocation4 + $0x18c] ss:$16 sps:$4 sm:$0xff]  }
 0x19c   :  { %3996 = vmatpush1.bf16.msra.mxu0 %v6033_v1  ;;  %v2259_v6 = vpop.f32.mrf.mxu0  ;;  %v7176_v59 = vpack.c.bf16 %v2906_v53, %v2902_v51  ;;  %v6233_v24 = vpop.eup %6232  ;;  %v2845_v46 = vmul.f32 0.5, %v6231_v2 }
 0x19d   :  { %v2372_v21 = vpop.f32.mrf.mxu1  ;;  %v2260_v27 = vadd.f32 %v2259_v6, %v7169_v39  ;;  %3997 = vmatprep.subr.bf16.mxu0 %v6038_v61  ;;  %v2849_v4 = vmul.f32 0.5, %v6233_v24  ;;  %6244 = vtanh.f32 %v2734_v44  ;;  %v2737_v9 = vmul.f32 0.5, %v2221_v18 }
 0x19e   :  { %v2223_v29 = vadd.f32 %v2222_v58, %v2110_v42  ;;  %3827 = vmatprep.mubr.bf16.mxu0 %v7176_v59  ;;  %v2261_v52 = vpop.f32.mrf.mxu0  ;;  %6246 = vtanh.f32 %v2733_v20  ;;  %v2910_v5 = vadd.f32 0.5, %v2846_v56  ;;  %v2909_v36 = vadd.f32 0.5, %v2845_v46  ;;  %v6050_v56 = vld [vmem:[#allocation4 + $0x16c] ss:$16 sps:$4 sm:$0xff]  }
 0x19f   :  { %v2374_v14 = vpop.f32.mrf.mxu1  ;;  %v6235_v38 = vpop.eup %6234  ;;  %v7182_v60 = vadd.f32 %v2372_v21, %v2260_v27  ;;  %v2262_v54 = vadd.f32 %v2261_v52, %v7174_v31  ;;  %3828 = vmatmul.mubr.bf16.gmra.mxu0 %v7179_v48  ;;  %6248 = vtanh.f32 %v2737_v9  ;;  %v2913_v41 = vadd.f32 0.5, %v2849_v4  ;;  %v6045_v21 = vld [vmem:[#allocation4 + $0x188] ss:$16 sps:$4 sm:$0xff]  }
 0x1a0   :  { %v2850_v57 = vmul.f32 0.5, %v6235_v38  ;;  %v2738_v3 = vmul.f32 0.5, %v2223_v29  ;;  %3998 = vmatpush2.bf16.msra.mxu0 %v6036_v22  ;;  %v7186_v45 = vpop.f32.mrf.mxu0 }
 0x1a1   :  { %v7188_v10 = vpop.f32.mrf.mxu1  ;;  %v7190_v12 = vadd.f32 %v2374_v14, %v2262_v54  ;;  %3999 = vmatprep.subr.bf16.mxu0 %v6041_v37  ;;  %v7199_v23 = vpack.c.bf16 %v2913_v41, %v2909_v36 }
 0x1a2   :  { %6250 = vtanh.f32 %v2738_v3  ;;  %v7192_v11 = vpop.f32.mrf.mxu0  ;;  %v2914_v19 = vadd.f32 0.5, %v2850_v57  ;;  %v6237_v25 = vpop.eup %6236  ;;  %v6048_v57 = vld [vmem:[#allocation4 + $0x168] ss:$16 sps:$4 sm:$0xff]  }
 0x1a3   :  { %v7194_v26 = vpop.f32.mrf.mxu1  ;;  %v6239_v1 = vpop.eup %6238  ;;  %v2854_v51 = vmul.f32 0.5, %v6237_v25 }
 0x1a4   :  { %4000 = vmatpush2.bf16.msra.mxu0 %v6039_v34  ;;  %v2269_v50 = vpop.f32.mrf.mxu0  ;;  %v7196_v33 = vpack.c.bf16 %v2914_v19, %v2910_v5  ;;  %v6241_v61 = vpop.eup %6240  ;;  %v2853_v20 = vmul.f32 0.5, %v6239_v1 }
 0x1a5   :  { %v2382_v28 = vpop.f32.mrf.mxu1  ;;  %v2270_v35 = vadd.f32 %v2269_v50, %v7169_v39  ;;  %4001 = vmatprep.subr.bf16.mxu0 %v6044_v30  ;;  %v2857_v40 = vmul.f32 0.5, %v6241_v61  ;;  %v2918_v27 = vadd.f32 0.5, %v2854_v51  ;;  %v6053_v30 = vld [vmem:[#allocation4 + $0x14c] ss:$16 sps:$4 sm:$0xff]   ;;  %v6051_v51 = vld [vmem:[#allocation4 + $0x148] ss:$16 sps:$4 sm:$0xff]  }
 0x1a6   :  { %3837 = vmatprep.mubr.bf16.mxu0 %v7196_v33  ;;  %v2271_v58 = vpop.f32.mrf.mxu0  ;;  %v2917_v52 = vadd.f32 0.5, %v2853_v20 }
 0x1a7   :  { %v2384_v53 = vpop.f32.mrf.mxu1  ;;  %v6243_v32 = vpop.eup %6242  ;;  %v7202_v44 = vadd.f32 %v2382_v28, %v2270_v35  ;;  %v2272_v2 = vadd.f32 %v2271_v58, %v7174_v31  ;;  %3838 = vmatmul.mubr.bf16.gmra.mxu0 %v7199_v23  ;;  %v2921_v22 = vadd.f32 0.5, %v2857_v40 }
 0x1a8   :  { %v2858_v18 = vmul.f32 0.5, %v6243_v32  ;;  %4002 = vmatpush2.bf16.msra.mxu0 %v6042_v13  ;;  %v7206_v42 = vpop.f32.mrf.mxu0 }
 0x1a9   :  { %v7208_v6 = vpop.f32.mrf.mxu1  ;;  %v7210_v24 = vadd.f32 %v2384_v53, %v2272_v2  ;;  %4003 = vmatprep.subr.bf16.mxu0 %v6047_v16  ;;  %v7219_v41 = vpack.c.bf16 %v2921_v22, %v2917_v52  ;;  %v6056_v53 = vld [vmem:[#allocation4 + $0x12c] ss:$16 sps:$4 sm:$0xff]  }
 0x1aa   :  { %v7212_v37 = vpop.f32.mrf.mxu0  ;;  %v2922_v9 = vadd.f32 0.5, %v2858_v18  ;;  %v6245_v29 = vpop.eup %6244 }
 0x1ab   :  { %v7214_v4 = vpop.f32.mrf.mxu1  ;;  %v6247_v14 = vpop.eup %6246  ;;  %v2862_v5 = vmul.f32 0.5, %v6245_v29 }
 0x1ac   :  { %4004 = vmatpush2.bf16.msra.mxu0 %v6045_v21  ;;  %v2279_v38 = vpop.f32.mrf.mxu0  ;;  %v7216_v54 = vpack.c.bf16 %v2922_v9, %v2918_v27  ;;  %v6249_v3 = vpop.eup %6248  ;;  %v2861_v50 = vmul.f32 0.5, %v6247_v14  ;;  %v6054_v9 = vld [vmem:[#allocation4 + $0x128] ss:$16 sps:$4 sm:$0xff]   ;;  %v6059_v14 = vld [vmem:[#allocation4 + $0x10c] ss:$16 sps:$4 sm:$0xff]  }
 0x1ad   :  { %v2392_v46 = vpop.f32.mrf.mxu1  ;;  %v2280_v34 = vadd.f32 %v2279_v38, %v7169_v39  ;;  %4005 = vmatprep.subr.bf16.mxu0 %v6050_v56  ;;  %v2865_v19 = vmul.f32 0.5, %v6249_v3  ;;  %v2926_v32 = vadd.f32 0.5, %v2862_v5  ;;  %v6057_v5 = vld [vmem:[#allocation4 + $0x108] ss:$16 sps:$4 sm:$0xff]  }
 0x1ae   :  { %3847 = vmatprep.mubr.bf16.mxu0 %v7216_v54  ;;  %v2281_v25 = vpop.f32.mrf.mxu0  ;;  %v2925_v21 = vadd.f32 0.5, %v2861_v50 }
 0x1af   :  { %v2394_v36 = vpop.f32.mrf.mxu1  ;;  %v6251_v1 = vpop.eup %6250  ;;  %v7222_v28 = vadd.f32 %v2392_v46, %v2280_v34  ;;  %v2282_v13 = vadd.f32 %v2281_v25, %v7174_v31  ;;  %3848 = vmatmul.mubr.bf16.gmra.mxu0 %v7219_v41  ;;  %v2929_v40 = vadd.f32 0.5, %v2865_v19 }
 0x1b0   :  { %v2866_v61 = vmul.f32 0.5, %v6251_v1  ;;  %4006 = vmatpush2.bf16.msra.mxu0 %v6048_v57  ;;  %v7226_v35 = vpop.f32.mrf.mxu0 }
 0x1b1   :  { %v7228_v16 = vpop.f32.mrf.mxu1  ;;  %v7230_v58 = vadd.f32 %v2394_v36, %v2282_v13  ;;  %4007 = vmatprep.subr.bf16.mxu0 %v6053_v30  ;;  %v7239_v52 = vpack.c.bf16 %v2929_v40, %v2925_v21 }
 0x1b2   :  { %v7232_v20 = vpop.f32.mrf.mxu0  ;;  %v2930_v18 = vadd.f32 0.5, %v2866_v61 }
 0x1b3   :  { %v7234_v2 = vpop.f32.mrf.mxu1 }
 0x1b4   :  { %4008 = vmatpush2.bf16.msra.mxu0 %v6051_v51  ;;  %v2289_v22 = vpop.f32.mrf.mxu0  ;;  %v7236_v27 = vpack.c.bf16 %v2930_v18, %v2926_v32 }
 0x1b5   :  { %v2402_v56 = vpop.f32.mrf.mxu1  ;;  %v2290_v29 = vadd.f32 %v2289_v22, %v7169_v39  ;;  %4009 = vmatprep.subr.bf16.mxu0 %v6056_v53 }
 0x1b6   :  { %3857 = vmatprep.mubr.bf16.mxu0 %v7236_v27  ;;  %v2291_v38 = vpop.f32.mrf.mxu0 }
 0x1b7   :  { %v2404_v46 = vpop.f32.mrf.mxu1  ;;  %v7242_v57 = vadd.f32 %v2402_v56, %v2290_v29  ;;  %v2292_v3 = vadd.f32 %v2291_v38, %v7174_v31  ;;  %3858 = vmatmul.mubr.bf16.gmra.mxu0 %v7239_v52 }
 0x1b8   :  { %4010 = vmatpush2.bf16.msra.mxu0 %v6054_v9  ;;  %4013 = vmatprep.mubr.bf16.mxu0 %v7112_v43  ;;  %v7247_v34 = vpop.f32.mrf.mxu0 }
 0x1b9   :  { %v7249_v30 = vpop.f32.mrf.mxu1  ;;  %v7251_v19 = vadd.f32 %v2404_v46, %v2292_v3  ;;  %4011 = vmatprep.subr.bf16.mxu0 %v6059_v14 }
 0x1ba   :  { %v7253_v25 = vpop.f32.mrf.mxu0 }
 0x1bb   :  { %v7255_v36 = vpop.f32.mrf.mxu1 }
 0x1bc   :  { %4012 = vmatpush2.bf16.msra.mxu0 %v6057_v5  ;;  %v2299_v1 = vpop.f32.mrf.mxu0 }
 0x1bd   :  { %v2412_v50 = vpop.f32.mrf.mxu1  ;;  %v2300_v13 = vadd.f32 %v2299_v1, %v7169_v39 }
 0x1be   :  { %v2301_v61 = vpop.f32.mrf.mxu0 }
 0x1bf   :  { %v2414_v51 = vpop.f32.mrf.mxu1  ;;  %v7258_v43 = vadd.f32 %v2412_v50, %v2300_v13  ;;  %v2302_v40 = vadd.f32 %v2301_v61, %v7174_v31  ;;  %4014 = vmatmul.mubr.bf16.vlgmr.msra.gmra.mxu0 %v7114_v0 }
 0x1c0   :  { %4023 = vmatprep.mubr.bf16.mxu0 %v7124_v17  ;;  %v7263_v53 = vpop.f32.mrf.mxu0 }
 0x1c1   :  { %v7265_v32 = vpop.f32.mrf.mxu1  ;;  %v7267_v18 = vadd.f32 %v2414_v51, %v2302_v40 }
 0x1c2   :  { %v7269_v21 = vpop.f32.mrf.mxu0 }
 0x1c3   :  { %v7271_v22 = vpop.f32.mrf.mxu1 }
 0x1c4   :  { %v2309_v56 = vpop.f32.mrf.mxu0 }
 0x1c5   :  { %v2422_v9 = vpop.f32.mrf.mxu1  ;;  %v2310_v29 = vadd.f32 %v2309_v56, %v7169_v39 }
 0x1c6   :  { %v2311_v14 = vpop.f32.mrf.mxu0 }
 0x1c7   :  { %v2424_v38 = vpop.f32.mrf.mxu1  ;;  %v7274_v46 = vadd.f32 %v2422_v9, %v2310_v29  ;;  %v2312_v0 = vadd.f32 %v2311_v14, %v7174_v31  ;;  %4024 = vmatmul.mubr.bf16.gmra.mxu0 %v7129_v62 }
 0x1c8   :  { %4033 = vmatprep.mubr.bf16.mxu0 %v7138_v55  ;;  %v7279_v17 = vpop.f32.mrf.mxu0 }
 0x1c9   :  { %v7281_v3 = vpop.f32.mrf.mxu1  ;;  %v7283_v5 = vadd.f32 %v2424_v38, %v2312_v0 }
 0x1ca   :  { %v7285_v1 = vpop.f32.mrf.mxu0 }
 0x1cb   :  { %v7287_v50 = vpop.f32.mrf.mxu1 }
 0x1cc   :  { %v2319_v13 = vpop.f32.mrf.mxu0 }
 0x1cd   :  { %v2432_v61 = vpop.f32.mrf.mxu1  ;;  %v2320_v51 = vadd.f32 %v2319_v13, %v7169_v39 }
 0x1ce   :  { %v2321_v40 = vpop.f32.mrf.mxu0 }
 0x1cf   :  { %v2434_v56 = vpop.f32.mrf.mxu1  ;;  %v7290_v9 = vadd.f32 %v2432_v61, %v2320_v51  ;;  %v2322_v62 = vadd.f32 %v2321_v40, %v7174_v31  ;;  %4034 = vmatmul.mubr.bf16.gmra.mxu0 %v7143_v63 }
 0x1d0   :  { %4043 = vmatprep.mubr.bf16.mxu0 %v7154_v7  ;;  %v7295_v55 = vpop.f32.mrf.mxu0 }
 0x1d1   :  { %v7297_v29 = vpop.f32.mrf.mxu1  ;;  %v7299_v14 = vadd.f32 %v2434_v56, %v2322_v62 }
 0x1d2   :  { %v7301_v38 = vpop.f32.mrf.mxu0 }
 0x1d3   :  { %7911 = vst [vmem:[#allocation9_spill] sm:$0xff] %v7299_v14  ;;  %v7303_v0 = vpop.f32.mrf.mxu1 }
 0x1d4   :  { %7912 = vst [vmem:[#allocation11_spill] sm:$0xff] %v7303_v0  ;;  %v2329_v13 = vpop.f32.mrf.mxu0 }
 0x1d5   :  { %v2442_v8 = vpop.f32.mrf.mxu1  ;;  %v2330_v61 = vadd.f32 %v2329_v13, %v7169_v39 }
 0x1d6   :  { %v2331_v51 = vpop.f32.mrf.mxu0 }
 0x1d7   :  { %v2444_v40 = vpop.f32.mrf.mxu1  ;;  %v7306_v47 = vadd.f32 %v2442_v8, %v2330_v61  ;;  %v2332_v63 = vadd.f32 %v2331_v51, %v7174_v31  ;;  %4044 = vmatmul.mubr.bf16.gmra.mxu0 %v7159_v15  ;;  %v2264_v8 = vadd.f32 %v7186_v45, %v7169_v39  ;;  %v2266_v15 = vadd.f32 %v7192_v11, %v7174_v31 }
 0x1d8   :  { %4053 = vmatprep.mubr.bf16.mxu0 %v7176_v59  ;;  %v7311_v7 = vpop.f32.mrf.mxu0 }
 0x1d9   :  { %7913 = vst [vmem:[#allocation13_spill] sm:$0xff] %v7306_v47  ;;  %7914 = vst [vmem:[#allocation10_spill] sm:$0xff] %v7311_v7  ;;  %v7313_v56 = vpop.f32.mrf.mxu1  ;;  %v7315_v62 = vadd.f32 %v2444_v40, %v2332_v63 }
 0x1da   :  { %7915 = vst [vmem:[#allocation12_spill] sm:$0xff] %v7313_v56  ;;  %v7317_v49 = vpop.f32.mrf.mxu0  ;;  %v2377_v56 = vadd.f32 %v7188_v10, %v2264_v8 }
 0x1db   :  { %7916 = vst [vmem:[#allocation14_spill] sm:$0xff] %v7315_v62  ;;  %7917 = vst [vmem:[#allocation15_spill] sm:$0xff] %v7317_v49  ;;  %v7319_v0 = vpop.f32.mrf.mxu1  ;;  %v2379_v62 = vadd.f32 %v7194_v26, %v2266_v15 }
 0x1dc   :  { %7918 = vst [vmem:[#allocation16_spill] sm:$0xff] %v7319_v0  ;;  %v2485_v13 = vpop.f32.mrf.mxu0 }
 0x1dd   :  { %v2598_v61 = vpop.f32.mrf.mxu1  ;;  %v2486_v59 = vadd.f32 %v2485_v13, %v7182_v60  ;;  %v2274_v60 = vadd.f32 %v7206_v42, %v7169_v39 }
 0x1de   :  { %v2487_v51 = vpop.f32.mrf.mxu0 }
 0x1df   :  { %v2600_v47 = vpop.f32.mrf.mxu1  ;;  %v2599_v40 = vadd.f32 %v2598_v61, %v2486_v59  ;;  %v2488_v63 = vadd.f32 %v2487_v51, %v7190_v12  ;;  %4054 = vmatmul.mubr.bf16.gmra.mxu0 %v7179_v48  ;;  %v2276_v48 = vadd.f32 %v7212_v37, %v7174_v31 }
 0x1e0   :  { %4063 = vmatprep.mubr.bf16.mxu0 %v7196_v33  ;;  %v2489_v0 = vpop.f32.mrf.mxu0 }
 0x1e1   :  { %v2602_v45 = vpop.f32.mrf.mxu1  ;;  %v2679_v49 = vmul.f32 0.5, %v2599_v40  ;;  %v2601_v7 = vadd.f32 %v2600_v47, %v2488_v63  ;;  %v2490_v11 = vadd.f32 %v2489_v0, %v2377_v56  ;;  %v2387_v47 = vadd.f32 %v7208_v6, %v2274_v60 }
 0x1e2   :  { %v2491_v13 = vpop.f32.mrf.mxu0  ;;  %v2389_v37 = vadd.f32 %v7214_v4, %v2276_v48 }
 0x1e3   :  { %v2604_v14 = vpop.f32.mrf.mxu1  ;;  %v2680_v10 = vmul.f32 0.5, %v2601_v7  ;;  %v2603_v8 = vadd.f32 %v2602_v45, %v2490_v11  ;;  %v2492_v61 = vadd.f32 %v2491_v13, %v2379_v62  ;;  %6252 = vtanh.f32 %v2679_v49 }
 0x1e4   :  { %v2495_v12 = vpop.f32.mrf.mxu0 }
 0x1e5   :  { %v2608_v33 = vpop.f32.mrf.mxu1  ;;  %v2683_v59 = vmul.f32 0.5, %v2603_v8  ;;  %v2605_v51 = vadd.f32 %v2604_v14, %v2492_v61  ;;  %v2496_v26 = vadd.f32 %v2495_v12, %v7202_v44  ;;  %6254 = vtanh.f32 %v2680_v10 }
 0x1e6   :  { %v2497_v0 = vpop.f32.mrf.mxu0  ;;  %v2286_v8 = vadd.f32 %v7232_v20, %v7174_v31 }
 0x1e7   :  { %v2610_v42 = vpop.f32.mrf.mxu1  ;;  %6256 = vtanh.f32 %v2683_v59  ;;  %v2684_v56 = vmul.f32 0.5, %v2605_v51  ;;  %v2609_v7 = vadd.f32 %v2608_v33, %v2496_v26  ;;  %v2498_v62 = vadd.f32 %v2497_v0, %v7210_v24  ;;  %4064 = vmatmul.mubr.bf16.gmra.mxu0 %v7199_v23 }
 0x1e8   :  { %4073 = vmatprep.mubr.bf16.mxu0 %v7216_v54  ;;  %v2499_v49 = vpop.f32.mrf.mxu0  ;;  %v2284_v24 = vadd.f32 %v7226_v35, %v7169_v39  ;;  %v2399_v20 = vadd.f32 %v7234_v2, %v2286_v8  ;;  %v2304_v2 = vadd.f32 %v7263_v53, %v7169_v39 }
 0x1e9   :  { %v2612_v14 = vpop.f32.mrf.mxu1  ;;  %6258 = vtanh.f32 %v2684_v56  ;;  %v2687_v44 = vmul.f32 0.5, %v2609_v7  ;;  %v2611_v15 = vadd.f32 %v2610_v42, %v2498_v62  ;;  %v2500_v6 = vadd.f32 %v2499_v49, %v2387_v47 }
 0x1ea   :  { %v2501_v40 = vpop.f32.mrf.mxu0  ;;  %v2397_v35 = vadd.f32 %v7228_v16, %v2284_v24  ;;  %v2296_v16 = vadd.f32 %v7253_v25, %v7174_v31 }
 0x1eb   :  { %v2614_v63 = vpop.f32.mrf.mxu1  ;;  %v2688_v45 = vmul.f32 0.5, %v2611_v15  ;;  %v2613_v11 = vadd.f32 %v2612_v14, %v2500_v6  ;;  %v2502_v60 = vadd.f32 %v2501_v40, %v2389_v37  ;;  %6260 = vtanh.f32 %v2687_v44 }
 0x1ec   :  { %v2505_v13 = vpop.f32.mrf.mxu0 }
 0x1ed   :  { %v2618_v23 = vpop.f32.mrf.mxu1  ;;  %v2691_v4 = vmul.f32 0.5, %v2613_v11  ;;  %v2615_v10 = vadd.f32 %v2614_v63, %v2502_v60  ;;  %v2506_v54 = vadd.f32 %v2505_v13, %v7222_v28  ;;  %6262 = vtanh.f32 %v2688_v45 }
 0x1ee   :  { %v2507_v61 = vpop.f32.mrf.mxu0 }
 0x1ef   :  { %v2620_v48 = vpop.f32.mrf.mxu1  ;;  %6264 = vtanh.f32 %v2691_v4  ;;  %v2692_v12 = vmul.f32 0.5, %v2615_v10  ;;  %v2619_v33 = vadd.f32 %v2618_v23, %v2506_v54  ;;  %v2508_v59 = vadd.f32 %v2507_v61, %v7230_v58  ;;  %4074 = vmatmul.mubr.bf16.gmra.mxu0 %v7219_v41 }
 0x1f0   :  { %4083 = vmatprep.mubr.bf16.mxu0 %v7236_v27  ;;  %v2509_v51 = vpop.f32.mrf.mxu0  ;;  %v6253_v47 = vpop.eup %6252  ;;  %v2294_v41 = vadd.f32 %v7247_v34, %v7169_v39  ;;  %v2409_v54 = vadd.f32 %v7255_v36, %v2296_v16  ;;  %v6113_v16 = vld [vmem:[#allocation4 + $0x2cc] ss:$16 sps:$4 sm:$0xff]  }
 0x1f1   :  { %v2622_v26 = vpop.f32.mrf.mxu1  ;;  %6266 = vtanh.f32 %v2692_v12  ;;  %v2621_v28 = vadd.f32 %v2620_v48, %v2508_v59  ;;  %v2510_v0 = vadd.f32 %v2509_v51, %v2397_v35  ;;  %v2695_v62 = vmul.f32 0.5, %v2619_v33 }
 0x1f2   :  { %v2511_v42 = vpop.f32.mrf.mxu0  ;;  %v6255_v7 = vpop.eup %6254  ;;  %v2807_v15 = vmul.f32 0.5, %v6253_v47  ;;  %v2407_v53 = vadd.f32 %v7249_v30, %v2294_v41 }
 0x1f3   :  { %v2624_v56 = vpop.f32.mrf.mxu1  ;;  %v2696_v37 = vmul.f32 0.5, %v2621_v28  ;;  %v2623_v27 = vadd.f32 %v2622_v26, %v2510_v0  ;;  %v2512_v49 = vadd.f32 %v2511_v42, %v2399_v20  ;;  %v2808_v45 = vmul.f32 0.5, %v6255_v7 }
 0x1f4   :  { %v6257_v58 = vpop.eup %6256  ;;  %v2515_v14 = vpop.f32.mrf.mxu0  ;;  %v2871_v26 = vadd.f32 0.5, %v2807_v15  ;;  %v2306_v20 = vadd.f32 %v7269_v21, %v7174_v31 }
 0x1f5   :  { %v2628_v44 = vpop.f32.mrf.mxu1  ;;  %v2811_v6 = vmul.f32 0.5, %v6257_v58  ;;  %v2516_v40 = vadd.f32 %v2515_v14, %v7242_v57  ;;  %6268 = vtanh.f32 %v2696_v37  ;;  %v2699_v11 = vmul.f32 0.5, %v2623_v27 }
 0x1f6   :  { %v6259_v63 = vpop.eup %6258  ;;  %v2625_v60 = vadd.f32 %v2624_v56, %v2512_v49  ;;  %v2517_v34 = vpop.f32.mrf.mxu0  ;;  %6270 = vtanh.f32 %v2695_v62  ;;  %v2872_v12 = vadd.f32 0.5, %v2808_v45  ;;  %v6108_v62 = vld [vmem:[#allocation4 + $0x2e8] ss:$16 sps:$4 sm:$0xff]  }
 0x1f7   :  { %v2630_v24 = vpop.f32.mrf.mxu1  ;;  %v2812_v13 = vmul.f32 0.5, %v6259_v63  ;;  %v2629_v25 = vadd.f32 %v2628_v44, %v2516_v40  ;;  %v2518_v23 = vadd.f32 %v2517_v34, %v7251_v19  ;;  %4084 = vmatmul.mubr.bf16.gmra.mxu0 %v7239_v52  ;;  %6272 = vtanh.f32 %v2699_v11 }
 0x1f8   :  { %v2700_v4 = vmul.f32 0.5, %v2625_v60  ;;  %v2519_v10 = vpop.f32.mrf.mxu0  ;;  %v2875_v8 = vadd.f32 0.5, %v2811_v6  ;;  %v6261_v48 = vpop.eup %6260  ;;  %v2417_v52 = vadd.f32 %v7265_v32, %v2304_v2  ;;  %v6111_v60 = vld [vmem:[#allocation4 + $0x2c8] ss:$16 sps:$4 sm:$0xff]  }
 0x1f9   :  { %v2632_v57 = vpop.f32.mrf.mxu1  ;;  %v2631_v61 = vadd.f32 %v2630_v24, %v2518_v23  ;;  %v2520_v33 = vadd.f32 %v2519_v10, %v2407_v53  ;;  %v2876_v51 = vadd.f32 0.5, %v2812_v13  ;;  %v2703_v30 = vmul.f32 0.5, %v2629_v25  ;;  %v6116_v25 = vld [vmem:[#allocation4 + $0x2ac] ss:$16 sps:$4 sm:$0xff]  }
 0x1fa   :  { %6274 = vtanh.f32 %v2700_v4  ;;  %v2521_v59 = vpop.f32.mrf.mxu0  ;;  %v6263_v19 = vpop.eup %6262  ;;  %v7367_v37 = vpack.c.bf16 %v2875_v8, %v2871_v26  ;;  %v2815_v58 = vmul.f32 0.5, %v6261_v48  ;;  %v2419_v23 = vadd.f32 %v7271_v22, %v2306_v20  ;;  %v6114_v22 = vld [vmem:[#allocation4 + $0x2a8] ss:$16 sps:$4 sm:$0xff]  }
 0x1fb   :  { %v2634_v35 = vpop.f32.mrf.mxu1  ;;  %v2704_v28 = vmul.f32 0.5, %v2631_v61  ;;  %v2633_v36 = vadd.f32 %v2632_v57, %v2520_v33  ;;  %v2522_v0 = vadd.f32 %v2521_v59, %v2409_v54  ;;  %v7365_v7 = vpack.c.bf16 %v2876_v51, %v2872_v12 }
 0x1fc   :  { %v6265_v47 = vpop.eup %6264  ;;  %v2525_v42 = vpop.f32.mrf.mxu0  ;;  %v2816_v49 = vmul.f32 0.5, %v6263_v19 }
 0x1fd   :  { %v2638_v56 = vpop.f32.mrf.mxu1  ;;  %v2819_v41 = vmul.f32 0.5, %v6265_v47  ;;  %v2526_v32 = vadd.f32 %v2525_v42, %v7258_v43  ;;  %6276 = vtanh.f32 %v2704_v28  ;;  %v2707_v14 = vmul.f32 0.5, %v2633_v36  ;;  %3900 = vmatprep.mubr.bf16.mxu1 %v7365_v7  ;;  %v6119_v28 = vld [vmem:[#allocation4 + $0x28c] ss:$16 sps:$4 sm:$0xff]  }
 0x1fe   :  { %v6267_v27 = vpop.eup %6266  ;;  %v2635_v44 = vadd.f32 %v2634_v35, %v2522_v0  ;;  %v2527_v21 = vpop.f32.mrf.mxu0  ;;  %6278 = vtanh.f32 %v2703_v30  ;;  %3901 = vmatmul.mubr.bf16.vlgmr.msra.gmra.mxu1 %v7367_v37  ;;  %v2314_v43 = vadd.f32 %v7279_v17, %v7169_v39  ;;  %v2880_v53 = vadd.f32 0.5, %v2816_v49  ;;  %v6117_v49 = vld [vmem:[#allocation4 + $0x288] ss:$16 sps:$4 sm:$0xff]  }
 0x1ff   :  { %v2640_v2 = vpop.f32.mrf.mxu1  ;;  %v2820_v15 = vmul.f32 0.5, %v6267_v27  ;;  %v2639_v6 = vadd.f32 %v2638_v56, %v2526_v32  ;;  %v2528_v40 = vadd.f32 %v2527_v21, %v7267_v18  ;;  %6280 = vtanh.f32 %v2707_v14  ;;  %4095 = vmatpush1.bf16.msra.mxu1 %v6108_v62 }
 0x200   :  { %v2708_v63 = vmul.f32 0.5, %v2635_v44  ;;  %v2529_v45 = vpop.f32.mrf.mxu0  ;;  %v2883_v34 = vadd.f32 0.5, %v2819_v41  ;;  %4096 = vmatprep.subr.bf16.mxu1 %v6113_v16  ;;  %v2879_v17 = vadd.f32 0.5, %v2815_v58  ;;  %v2427_v48 = vadd.f32 %v7281_v3, %v2314_v43 }
 0x201   :  { %v2642_v11 = vpop.f32.mrf.mxu1  ;;  %v2641_v24 = vadd.f32 %v2640_v2, %v2528_v40  ;;  %v2530_v13 = vadd.f32 %v2529_v45, %v2417_v52  ;;  %v2884_v10 = vadd.f32 0.5, %v2820_v15  ;;  %v2711_v54 = vmul.f32 0.5, %v2639_v6  ;;  %v6122_v2 = vld [vmem:[#allocation4 + $0x26c] ss:$16 sps:$4 sm:$0xff]  }
 0x202   :  { %6282 = vtanh.f32 %v2708_v63  ;;  %v2531_v18 = vpop.f32.mrf.mxu0  ;;  %v6269_v57 = vpop.eup %6268  ;;  %v2316_v52 = vadd.f32 %v7285_v1, %v7174_v31  ;;  %v7382_v30 = vpack.c.bf16 %v2883_v34, %v2879_v17  ;;  %v6125_v17 = vld [vmem:[#allocation4 + $0x24c] ss:$16 sps:$4 sm:$0xff]  }
 0x203   :  { %v2644_v4 = vpop.f32.mrf.mxu1  ;;  %v2712_v8 = vmul.f32 0.5, %v2641_v24  ;;  %v6271_v61 = vpop.eup %6270  ;;  %v2643_v12 = vadd.f32 %v2642_v11, %v2530_v13  ;;  %v2532_v33 = vadd.f32 %v2531_v18, %v2419_v23  ;;  %4097 = vmatpush1.bf16.msra.mxu1 %v6111_v60  ;;  %v7377_v51 = vpack.c.bf16 %v2884_v10, %v2880_v53 }
 0x204   :  { %v2535_v59 = vpop.f32.mrf.mxu0  ;;  %v6273_v19 = vpop.eup %6272  ;;  %4098 = vmatprep.subr.bf16.mxu1 %v6116_v25  ;;  %v2824_v3 = vmul.f32 0.5, %v6269_v57  ;;  %v2823_v62 = vmul.f32 0.5, %v6271_v61  ;;  %v2429_v15 = vadd.f32 %v7287_v50, %v2316_v52  ;;  %v6120_v50 = vld [vmem:[#allocation4 + $0x268] ss:$16 sps:$4 sm:$0xff]  }
 0x205   :  { %v2648_v35 = vpop.f32.mrf.mxu1  ;;  %6284 = vtanh.f32 %v2712_v8  ;;  %v2536_v26 = vadd.f32 %v2535_v59, %v7274_v46  ;;  %v2827_v47 = vmul.f32 0.5, %v6273_v19  ;;  %v2715_v20 = vmul.f32 0.5, %v2643_v12  ;;  %3910 = vmatprep.mubr.bf16.mxu1 %v7377_v51 }
 0x206   :  { %v2645_v36 = vadd.f32 %v2644_v4, %v2532_v33  ;;  %v2537_v0 = vpop.f32.mrf.mxu0  ;;  %6286 = vtanh.f32 %v2711_v54  ;;  %3911 = vmatmul.mubr.bf16.gmra.mxu1 %v7382_v30  ;;  %v2324_v46 = vadd.f32 %v7295_v55, %v7169_v39  ;;  %v2887_v63 = vadd.f32 0.5, %v2823_v62  ;;  %v7921_v62 = vld [vmem:[#allocation11_spill] sm:$0xff] }
 0x207   :  { %v2650_v42 = vpop.f32.mrf.mxu1  ;;  %v6275_v56 = vpop.eup %6274  ;;  %v2649_v58 = vadd.f32 %v2648_v35, %v2536_v26  ;;  %v2538_v1 = vadd.f32 %v2537_v0, %v7283_v5  ;;  %6288 = vtanh.f32 %v2715_v20  ;;  %4099 = vmatpush1.bf16.msra.mxu1 %v6114_v22  ;;  %v2891_v14 = vadd.f32 0.5, %v2827_v47  ;;  %v6123_v47 = vld [vmem:[#allocation4 + $0x248] ss:$16 sps:$4 sm:$0xff]  }
 0x208   :  { %v2828_v41 = vmul.f32 0.5, %v6275_v56  ;;  %v2716_v32 = vmul.f32 0.5, %v2645_v36  ;;  %v2539_v16 = vpop.f32.mrf.mxu0  ;;  %4100 = vmatprep.subr.bf16.mxu1 %v6119_v28  ;;  %v2888_v5 = vadd.f32 0.5, %v2824_v3  ;;  %v2437_v34 = vadd.f32 %v7297_v29, %v2324_v46 }
 0x209   :  { %v2652_v27 = vpop.f32.mrf.mxu1  ;;  %v2651_v44 = vadd.f32 %v2650_v42, %v2538_v1  ;;  %v2540_v21 = vadd.f32 %v2539_v16, %v2427_v48  ;;  %v2719_v45 = vmul.f32 0.5, %v2649_v58  ;;  %v2326_v4 = vadd.f32 %v7301_v38, %v7174_v31  ;;  %v7919_v38 = vld [vmem:[#allocation9_spill] sm:$0xff] }
 0x20a   :  { %6290 = vtanh.f32 %v2716_v32  ;;  %v2541_v6 = vpop.f32.mrf.mxu0  ;;  %v2892_v43 = vadd.f32 0.5, %v2828_v41  ;;  %v6277_v55 = vpop.eup %6276  ;;  %v7396_v57 = vpack.c.bf16 %v2891_v14, %v2887_v63  ;;  %v6128_v42 = vld [vmem:[#allocation4 + $0x22c] ss:$16 sps:$4 sm:$0xff]   ;;  %v7922_v14 = vld [vmem:[#allocation12_spill] sm:$0xff] }
 0x20b   :  { %v2654_v40 = vpop.f32.mrf.mxu1  ;;  %v2720_v11 = vmul.f32 0.5, %v2651_v44  ;;  %v6279_v60 = vpop.eup %6278  ;;  %v2653_v24 = vadd.f32 %v2652_v27, %v2540_v21  ;;  %v2542_v13 = vadd.f32 %v2541_v6, %v2429_v15  ;;  %4101 = vmatpush1.bf16.msra.mxu1 %v6117_v49  ;;  %v2832_v29 = vmul.f32 0.5, %v6277_v55  ;;  %v7923_v55 = vld [vmem:[#allocation15_spill] sm:$0xff] }
 0x20c   :  { %v2545_v25 = vpop.f32.mrf.mxu0  ;;  %v7391_v53 = vpack.c.bf16 %v2892_v43, %v2888_v5  ;;  %v6281_v18 = vpop.eup %6280  ;;  %4102 = vmatprep.subr.bf16.mxu1 %v6122_v2  ;;  %v2831_v59 = vmul.f32 0.5, %v6279_v60  ;;  %v2439_v58 = vadd.f32 %v7921_v62, %v2326_v4  ;;  %v2336_v63 = vadd.f32 %v7923_v55, %v7174_v31  ;;  %v7925_v31 = vld [vmem:[#allocation14_spill] sm:$0xff]  ;;  %v6132_v62 = vld [vmem:[#allocation4 + $0x3e8] ss:$16 sps:$4 sm:$0xff]  }
 0x20d   :  { %v2658_v23 = vpop.f32.mrf.mxu1  ;;  %6292 = vtanh.f32 %v2720_v11  ;;  %v2546_v10 = vadd.f32 %v2545_v25, %v7290_v9  ;;  %v2835_v54 = vmul.f32 0.5, %v6281_v18  ;;  %v2723_v8 = vmul.f32 0.5, %v2653_v24  ;;  %v7920_v9 = vld [vmem:[#allocation10_spill] sm:$0xff]  ;;  %v7924_v11 = vld [vmem:[#allocation13_spill] sm:$0xff] }
 0x20e   :  { %v2655_v61 = vadd.f32 %v2654_v40, %v2542_v13  ;;  %3920 = vmatprep.mubr.bf16.mxu1 %v7391_v53  ;;  %v2547_v48 = vpop.f32.mrf.mxu0  ;;  %6294 = vtanh.f32 %v2719_v45  ;;  %v2334_v19 = vadd.f32 %v7920_v9, %v7169_v39  ;;  %v2896_v1 = vadd.f32 0.5, %v2832_v29  ;;  %v6126_v40 = vld [vmem:[#allocation4 + $0x228] ss:$16 sps:$4 sm:$0xff]   ;;  %v6131_v24 = vld [vmem:[#allocation4 + $0x20c] ss:$16 sps:$4 sm:$0xff]   ;;  %v7926_v9 = vld [vmem:[#allocation16_spill] sm:$0xff] }
 0x20f   :  { %v2660_v12 = vpop.f32.mrf.mxu1  ;;  %v6283_v33 = vpop.eup %6282  ;;  %v2659_v35 = vadd.f32 %v2658_v23, %v2546_v10  ;;  %v2548_v22 = vadd.f32 %v2547_v48, %v7919_v38  ;;  %3921 = vmatmul.mubr.bf16.gmra.mxu1 %v7396_v57  ;;  %6296 = vtanh.f32 %v2723_v8  ;;  %v2899_v20 = vadd.f32 0.5, %v2835_v54  ;;  %v6129_v48 = vld [vmem:[#allocation4 + $0x208] ss:$16 sps:$4 sm:$0xff]   ;;  %v6134_v38 = vld [vmem:[#allocation4 + $0x3ec] ss:$16 sps:$4 sm:$0xff]  }
 0x210   :  { %v2836_v52 = vmul.f32 0.5, %v6283_v33  ;;  %v2724_v26 = vmul.f32 0.5, %v2655_v61  ;;  %4103 = vmatpush1.bf16.msra.mxu1 %v6120_v50  ;;  %v2549_v28 = vpop.f32.mrf.mxu0  ;;  %v2895_v32 = vadd.f32 0.5, %v2831_v59  ;;  %v2447_v44 = vadd.f32 %v7922_v14, %v2334_v19 }
 0x211   :  { %v2662_v3 = vpop.f32.mrf.mxu1  ;;  %v2661_v36 = vadd.f32 %v2660_v12, %v2548_v22  ;;  %v2550_v0 = vadd.f32 %v2549_v28, %v2437_v34  ;;  %4104 = vmatprep.subr.bf16.mxu1 %v6125_v17  ;;  %v2727_v16 = vmul.f32 0.5, %v2659_v35  ;;  %v2449_v19 = vadd.f32 %v7926_v9, %v2336_v63 }
 0x212   :  { %v6285_v56 = vpop.eup %6284  ;;  %6298 = vtanh.f32 %v2724_v26  ;;  %v2551_v46 = vpop.f32.mrf.mxu0  ;;  %v2900_v39 = vadd.f32 0.5, %v2836_v52  ;;  %v7410_v34 = vpack.c.bf16 %v2899_v20, %v2895_v32 }
 0x213   :  { %v2664_v41 = vpop.f32.mrf.mxu1  ;;  %v2728_v27 = vmul.f32 0.5, %v2661_v36  ;;  %v6287_v49 = vpop.eup %6286  ;;  %v2663_v21 = vadd.f32 %v2662_v3, %v2550_v0  ;;  %v2552_v2 = vadd.f32 %v2551_v46, %v2439_v58  ;;  %v2840_v45 = vmul.f32 0.5, %v6285_v56 }
 0x214   :  { %4105 = vmatpush1.bf16.msra.mxu1 %v6123_v47  ;;  %v2555_v15 = vpop.f32.mrf.mxu0  ;;  %v7405_v6 = vpack.c.bf16 %v2900_v39, %v2896_v1  ;;  %v6289_v43 = vpop.eup %6288  ;;  %v2839_v10 = vmul.f32 0.5, %v6287_v49  ;;  %v6137_v39 = vld [vmem:[#allocation4 + $0x3cc] ss:$16 sps:$4 sm:$0xff]  }
 0x215   :  { %v2668_v5 = vpop.f32.mrf.mxu1  ;;  %v2556_v60 = vadd.f32 %v2555_v15, %v7924_v11  ;;  %4106 = vmatprep.subr.bf16.mxu1 %v6128_v42  ;;  %v2843_v13 = vmul.f32 0.5, %v6289_v43  ;;  %6300 = vtanh.f32 %v2728_v27  ;;  %v2731_v25 = vmul.f32 0.5, %v2663_v21 }
 0x216   :  { %v2665_v23 = vadd.f32 %v2664_v41, %v2552_v2  ;;  %3930 = vmatprep.mubr.bf16.mxu1 %v7405_v6  ;;  %v2557_v50 = vpop.f32.mrf.mxu0  ;;  %6302 = vtanh.f32 %v2727_v16  ;;  %v2904_v52 = vadd.f32 0.5, %v2840_v45  ;;  %v2903_v3 = vadd.f32 0.5, %v2839_v10  ;;  %v6135_v2 = vld [vmem:[#allocation4 + $0x3c8] ss:$16 sps:$4 sm:$0xff]  }
 0x217   :  { %v2670_v18 = vpop.f32.mrf.mxu1  ;;  %v6291_v4 = vpop.eup %6290  ;;  %v2669_v17 = vadd.f32 %v2668_v5, %v2556_v60  ;;  %v2558_v29 = vadd.f32 %v2557_v50, %v7925_v31  ;;  %3931 = vmatmul.mubr.bf16.gmra.mxu1 %v7410_v34  ;;  %6304 = vtanh.f32 %v2731_v25  ;;  %v2907_v12 = vadd.f32 0.5, %v2843_v13  ;;  %v6140_v5 = vld [vmem:[#allocation4 + $0x3ac] ss:$16 sps:$4 sm:$0xff]   ;;  %v6138_v60 = vld [vmem:[#allocation4 + $0x3a8] ss:$16 sps:$4 sm:$0xff]  }
 0x218   :  { %v2844_v54 = vmul.f32 0.5, %v6291_v4  ;;  %v2732_v8 = vmul.f32 0.5, %v2665_v23  ;;  %4107 = vmatpush1.bf16.msra.mxu1 %v6126_v40  ;;  %v2559_v61 = vpop.f32.mrf.mxu0  ;;  %v6143_v25 = vld [vmem:[#allocation4 + $0x38c] ss:$16 sps:$4 sm:$0xff]  }
 0x219   :  { %v2671_v33 = vadd.f32 %v2670_v18, %v2558_v29  ;;  %v2560_v59 = vadd.f32 %v2559_v61, %v2447_v44  ;;  %v2672_v35 = vpop.f32.mrf.mxu1  ;;  %4108 = vmatprep.subr.bf16.mxu1 %v6131_v24  ;;  %v2735_v47 = vmul.f32 0.5, %v2669_v17  ;;  %v7418_v41 = vpack.c.bf16 %v2907_v12, %v2903_v3  ;;  %v6141_v17 = vld [vmem:[#allocation4 + $0x388] ss:$16 sps:$4 sm:$0xff]   ;;  %v6146_v29 = vld [vmem:[#allocation4 + $0x36c] ss:$16 sps:$4 sm:$0xff]  }
 0x21a   :  { %v6293_v22 = vpop.eup %6292  ;;  %v2908_v26 = vadd.f32 0.5, %v2844_v54  ;;  %6306 = vtanh.f32 %v2732_v8  ;;  %v2561_v28 = vpop.f32.mrf.mxu0  ;;  %v6147_v3 = vld [vmem:[#allocation4 + $0x348] ss:$16 sps:$4 sm:$0xff]  }
 0x21b   :  { %v2736_v20 = vmul.f32 0.5, %v2671_v33  ;;  %v6295_v36 = vpop.eup %6294  ;;  %v2673_v0 = vadd.f32 %v2672_v35, %v2560_v59  ;;  %v2562_v42 = vadd.f32 %v2561_v28, %v2449_v19  ;;  %v2848_v1 = vmul.f32 0.5, %v6293_v22  ;;  %v2674_v46 = vpop.f32.mrf.mxu1  ;;  %v6144_v59 = vld [vmem:[#allocation4 + $0x368] ss:$16 sps:$4 sm:$0xff]   ;;  %v6149_v22 = vld [vmem:[#allocation4 + $0x34c] ss:$16 sps:$4 sm:$0xff]  }
 0x21c   :  { %4109 = vmatpush1.bf16.msra.mxu1 %v6129_v48  ;;  %v7416_v56 = vpack.c.bf16 %v2908_v26, %v2904_v52  ;;  %v6297_v58 = vpop.eup %6296  ;;  %v2847_v14 = vmul.f32 0.5, %v6295_v36 }
 0x21d   :  { %4110 = vmatprep.subr.bf16.mxu1 %v6134_v38  ;;  %v2851_v32 = vmul.f32 0.5, %v6297_v58  ;;  %6308 = vtanh.f32 %v2736_v20  ;;  %v2739_v16 = vmul.f32 0.5, %v2673_v0  ;;  %v2675_v27 = vadd.f32 %v2674_v46, %v2562_v42  ;;  %v6152_v20 = vld [vmem:[#allocation4 + $0x32c] ss:$16 sps:$4 sm:$0xff]   ;;  %v6150_v58 = vld [vmem:[#allocation4 + $0x328] ss:$16 sps:$4 sm:$0xff]  }
 0x21e   :  { %3940 = vmatprep.mubr.bf16.mxu1 %v7416_v56  ;;  %6310 = vtanh.f32 %v2735_v47  ;;  %v2912_v40 = vadd.f32 0.5, %v2848_v1  ;;  %v2911_v63 = vadd.f32 0.5, %v2847_v14  ;;  %v6155_v46 = vld [vmem:[#allocation4 + $0x30c] ss:$16 sps:$4 sm:$0xff]   ;;  %v6159_v14 = vld [vmem:[%s7889_s5 + $0x30] sm:$0xff]  }
 0x21f   :  { %v6299_v49 = vpop.eup %6298  ;;  %3941 = vmatmul.mubr.bf16.gmra.mxu1 %v7418_v41  ;;  %6312 = vtanh.f32 %v2739_v16  ;;  %v2740_v21 = vmul.f32 0.5, %v2675_v27  ;;  %v2915_v15 = vadd.f32 0.5, %v2851_v32  ;;  %v6156_v32 = vld [vmem:[%s7889_s5 + $0x78] sm:$0xff]  }
 0x220   :  { %v2852_v44 = vmul.f32 0.5, %v6299_v49  ;;  %4111 = vmatpush2.bf16.msra.mxu1 %v6132_v62  ;;  %v6157_v16 = vld [vmem:[%s7889_s5 + $0x38] sm:$0xff]   ;;  %5415 = vmatprep.subr.bf16.mxu0 %v6156_v32  ;;  %v7927_v32 = vld [vmem:[#allocation8_spill] sm:$0xff] }
 0x221   :  { %4112 = vmatprep.subr.bf16.mxu1 %v6137_v39  ;;  %6314 = vtanh.f32 %v2740_v21  ;;  %v7424_v13 = vpack.c.bf16 %v2915_v15, %v2911_v63  ;;  %v6153_v39 = vld [vmem:[#allocation4 + $0x308] ss:$16 sps:$4 sm:$0xff]   ;;  %5416 = vmatpush3.bf16.msra.mxu0 %v6157_v16  ;;  %v6162_v21 = vld [vmem:[%s7889_s5 + $0x60] sm:$0xff]   ;;  %v7928_v16 = vsub.s32 0, %v7927_v32 }
 0x222   :  { %v2916_v43 = vadd.f32 0.5, %v2852_v44  ;;  %v6301_v55 = vpop.eup %6300  ;;  %v6163_v15 = vld [vmem:[%s7889_s5 + $0x20] sm:$0xff]  }
 0x223   :  { %v6303_v45 = vpop.eup %6302  ;;  %v2856_v23 = vmul.f32 0.5, %v6301_v55  ;;  %v6167_v55 = vld [vmem:[%s7889_s5 + $0x10] sm:$0xff]  }
 0x224   :  { %4113 = vmatpush2.bf16.msra.mxu1 %v6135_v2  ;;  %v7422_v11 = vpack.c.bf16 %v2916_v43, %v2912_v40  ;;  %v6305_v24 = vpop.eup %6304  ;;  %v2855_v4 = vmul.f32 0.5, %v6303_v45  ;;  %v6166_v43 = vld [vmem:[%s7889_s5 + $0x50] sm:$0xff]  }
 0x225   :  { %4114 = vmatprep.subr.bf16.mxu1 %v6140_v5  ;;  %v2859_v50 = vmul.f32 0.5, %v6305_v24  ;;  %v2920_v54 = vadd.f32 0.5, %v2856_v23  ;;  %v6171_v24 = vld [vmem:[%s7889_s5] sm:$0xff]  }
 0x226   :  { %3950 = vmatprep.mubr.bf16.mxu1 %v7422_v11  ;;  %v2919_v48 = vadd.f32 0.5, %v2855_v4 }
 0x227   :  { %v6307_v18 = vpop.eup %6306  ;;  %3951 = vmatmul.mubr.bf16.gmra.mxu1 %v7424_v13  ;;  %v2923_v31 = vadd.f32 0.5, %v2859_v50 }
 0x228   :  { %v2860_v10 = vmul.f32 0.5, %v6307_v18  ;;  %4115 = vmatpush2.bf16.msra.mxu1 %v6138_v60  ;;  %v6170_v60 = vld [vmem:[%s7889_s5 + $0x40] sm:$0xff]  }
 0x229   :  { %4116 = vmatprep.subr.bf16.mxu1 %v6143_v25  ;;  %v7430_v38 = vpack.c.bf16 %v2923_v31, %v2919_v48 }
 0x22a   :  { %v2924_v8 = vadd.f32 0.5, %v2860_v10  ;;  %v6309_v61 = vpop.eup %6308  ;;  %v6174_v10 = vld [vmem:[%s7889_s5 + $0xf0] sm:$0xff]  }
 0x22b   :  { %v6311_v12 = vpop.eup %6310  ;;  %v2864_v9 = vmul.f32 0.5, %v6309_v61 }
 0x22c   :  { %4117 = vmatpush2.bf16.msra.mxu1 %v6141_v17  ;;  %v7428_v33 = vpack.c.bf16 %v2924_v8, %v2920_v54  ;;  %v6313_v35 = vpop.eup %6312  ;;  %v2863_v26 = vmul.f32 0.5, %v6311_v12  ;;  %v6175_v17 = vld [vmem:[%s7889_s5 + $0xb0] sm:$0xff]   ;;  %v6176_v54 = vld [vmem:[%s7889_s5 + $0xe8] sm:$0xff]   ;;  %v6178_v12 = vld [vmem:[%s7889_s5 + $0xe0] sm:$0xff]  }
 0x22d   :  { %4118 = vmatprep.subr.bf16.mxu1 %v6146_v29  ;;  %v2867_v19 = vmul.f32 0.5, %v6313_v35  ;;  %v2928_v36 = vadd.f32 0.5, %v2864_v9  ;;  %v6177_v8 = vld [vmem:[%s7889_s5 + $0xa8] sm:$0xff]   ;;  %v6180_v35 = vld [vmem:[%s7889_s5 + $0xd8] sm:$0xff]   ;;  %v6182_v9 = vld [vmem:[%s7889_s5 + $0xd0] sm:$0xff]  }
 0x22e   :  { %3960 = vmatprep.mubr.bf16.mxu1 %v7428_v33  ;;  %v6315_v52 = vpop.eup %6314  ;;  %v2927_v42 = vadd.f32 0.5, %v2863_v26  ;;  %v6184_v26 = vld [vmem:[%s7889_s5 + $0xc8] sm:$0xff]  }
 0x22f   :  { %3961 = vmatmul.mubr.bf16.gmra.mxu1 %v7430_v38  ;;  %v2868_v28 = vmul.f32 0.5, %v6315_v52  ;;  %v2931_v47 = vadd.f32 0.5, %v2867_v19  ;;  %v6183_v19 = vld [vmem:[%s7889_s5 + $0x90] sm:$0xff]  }
 0x230   :  { %4119 = vmatpush2.bf16.msra.mxu1 %v6144_v59 }
 0x231   :  { %4120 = vmatprep.subr.bf16.mxu1 %v6149_v22  ;;  %v2932_v0 = vadd.f32 0.5, %v2868_v28  ;;  %v7436_v1 = vpack.c.bf16 %v2931_v47, %v2927_v42  ;;  %v6185_v28 = vld [vmem:[%s7889_s5 + $0x88] sm:$0xff]   ;;  %v6186_v47 = vld [vmem:[%s7889_s5 + $0xc0] sm:$0xff]  }
 0x233   :  { %v7434_v62 = vpack.c.bf16 %v2932_v0, %v2928_v36 }
 0x234   :  { %4121 = vmatpush2.bf16.msra.mxu1 %v6147_v3 }
 0x235   :  { %4122 = vmatprep.subr.bf16.mxu1 %v6152_v20  ;;  %3970 = vmatprep.mubr.bf16.mxu1 %v7434_v62  ;;  %v6187_v20 = vld [vmem:[%s7889_s5 + $0x80] sm:$0xff]  }
 0x237   :  { %3971 = vmatmul.mubr.bf16.gmra.mxu1 %v7436_v1 }
 0x238   :  { %4123 = vmatpush2.bf16.msra.mxu1 %v6150_v58  ;;  %4126 = vmatprep.mubr.bf16.mxu1 %v7365_v7  ;;  %v6158_v7 = vld [vmem:[%s7889_s5 + $0x70] sm:$0xff]  }
 0x239   :  { %4124 = vmatprep.subr.bf16.mxu1 %v6155_v46  ;;  %5417 = vmatprep.subr.bf16.mxu0 %v6158_v7 }
 0x23a   :  { %5418 = vmatpush3.bf16.msra.mxu0 %v6159_v14 }
 0x23c   :  { %4125 = vmatpush2.bf16.msra.mxu1 %v6153_v39  ;;  %v7617_v39 = vld [vmem:[%s7888_s4] sm:$0xf] }
 0x23d   :  { %v7622_v7 = vrot.slane %v7617_v39, %v7928_v16 }
 0x23e   :  { %v7447_v27 = vpop.f32.mrf.mxu0 }
 0x23f   :  { %4127 = vmatmul.mubr.bf16.vlgmr.msra.gmra.mxu1 %v7367_v37  ;;  %v6160_v37 = vld [vmem:[%s7889_s5 + $0x68] sm:$0xff]  }
 0x240   :  { %4136 = vmatprep.mubr.bf16.mxu1 %v7377_v51  ;;  %v7454_v49 = vpop.f32.mrf.mxu0  ;;  %v6161_v51 = vld [vmem:[%s7889_s5 + $0x28] sm:$0xff]   ;;  %5419 = vmatprep.subr.bf16.mxu0 %v6160_v37  ;;  %v7929_v37 = vsub.s32 1, %v7927_v32 }
 0x241   :  { %5420 = vmatpush3.bf16.msra.mxu0 %v6161_v51 }
 0x242   :  { %v7462_v44 = vpop.f32.mrf.mxu0  ;;  %5421 = vmatprep.subr.bf16.mxu0 %v6162_v21  ;;  %v7629_v51 = vrot.slane %v7617_v39, %v7929_v37  ;;  %v3790_v21 = vadd.f32 %v7447_v27, %v7622_v7 }
 0x244   :  { %v7472_v2 = vpop.f32.mrf.mxu0 }
 0x245   :  { %5422 = vmatpush3.bf16.msra.mxu0 %v6163_v15 }
 0x246   :  { %v7480_v5 = vpop.f32.mrf.mxu0 }
 0x247   :  { %4137 = vmatmul.mubr.bf16.gmra.mxu1 %v7382_v30  ;;  %v6164_v30 = vld [vmem:[%s7889_s5 + $0x58] sm:$0xff]  }
 0x248   :  { %4146 = vmatprep.mubr.bf16.mxu1 %v7391_v53  ;;  %v6165_v53 = vld [vmem:[%s7889_s5 + $0x18] sm:$0xff]   ;;  %5423 = vmatprep.subr.bf16.mxu0 %v6164_v30  ;;  %v7487_v40 = vpop.f32.mrf.mxu0 }
 0x249   :  { %5424 = vmatpush3.bf16.msra.mxu0 %v6165_v53  ;;  %v3792_v53 = vadd.f32 %v7454_v49, %v7629_v51 }
 0x24a   :  { %5425 = vmatprep.subr.bf16.mxu0 %v6166_v43  ;;  %v7495_v63 = vpop.f32.mrf.mxu0 }
 0x24c   :  { %v7505_v45 = vpop.f32.mrf.mxu0 }
 0x24d   :  { %5426 = vmatpush3.bf16.msra.mxu0 %v6167_v55 }
 0x24f   :  { %4147 = vmatmul.mubr.bf16.gmra.mxu1 %v7396_v57  ;;  %v6168_v57 = vld [vmem:[%s7889_s5 + $0x48] sm:$0xff]  }
 0x250   :  { %4156 = vmatprep.mubr.bf16.mxu1 %v7405_v6  ;;  %v6169_v6 = vld [vmem:[%s7889_s5 + $0x8] sm:$0xff]   ;;  %5427 = vmatprep.subr.bf16.mxu0 %v6168_v57  ;;  %v3794_v57 = vadd.f32 %v7462_v44, %v7622_v7 }
 0x251   :  { %5428 = vmatpush3.bf16.msra.mxu0 %v6169_v6 }
 0x252   :  { %5429 = vmatprep.subr.bf16.mxu0 %v6170_v60 }
 0x255   :  { %5430 = vmatpush3.bf16.msra.mxu0 %v6171_v24 }
 0x257   :  { %4157 = vmatmul.mubr.bf16.gmra.mxu1 %v7410_v34  ;;  %v7513_v34 = vpop.f32.mrf.mxu0 }
 0x258   :  { %4166 = vmatprep.mubr.bf16.mxu1 %v7416_v56 }
 0x259   :  { %v7517_v56 = vpop.f32.mrf.mxu0 }
 0x25b   :  { %v7519_v25 = vpop.f32.mrf.mxu0 }
 0x25d   :  { %v7523_v23 = vpop.f32.mrf.mxu0 }
 0x25f   :  { %4167 = vmatmul.mubr.bf16.gmra.mxu1 %v7418_v41  ;;  %v7525_v50 = vpop.f32.mrf.mxu0  ;;  %v6172_v41 = vld [vmem:[%s7889_s5 + $0xf8] sm:$0xff]  }
 0x260   :  { %4176 = vmatprep.mubr.bf16.mxu1 %v7422_v11  ;;  %v6173_v11 = vld [vmem:[%s7889_s5 + $0xb8] sm:$0xff]   ;;  %5479 = vmatprep.subr.bf16.mxu1 %v6172_v41 }
 0x261   :  { %v7529_v18 = vpop.f32.mrf.mxu0  ;;  %5480 = vmatpush3.bf16.msra.mxu1 %v6173_v11  ;;  %v3796_v11 = vadd.f32 %v7472_v2, %v7629_v51 }
 0x262   :  { %5481 = vmatprep.subr.bf16.mxu1 %v6174_v10 }
 0x265   :  { %5482 = vmatpush3.bf16.msra.mxu1 %v6175_v17 }
 0x266   :  { %5483 = vmatprep.subr.bf16.mxu1 %v6176_v54  ;;  %v3800_v54 = vadd.f32 %v7480_v5, %v7622_v7 }
 0x267   :  { %4177 = vmatmul.mubr.bf16.gmra.mxu1 %v7424_v13  ;;  %v7537_v13 = vpop.f32.mrf.mxu0 }
 0x268   :  { %4186 = vmatprep.mubr.bf16.mxu1 %v7428_v33  ;;  %v6179_v33 = vld [vmem:[%s7889_s5 + $0xa0] sm:$0xff]  }
 0x269   :  { %v7540_v4 = vpop.f32.mrf.mxu0  ;;  %5484 = vmatpush3.bf16.msra.mxu1 %v6177_v8 }
 0x26a   :  { %5485 = vmatprep.subr.bf16.mxu1 %v6178_v12 }
 0x26b   :  { %v7548_v31 = vpop.f32.mrf.mxu0 }
 0x26d   :  { %v7550_v29 = vpop.f32.mrf.mxu0  ;;  %5486 = vmatpush3.bf16.msra.mxu1 %v6179_v33  ;;  %v3802_v33 = vadd.f32 %v7487_v40, %v7629_v51  ;;  %v3810_v40 = vadd.f32 %v7513_v34, %v7622_v7  ;;  %v3814_v34 = vadd.f32 %v7519_v25, %v7622_v7 }
 0x26e   :  { %5487 = vmatprep.subr.bf16.mxu1 %v6180_v35 }
 0x26f   :  { %4187 = vmatmul.mubr.bf16.gmra.mxu1 %v7430_v38  ;;  %v7558_v61 = vpop.f32.mrf.mxu0  ;;  %v6181_v38 = vld [vmem:[%s7889_s5 + $0x98] sm:$0xff]  }
 0x270   :  { %4196 = vmatprep.mubr.bf16.mxu1 %v7434_v62 }
 0x271   :  { %v7560_v48 = vpop.f32.mrf.mxu0  ;;  %5488 = vmatpush3.bf16.msra.mxu1 %v6181_v38 }
 0x272   :  { %5489 = vmatprep.subr.bf16.mxu1 %v6182_v9  ;;  %v3804_v9 = vadd.f32 %v7495_v63, %v7622_v7 }
 0x273   :  { %v7568_v59 = vpop.f32.mrf.mxu0 }
 0x275   :  { %v7576_v22 = vpop.f32.mrf.mxu0  ;;  %5490 = vmatpush3.bf16.msra.mxu1 %v6183_v19 }
 0x276   :  { %5491 = vmatprep.subr.bf16.mxu1 %v6184_v26 }
 0x277   :  { %4197 = vmatmul.mubr.bf16.gmra.mxu1 %v7436_v1  ;;  %v7584_v52 = vpop.f32.mrf.mxu0 }
 0x279   :  { %5492 = vmatpush3.bf16.msra.mxu1 %v6185_v28  ;;  %v7592_v3 = vpop.f32.mrf.mxu0 }
 0x27a   :  { %5493 = vmatprep.subr.bf16.mxu1 %v6186_v47  ;;  %v3806_v47 = vadd.f32 %v7505_v45, %v7629_v51 }
 0x27b   :  { %v7600_v36 = vpop.f32.mrf.mxu0 }
 0x27d   :  { %5494 = vmatpush3.bf16.msra.mxu1 %v6187_v20  ;;  %v7602_v0 = vpop.f32.mrf.mxu0 }
 0x27f   :  { %v7604_v42 = vpop.f32.mrf.mxu0 }
 0x281   :  { %v7606_v62 = vpop.f32.mrf.mxu0 }
 0x283   :  { %v7608_v58 = vpop.f32.mrf.mxu0 }
 0x285   :  { %v7610_v1 = vpop.f32.mrf.mxu0 }
 0x287   :  { %v7612_v46 = vpop.f32.mrf.mxu0 }
 0x289   :  { %v7624_v14 = vpop.f32.mrf.mxu0 }
 0x28b   :  { %v7633_v15 = vpop.f32.mrf.mxu0 }
 0x28d   :  { %v7639_v6 = vpop.f32.mrf.mxu0 }
 0x28f   :  { %v7645_v49 = vpop.f32.mrf.mxu0 }
 0x291   :  { %v7651_v19 = vpop.f32.mrf.mxu0 }
 0x2be   :  { %v3902_v30 = vpop.f32.mrf.mxu1 }
 0x2bf   :  { %v3903_v43 = vadd.f32 %v3902_v30, %v3790_v21  ;;  %v7657_v21 = vpop.f32.mrf.mxu0 }
 0x2c0   :  { %v3904_v55 = vpop.f32.mrf.mxu1 }
 0x2c1   :  { %v3905_v60 = vadd.f32 %v3904_v55, %v3792_v53  ;;  %v4207_v24 = vmul.f32 0.5, %v3903_v43  ;;  %v3812_v43 = vadd.f32 %v7517_v56, %v7629_v51 }
 0x2c2   :  { %v3906_v41 = vpop.f32.mrf.mxu1 }
 0x2c3   :  { %v4208_v27 = vmul.f32 0.5, %v3905_v60  ;;  %v3907_v10 = vadd.f32 %v3906_v41, %v3794_v57  ;;  %v7661_v60 = vpop.f32.mrf.mxu0 }
 0x2c4   :  { %v3908_v17 = vpop.f32.mrf.mxu1 }
 0x2c5   :  { %6316 = vtanh.f32 %v4208_v27  ;;  %v4211_v8 = vmul.f32 0.5, %v3907_v10  ;;  %v3909_v12 = vadd.f32 %v3908_v17, %v3796_v11  ;;  %v3816_v17 = vadd.f32 %v7523_v23, %v7629_v51 }
 0x2c6   :  { %6318 = vtanh.f32 %v4207_v24  ;;  %v3912_v44 = vpop.f32.mrf.mxu1 }
 0x2c7   :  { %6320 = vtanh.f32 %v4211_v8  ;;  %v4212_v35 = vmul.f32 0.5, %v3909_v12  ;;  %v3913_v38 = vadd.f32 %v3912_v44, %v3800_v54  ;;  %v3820_v8 = vadd.f32 %v7525_v50, %v7622_v7 }
 0x2c8   :  { %v3914_v2 = vpop.f32.mrf.mxu1 }
 0x2c9   :  { %6322 = vtanh.f32 %v4212_v35  ;;  %v4215_v5 = vmul.f32 0.5, %v3913_v38  ;;  %v3915_v26 = vadd.f32 %v3914_v2, %v3802_v33  ;;  %v7669_v33 = vpop.f32.mrf.mxu0 }
 0x2ca   :  { %v3916_v28 = vpop.f32.mrf.mxu1 }
 0x2cb   :  { %v4216_v20 = vmul.f32 0.5, %v3915_v26  ;;  %v3917_v16 = vadd.f32 %v3916_v28, %v3804_v9  ;;  %6324 = vtanh.f32 %v4215_v5 }
 0x2cc   :  { %v3918_v37 = vpop.f32.mrf.mxu1 }
 0x2cd   :  { %v4219_v30 = vmul.f32 0.5, %v3917_v16  ;;  %v3919_v63 = vadd.f32 %v3918_v37, %v3806_v47  ;;  %6326 = vtanh.f32 %v4216_v20  ;;  %v3822_v20 = vadd.f32 %v7529_v18, %v7629_v51 }
 0x2ce   :  { %v3824_v37 = vadd.f32 %v7537_v13, %v7622_v7  ;;  %v3826_v18 = vadd.f32 %v7540_v4, %v7629_v51  ;;  %v3832_v4 = vadd.f32 %v7550_v29, %v7629_v51 }
 0x2cf   :  { %v3922_v53 = vpop.f32.mrf.mxu1  ;;  %6328 = vtanh.f32 %v4219_v30  ;;  %v4220_v55 = vmul.f32 0.5, %v3919_v63 }
 0x2d0   :  { %v3923_v57 = vadd.f32 %v3922_v53, %v3810_v40  ;;  %v7675_v40 = vpop.f32.mrf.mxu0 }
 0x2d1   :  { %v3924_v45 = vpop.f32.mrf.mxu1  ;;  %6330 = vtanh.f32 %v4220_v55 }
 0x2d2   :  { %v3925_v24 = vadd.f32 %v3924_v45, %v3812_v43  ;;  %v6317_v41 = vpop.eup %6316  ;;  %v4223_v11 = vmul.f32 0.5, %v3923_v57 }
 0x2d3   :  { %v3926_v27 = vpop.f32.mrf.mxu1  ;;  %v6319_v10 = vpop.eup %6318  ;;  %v4336_v35 = vmul.f32 0.5, %v6317_v41 }
 0x2d4   :  { %v4224_v54 = vmul.f32 0.5, %v3925_v24  ;;  %v6321_v56 = vpop.eup %6320  ;;  %v3927_v12 = vadd.f32 %v3926_v27, %v3814_v34  ;;  %v4335_v9 = vmul.f32 0.5, %v6319_v10 }
 0x2d5   :  { %v3928_v44 = vpop.f32.mrf.mxu1  ;;  %v4339_v38 = vmul.f32 0.5, %v6321_v56  ;;  %v4400_v30 = vadd.f32 0.5, %v4336_v35 }
 0x2d6   :  { %6332 = vtanh.f32 %v4224_v54  ;;  %v3929_v2 = vadd.f32 %v3928_v44, %v3816_v17  ;;  %v6323_v25 = vpop.eup %6322  ;;  %v4227_v5 = vmul.f32 0.5, %v3927_v12  ;;  %v4399_v43 = vadd.f32 0.5, %v4335_v9  ;;  %v7679_v17 = vpop.f32.mrf.mxu0 }
 0x2d7   :  { %6334 = vtanh.f32 %v4223_v11  ;;  %v3932_v26 = vpop.f32.mrf.mxu1  ;;  %v4340_v28 = vmul.f32 0.5, %v6323_v25  ;;  %v4403_v50 = vadd.f32 0.5, %v4339_v38  ;;  %v3830_v44 = vadd.f32 %v7548_v31, %v7622_v7 }
 0x2d8   :  { %v4228_v23 = vmul.f32 0.5, %v3929_v2  ;;  %v3933_v47 = vadd.f32 %v3932_v26, %v3820_v8  ;;  %6336 = vtanh.f32 %v4227_v5  ;;  %v6325_v53 = vpop.eup %6324  ;;  %v3834_v5 = vadd.f32 %v7558_v61, %v7622_v7 }
 0x2d9   :  { %v3934_v16 = vpop.f32.mrf.mxu1  ;;  %v4404_v63 = vadd.f32 0.5, %v4340_v28  ;;  %v4463_v27 = vpack.c.bf16 %v4403_v50, %v4399_v43  ;;  %v4343_v2 = vmul.f32 0.5, %v6325_v53  ;;  %v3840_v61 = vadd.f32 %v7568_v59, %v7622_v7 }
 0x2da   :  { %6338 = vtanh.f32 %v4228_v23  ;;  %v4231_v55 = vmul.f32 0.5, %v3933_v47  ;;  %v3935_v57 = vadd.f32 %v3934_v16, %v3822_v20  ;;  %v6327_v24 = vpop.eup %6326  ;;  %v7687_v23 = vpop.f32.mrf.mxu0 }
 0x2db   :  { %v3936_v45 = vpop.f32.mrf.mxu1  ;;  %v4464_v34 = vpack.c.bf16 %v4404_v63, %v4400_v30  ;;  %v4344_v35 = vmul.f32 0.5, %v6327_v24  ;;  %v3836_v63 = vadd.f32 %v7560_v48, %v7629_v51  ;;  %v4407_v53 = vadd.f32 0.5, %v4343_v2 }
 0x2dc   :  { %v3937_v41 = vadd.f32 %v3936_v45, %v3824_v37  ;;  %v6329_v11 = vpop.eup %6328  ;;  %v4232_v10 = vmul.f32 0.5, %v3935_v57  ;;  %6340 = vtanh.f32 %v4231_v55  ;;  %v3842_v48 = vadd.f32 %v7576_v22, %v7629_v51 }
 0x2dd   :  { %v3938_v13 = vpop.f32.mrf.mxu1  ;;  %v4347_v54 = vmul.f32 0.5, %v6329_v11  ;;  %4790 = vmatprep.mubr.bf16.mxu0 %v4464_v34  ;;  %v4408_v50 = vadd.f32 0.5, %v4344_v35 }
 0x2de   :  { %v4235_v56 = vmul.f32 0.5, %v3937_v41  ;;  %v3939_v8 = vadd.f32 %v3938_v13, %v3826_v18  ;;  %v6331_v12 = vpop.eup %6330  ;;  %6342 = vtanh.f32 %v4232_v10  ;;  %4791 = vmatmul.mubr.bf16.vlgmr.msra.gmra.mxu0 %v4463_v27  ;;  %v7693_v41 = vpop.f32.mrf.mxu0 }
 0x2df   :  { %v3942_v38 = vpop.f32.mrf.mxu1  ;;  %v4348_v25 = vmul.f32 0.5, %v6331_v12  ;;  %v4411_v47 = vadd.f32 0.5, %v4347_v54 }
 0x2e0   :  { %6344 = vtanh.f32 %v4235_v56  ;;  %v4236_v9 = vmul.f32 0.5, %v3939_v8  ;;  %v3943_v26 = vadd.f32 %v3942_v38, %v3830_v44  ;;  %v3844_v44 = vadd.f32 %v7584_v52, %v7622_v7  ;;  %v7699_v2 = vpop.f32.mrf.mxu0 }
 0x2e1   :  { %v3944_v28 = vpop.f32.mrf.mxu1  ;;  %v4412_v31 = vadd.f32 0.5, %v4348_v25  ;;  %v4467_v27 = vpack.c.bf16 %v4411_v47, %v4407_v53 }
 0x2e2   :  { %6346 = vtanh.f32 %v4236_v9  ;;  %v3945_v20 = vadd.f32 %v3944_v28, %v3832_v4  ;;  %v4239_v16 = vmul.f32 0.5, %v3943_v26 }
 0x2e3   :  { %v6333_v29 = vpop.eup %6332  ;;  %v3946_v37 = vpop.f32.mrf.mxu1  ;;  %v4468_v24 = vpack.c.bf16 %v4412_v31, %v4408_v50  ;;  %v3846_v31 = vadd.f32 %v7592_v3, %v7629_v51  ;;  %v3852_v3 = vadd.f32 %v7602_v0, %v7629_v51 }
 0x2e4   :  { %v6335_v30 = vpop.eup %6334  ;;  %v4240_v43 = vmul.f32 0.5, %v3945_v20  ;;  %v3947_v55 = vadd.f32 %v3946_v37, %v3834_v5  ;;  %v4352_v57 = vmul.f32 0.5, %v6333_v29  ;;  %6348 = vtanh.f32 %v4239_v16 }
 0x2e5   :  { %v3948_v45 = vpop.f32.mrf.mxu1  ;;  %v6337_v18 = vpop.eup %6336  ;;  %v4351_v13 = vmul.f32 0.5, %v6335_v30  ;;  %4798 = vmatprep.mubr.bf16.mxu0 %v4468_v24 }
 0x2e6   :  { %v4243_v34 = vmul.f32 0.5, %v3947_v55  ;;  %v3949_v11 = vadd.f32 %v3948_v45, %v3836_v63  ;;  %v4355_v54 = vmul.f32 0.5, %v6337_v18  ;;  %6350 = vtanh.f32 %v4240_v43  ;;  %4799 = vmatmul.mubr.bf16.gmra.mxu0 %v4467_v27  ;;  %v7703_v63 = vpop.f32.mrf.mxu0 }
 0x2e7   :  { %v6339_v10 = vpop.eup %6338  ;;  %v3952_v56 = vpop.f32.mrf.mxu1  ;;  %v4416_v4 = vadd.f32 0.5, %v4352_v57  ;;  %v4415_v26 = vadd.f32 0.5, %v4351_v13  ;;  %v3850_v57 = vadd.f32 %v7600_v36, %v7622_v7 }
 0x2e8   :  { %v4356_v59 = vmul.f32 0.5, %v6339_v10  ;;  %6352 = vtanh.f32 %v4243_v34  ;;  %v4244_v8 = vmul.f32 0.5, %v3949_v11  ;;  %v3953_v12 = vadd.f32 %v3952_v56, %v3840_v61  ;;  %v7711_v13 = vpop.f32.mrf.mxu0 }
 0x2e9   :  { %v4419_v35 = vadd.f32 0.5, %v4355_v54  ;;  %v3954_v38 = vpop.f32.mrf.mxu1  ;;  %v6341_v5 = vpop.eup %6340  ;;  %v3854_v11 = vadd.f32 %v7604_v42, %v7622_v7  ;;  %v3856_v42 = vadd.f32 %v7606_v62, %v7629_v51 }
 0x2ea   :  { %v4420_v25 = vadd.f32 0.5, %v4356_v59  ;;  %6354 = vtanh.f32 %v4244_v8  ;;  %v4247_v22 = vmul.f32 0.5, %v3953_v12  ;;  %v3955_v9 = vadd.f32 %v3954_v38, %v3842_v48 }
 0x2eb   :  { %v3956_v28 = vpop.f32.mrf.mxu1  ;;  %v6343_v47 = vpop.eup %6342  ;;  %v4471_v30 = vpack.c.bf16 %v4419_v35, %v4415_v26  ;;  %v4359_v24 = vmul.f32 0.5, %v6341_v5 }
 0x2ec   :  { %v4248_v20 = vmul.f32 0.5, %v3955_v9  ;;  %v3957_v29 = vadd.f32 %v3956_v28, %v3844_v44  ;;  %v4472_v50 = vpack.c.bf16 %v4420_v25, %v4416_v4  ;;  %v4360_v16 = vmul.f32 0.5, %v6343_v47  ;;  %v7717_v5 = vpop.f32.mrf.mxu0 }
 0x2ed   :  { %v6345_v52 = vpop.eup %6344  ;;  %v3958_v37 = vpop.f32.mrf.mxu1  ;;  %6356 = vtanh.f32 %v4247_v22  ;;  %v4423_v44 = vadd.f32 0.5, %v4359_v24  ;;  %v3860_v22 = vadd.f32 %v7608_v58, %v7622_v7  ;;  %v3864_v24 = vadd.f32 %v7612_v46, %v7622_v7 }
 0x2ee   :  { %v4363_v53 = vmul.f32 0.5, %v6345_v52  ;;  %v4251_v43 = vmul.f32 0.5, %v3957_v29  ;;  %v3959_v55 = vadd.f32 %v3958_v37, %v3846_v31  ;;  %4806 = vmatprep.mubr.bf16.mxu0 %v4472_v50  ;;  %6358 = vtanh.f32 %v4248_v20 }
 0x2ef   :  { %v6347_v61 = vpop.eup %6346  ;;  %v3962_v45 = vpop.f32.mrf.mxu1  ;;  %4807 = vmatmul.mubr.bf16.gmra.mxu0 %v4471_v30  ;;  %v4424_v27 = vadd.f32 0.5, %v4360_v16  ;;  %v3862_v20 = vadd.f32 %v7610_v1, %v7629_v51  ;;  %v7930_v37 = vsub.s32 2, %v7927_v32 }
 0x2f0   :  { %v4364_v18 = vmul.f32 0.5, %v6347_v61  ;;  %6360 = vtanh.f32 %v4251_v43  ;;  %v4252_v34 = vmul.f32 0.5, %v3959_v55  ;;  %v3963_v10 = vadd.f32 %v3962_v45, %v3850_v57  ;;  %v7726_v55 = vpop.f32.mrf.mxu0 }
 0x2f1   :  { %v3964_v48 = vpop.f32.mrf.mxu1  ;;  %v4427_v54 = vadd.f32 0.5, %v4363_v53  ;;  %v6349_v0 = vpop.eup %6348  ;;  %v7724_v30 = vrot.slane %v7617_v39, %v7930_v37 }
 0x2f2   :  { %v4428_v36 = vadd.f32 0.5, %v4364_v18  ;;  %6362 = vtanh.f32 %v4252_v34  ;;  %v3965_v56 = vadd.f32 %v3964_v48, %v3852_v3  ;;  %v4255_v59 = vmul.f32 0.5, %v3963_v10 }
 0x2f3   :  { %v3966_v8 = vpop.f32.mrf.mxu1  ;;  %v6351_v12 = vpop.eup %6350  ;;  %v4475_v47 = vpack.c.bf16 %v4427_v54, %v4423_v44  ;;  %v4367_v62 = vmul.f32 0.5, %v6349_v0  ;;  %v7931_v18 = vsub.s32 3, %v7927_v32  ;;  %v3866_v48 = vadd.f32 %v7624_v14, %v7629_v51 }
 0x2f4   :  { %v4256_v4 = vmul.f32 0.5, %v3965_v56  ;;  %v3967_v35 = vadd.f32 %v3966_v8, %v3854_v11  ;;  %v4476_v38 = vpack.c.bf16 %v4428_v36, %v4424_v27  ;;  %6364 = vtanh.f32 %v4255_v59  ;;  %v7739_v32 = vpop.f32.mrf.mxu0 }
 0x2f5   :  { %v6353_v25 = vpop.eup %6352  ;;  %v3968_v9 = vpop.f32.mrf.mxu1  ;;  %v4368_v29 = vmul.f32 0.5, %v6351_v12  ;;  %v7733_v34 = vrot.slane %v7617_v39, %v7931_v18  ;;  %v4431_v54 = vadd.f32 0.5, %v4367_v62  ;;  %v4016_v0 = vadd.f32 %v7633_v15, %v7724_v30 }
 0x2f6   :  { %v4371_v26 = vmul.f32 0.5, %v6353_v25  ;;  %v4259_v28 = vmul.f32 0.5, %v3967_v35  ;;  %4814 = vmatprep.mubr.bf16.mxu0 %v4476_v38  ;;  %6366 = vtanh.f32 %v4256_v4  ;;  %v3969_v50 = vadd.f32 %v3968_v9, %v3856_v42 }
 0x2f7   :  { %v6355_v31 = vpop.eup %6354  ;;  %v3972_v52 = vpop.f32.mrf.mxu1  ;;  %4815 = vmatmul.mubr.bf16.gmra.mxu0 %v4475_v47  ;;  %v4432_v11 = vadd.f32 0.5, %v4368_v29  ;;  %v4018_v4 = vadd.f32 %v7639_v6, %v7733_v34 }
 0x2f8   :  { %v4372_v16 = vmul.f32 0.5, %v6355_v31  ;;  %6368 = vtanh.f32 %v4259_v28  ;;  %v3973_v58 = vadd.f32 %v3972_v52, %v3860_v22  ;;  %v4260_v53 = vmul.f32 0.5, %v3969_v50  ;;  %v7745_v28 = vpop.f32.mrf.mxu0 }
 0x2f9   :  { %v3974_v43 = vpop.f32.mrf.mxu1  ;;  %v4435_v61 = vadd.f32 0.5, %v4371_v26  ;;  %v4020_v22 = vadd.f32 %v7645_v49, %v7724_v30  ;;  %v4022_v49 = vadd.f32 %v7651_v19, %v7733_v34  ;;  %v4028_v19 = vadd.f32 %v7661_v60, %v7733_v34 }
 0x2fa   :  { %v4436_v1 = vadd.f32 0.5, %v4372_v16  ;;  %v4263_v57 = vmul.f32 0.5, %v3973_v58  ;;  %v3975_v3 = vadd.f32 %v3974_v43, %v3862_v20  ;;  %v6357_v45 = vpop.eup %6356  ;;  %6370 = vtanh.f32 %v4260_v53 }
 0x2fb   :  { %v3976_v27 = vpop.f32.mrf.mxu1  ;;  %v6359_v10 = vpop.eup %6358  ;;  %v4479_v12 = vpack.c.bf16 %v4435_v61, %v4431_v54  ;;  %v4375_v38 = vmul.f32 0.5, %v6357_v45  ;;  %v4026_v53 = vadd.f32 %v7657_v21, %v7724_v30 }
 0x2fc   :  { %v4264_v36 = vmul.f32 0.5, %v3975_v3  ;;  %v3977_v59 = vadd.f32 %v3976_v27, %v3864_v24  ;;  %v4480_v7 = vpack.c.bf16 %v4436_v1, %v4432_v11  ;;  %6372 = vtanh.f32 %v4263_v57  ;;  %v7751_v1 = vpop.f32.mrf.mxu0 }
 0x2fd   :  { %v6361_v56 = vpop.eup %6360  ;;  %v3978_v46 = vpop.f32.mrf.mxu1  ;;  %v4376_v14 = vmul.f32 0.5, %v6359_v10  ;;  %v4439_v62 = vadd.f32 0.5, %v4375_v38 }
 0x2fe   :  { %v4379_v39 = vmul.f32 0.5, %v6361_v56  ;;  %v3979_v8 = vadd.f32 %v3978_v46, %v3866_v48  ;;  %6374 = vtanh.f32 %v4264_v36  ;;  %v4267_v51 = vmul.f32 0.5, %v3977_v59  ;;  %4822 = vmatprep.mubr.bf16.mxu0 %v4480_v7 }
 0x2ff   :  { %v6363_v44 = vpop.eup %6362  ;;  %v4128_v35 = vpop.f32.mrf.mxu1  ;;  %4823 = vmatmul.mubr.bf16.gmra.mxu0 %v4479_v12  ;;  %v4440_v29 = vadd.f32 0.5, %v4376_v14  ;;  %v4030_v56 = vadd.f32 %v7669_v33, %v7724_v30 }
 0x300   :  { %v4380_v15 = vmul.f32 0.5, %v6363_v44  ;;  %v4268_v25 = vmul.f32 0.5, %v3979_v8  ;;  %v4129_v42 = vadd.f32 %v4128_v35, %v4016_v0  ;;  %v4443_v9 = vadd.f32 0.5, %v4379_v39  ;;  %v7757_v0 = vpop.f32.mrf.mxu0 }
 0x301   :  { %6376 = vtanh.f32 %v4267_v51  ;;  %v4130_v26 = vpop.f32.mrf.mxu1  ;;  %v6365_v20 = vpop.eup %6364  ;;  %v4036_v35 = vadd.f32 %v7679_v17, %v7724_v30 }
 0x302   :  { %v4444_v47 = vadd.f32 0.5, %v4380_v15  ;;  %6378 = vtanh.f32 %v4268_v25  ;;  %v4209_v6 = vmul.f32 0.5, %v4129_v42  ;;  %v4131_v31 = vadd.f32 %v4130_v26, %v4018_v4  ;;  %v7763_v42 = vpop.f32.mrf.mxu0 }
 0x303   :  { %v4132_v50 = vpop.f32.mrf.mxu1  ;;  %v6367_v52 = vpop.eup %6366  ;;  %v4483_v45 = vpack.c.bf16 %v4443_v9, %v4439_v62  ;;  %v4383_v10 = vmul.f32 0.5, %v6365_v20  ;;  %v4032_v4 = vadd.f32 %v7675_v40, %v7733_v34 }
 0x304   :  { %v4210_v16 = vmul.f32 0.5, %v4131_v31  ;;  %v4133_v58 = vadd.f32 %v4132_v50, %v4020_v22  ;;  %v4484_v61 = vpack.c.bf16 %v4444_v47, %v4440_v29  ;;  %6380 = vtanh.f32 %v4209_v6 }
 0x305   :  { %v6369_v37 = vpop.eup %6368  ;;  %v4134_v43 = vpop.f32.mrf.mxu1  ;;  %v4384_v24 = vmul.f32 0.5, %v6367_v52  ;;  %v4447_v14 = vadd.f32 0.5, %v4383_v10  ;;  %v4038_v52 = vadd.f32 %v7687_v23, %v7733_v34  ;;  %v4042_v23 = vadd.f32 %v7699_v2, %v7733_v34 }
 0x306   :  { %v4387_v57 = vmul.f32 0.5, %v6369_v37  ;;  %v4213_v3 = vmul.f32 0.5, %v4133_v58  ;;  %6382 = vtanh.f32 %v4210_v16  ;;  %v4135_v18 = vadd.f32 %v4134_v43, %v4022_v49  ;;  %4830 = vmatprep.mubr.bf16.mxu0 %v4484_v61  ;;  %v7769_v37 = vpop.f32.mrf.mxu0 }
 0x307   :  { %v4138_v11 = vpop.f32.mrf.mxu1  ;;  %v6371_v27 = vpop.eup %6370  ;;  %4831 = vmatmul.mubr.bf16.gmra.mxu0 %v4483_v45  ;;  %v4448_v39 = vadd.f32 0.5, %v4384_v24  ;;  %v4040_v58 = vadd.f32 %v7693_v41, %v7724_v30 }
 0x308   :  { %6384 = vtanh.f32 %v4213_v3  ;;  %v4139_v21 = vadd.f32 %v4138_v11, %v4026_v53  ;;  %v4388_v48 = vmul.f32 0.5, %v6371_v27  ;;  %v4214_v54 = vmul.f32 0.5, %v4135_v18 }
 0x309   :  { %v4140_v36 = vpop.f32.mrf.mxu1  ;;  %v4451_v59 = vadd.f32 0.5, %v4387_v57  ;;  %v6373_v7 = vpop.eup %6372  ;;  %v4046_v27 = vadd.f32 %v7703_v63, %v7724_v30  ;;  %v4048_v63 = vadd.f32 %v7711_v13, %v7733_v34  ;;  %v4052_v13 = vadd.f32 %v7726_v55, %v7733_v34 }
 0x30a   :  { %v4141_v46 = vadd.f32 %v4140_v36, %v4028_v19  ;;  %v4452_v8 = vadd.f32 0.5, %v4388_v48  ;;  %6386 = vtanh.f32 %v4214_v54  ;;  %v4217_v12 = vmul.f32 0.5, %v4139_v21  ;;  %v7775_v48 = vpop.f32.mrf.mxu0 }
 0x30b   :  { %v4142_v60 = vpop.f32.mrf.mxu1  ;;  %v6375_v44 = vpop.eup %6374  ;;  %v4391_v22 = vmul.f32 0.5, %v6373_v7  ;;  %v4487_v26 = vpack.c.bf16 %v4451_v59, %v4447_v14 }
 0x30c   :  { %v4218_v51 = vmul.f32 0.5, %v4141_v46  ;;  %v4143_v33 = vadd.f32 %v4142_v60, %v4030_v56  ;;  %v4488_v15 = vpack.c.bf16 %v4452_v8, %v4448_v39  ;;  %v4392_v6 = vmul.f32 0.5, %v6375_v44  ;;  %v7781_v14 = vpop.f32.mrf.mxu0 }
 0x30d   :  { %v4144_v38 = vpop.f32.mrf.mxu1  ;;  %v4455_v61 = vadd.f32 0.5, %v4391_v22 }
 0x30e   :  { %v6377_v25 = vpop.eup %6376  ;;  %6388 = vtanh.f32 %v4218_v51  ;;  %v4145_v9 = vadd.f32 %v4144_v38, %v4032_v4  ;;  %v4221_v40 = vmul.f32 0.5, %v4143_v33  ;;  %4838 = vmatprep.mubr.bf16.mxu0 %v4488_v15  ;;  %v4456_v57 = vadd.f32 0.5, %v4392_v6 }
 0x30f   :  { %v6379_v47 = vpop.eup %6378  ;;  %v4395_v31 = vmul.f32 0.5, %v6377_v25  ;;  %6390 = vtanh.f32 %v4217_v12  ;;  %v4148_v20 = vpop.f32.mrf.mxu1  ;;  %4839 = vmatmul.mubr.bf16.gmra.mxu0 %v4487_v26  ;;  %v4050_v4 = vadd.f32 %v7717_v5, %v7724_v30 }
 0x310   :  { %v4396_v29 = vmul.f32 0.5, %v6379_v47  ;;  %v4222_v50 = vmul.f32 0.5, %v4145_v9  ;;  %v4149_v17 = vadd.f32 %v4148_v20, %v4036_v35  ;;  %6392 = vtanh.f32 %v4221_v40 }
 0x311   :  { %v4459_v62 = vadd.f32 0.5, %v4395_v31  ;;  %v4150_v16 = vpop.f32.mrf.mxu1  ;;  %v6381_v43 = vpop.eup %6380  ;;  %v4056_v47 = vadd.f32 %v7739_v32, %v7724_v30 }
 0x312   :  { %v4460_v49 = vadd.f32 0.5, %v4396_v29  ;;  %6394 = vtanh.f32 %v4222_v50  ;;  %v4225_v53 = vmul.f32 0.5, %v4149_v17  ;;  %v4151_v3 = vadd.f32 %v4150_v16, %v4038_v52  ;;  %v7787_v29 = vpop.f32.mrf.mxu0 }
 0x313   :  { %v4152_v45 = vpop.f32.mrf.mxu1  ;;  %v6383_v24 = vpop.eup %6382  ;;  %v4491_v21 = vpack.c.bf16 %v4459_v62, %v4455_v61  ;;  %v4337_v59 = vmul.f32 0.5, %v6381_v43  ;;  %v4058_v43 = vadd.f32 %v7745_v28, %v7733_v34  ;;  %v4060_v61 = vadd.f32 %v7751_v1, %v7724_v30 }
 0x314   :  { %v4153_v18 = vadd.f32 %v4152_v45, %v4040_v58  ;;  %v4226_v41 = vmul.f32 0.5, %v4151_v3  ;;  %v4492_v10 = vpack.c.bf16 %v4460_v49, %v4456_v57  ;;  %6396 = vtanh.f32 %v4225_v53  ;;  %v7793_v45 = vpop.f32.mrf.mxu0 }
 0x315   :  { %v6385_v11 = vpop.eup %6384  ;;  %v4154_v19 = vpop.f32.mrf.mxu1  ;;  %v4338_v46 = vmul.f32 0.5, %v6383_v24  ;;  %v4401_v33 = vadd.f32 0.5, %v4337_v59 }
 0x316   :  { %v4341_v54 = vmul.f32 0.5, %v6385_v11  ;;  %v4229_v36 = vmul.f32 0.5, %v4153_v18  ;;  %v4155_v56 = vadd.f32 %v4154_v19, %v4042_v23  ;;  %6398 = vtanh.f32 %v4226_v41  ;;  %4846 = vmatprep.mubr.bf16.mxu0 %v4492_v10 }
 0x317   :  { %v4158_v2 = vpop.f32.mrf.mxu1  ;;  %v6387_v7 = vpop.eup %6386  ;;  %4847 = vmatmul.mubr.bf16.gmra.mxu0 %v4491_v21  ;;  %v4402_v38 = vadd.f32 0.5, %v4338_v46  ;;  %v4062_v21 = vadd.f32 %v7757_v0, %v7733_v34 }
 0x318   :  { %6400 = vtanh.f32 %v4229_v36  ;;  %v4230_v39 = vmul.f32 0.5, %v4155_v56  ;;  %v4159_v8 = vadd.f32 %v4158_v2, %v4046_v27  ;;  %v4405_v12 = vadd.f32 0.5, %v4341_v54  ;;  %v4079_v46 = vpop.f32.mrf.mxu0 }
 0x319   :  { %v4342_v60 = vmul.f32 0.5, %v6387_v7  ;;  %v4160_v44 = vpop.f32.mrf.mxu1 }
 0x31a   :  { %6402 = vtanh.f32 %v4230_v39  ;;  %v4233_v51 = vmul.f32 0.5, %v4159_v8  ;;  %v4161_v25 = vadd.f32 %v4160_v44, %v4048_v63  ;;  %v4465_v6 = vpack.c.bf16 %v4405_v12, %v4401_v33 }
 0x31b   :  { %v6389_v35 = vpop.eup %6388  ;;  %v4406_v15 = vadd.f32 0.5, %v4342_v60  ;;  %v4162_v22 = vpop.f32.mrf.mxu1  ;;  %v4066_v12 = vadd.f32 %v7763_v42, %v7724_v30  ;;  %v4068_v44 = vadd.f32 %v7769_v37, %v7733_v34 }
 0x31c   :  { %v6391_v9 = vpop.eup %6390  ;;  %v4163_v26 = vadd.f32 %v4162_v22, %v4050_v4  ;;  %v4234_v5 = vmul.f32 0.5, %v4161_v25  ;;  %v4346_v50 = vmul.f32 0.5, %v6389_v35  ;;  %6404 = vtanh.f32 %v4233_v51  ;;  %v4081_v25 = vpop.f32.mrf.mxu0 }
 0x31d   :  { %v4164_v31 = vpop.f32.mrf.mxu1  ;;  %v4466_v40 = vpack.c.bf16 %v4406_v15, %v4402_v38  ;;  %v6393_v20 = vpop.eup %6392  ;;  %v4345_v16 = vmul.f32 0.5, %v6391_v9  ;;  %v4070_v35 = vadd.f32 %v7775_v48, %v7724_v30 }
 0x31e   :  { %v4237_v17 = vmul.f32 0.5, %v4163_v26  ;;  %v4165_v52 = vadd.f32 %v4164_v31, %v4052_v13  ;;  %v4349_v58 = vmul.f32 0.5, %v6393_v20  ;;  %6406 = vtanh.f32 %v4234_v5 }
 0x31f   :  { %v6395_v62 = vpop.eup %6394  ;;  %4887 = vmatprep.mubr.bf16.mxu1 %v4466_v40  ;;  %v4168_v55 = vpop.f32.mrf.mxu1  ;;  %v4410_v24 = vadd.f32 0.5, %v4346_v50  ;;  %v4409_v27 = vadd.f32 0.5, %v4345_v16  ;;  %v4072_v5 = vadd.f32 %v7781_v14, %v7733_v34 }
 0x320   :  { %v4350_v49 = vmul.f32 0.5, %v6395_v62  ;;  %6408 = vtanh.f32 %v4237_v17  ;;  %v4238_v32 = vmul.f32 0.5, %v4165_v52  ;;  %v4169_v53 = vadd.f32 %v4168_v55, %v4056_v47  ;;  %4888 = vmatmul.mubr.bf16.vlgmr.msra.gmra.mxu1 %v4465_v6  ;;  %v4085_v62 = vpop.f32.mrf.mxu0 }
 0x321   :  { %v4413_v57 = vadd.f32 0.5, %v4349_v58  ;;  %v4170_v3 = vpop.f32.mrf.mxu1  ;;  %v6397_v11 = vpop.eup %6396 }
 0x322   :  { %v4414_v23 = vadd.f32 0.5, %v4350_v49  ;;  %6410 = vtanh.f32 %v4238_v32  ;;  %v4241_v18 = vmul.f32 0.5, %v4169_v53  ;;  %v4171_v41 = vadd.f32 %v4170_v3, %v4058_v43 }
 0x323   :  { %v4172_v19 = vpop.f32.mrf.mxu1  ;;  %v6399_v10 = vpop.eup %6398  ;;  %v4469_v59 = vpack.c.bf16 %v4413_v57, %v4409_v27  ;;  %v4353_v60 = vmul.f32 0.5, %v6397_v11  ;;  %v4076_v32 = vadd.f32 %v7787_v29, %v7724_v30  ;;  %v4078_v43 = vadd.f32 %v7793_v45, %v7733_v34 }
 0x324   :  { %v4173_v28 = vadd.f32 %v4172_v19, %v4060_v61  ;;  %v4470_v54 = vpack.c.bf16 %v4414_v23, %v4410_v24  ;;  %6412 = vtanh.f32 %v4241_v18  ;;  %v4242_v1 = vmul.f32 0.5, %v4171_v41  ;;  %v4087_v27 = vpop.f32.mrf.mxu0 }
 0x325   :  { %v6401_v36 = vpop.eup %6400  ;;  %v4174_v56 = vpop.f32.mrf.mxu1  ;;  %v4354_v2 = vmul.f32 0.5, %v6399_v10  ;;  %v4417_v26 = vadd.f32 0.5, %v4353_v60  ;;  %v4080_v3 = vadd.f32 %v4079_v46, %v7724_v30  ;;  %v4082_v45 = vadd.f32 %v4081_v25, %v7733_v34 }
 0x326   :  { %v4357_v7 = vmul.f32 0.5, %v6401_v36  ;;  %v4245_v39 = vmul.f32 0.5, %v4173_v28  ;;  %v4175_v8 = vadd.f32 %v4174_v56, %v4062_v21  ;;  %4895 = vmatprep.mubr.bf16.mxu1 %v4470_v54  ;;  %6414 = vtanh.f32 %v4242_v1 }
 0x327   :  { %v6403_v63 = vpop.eup %6402  ;;  %v4178_v0 = vpop.f32.mrf.mxu1  ;;  %v4418_v22 = vadd.f32 0.5, %v4354_v2 }
 0x328   :  { %v4358_v4 = vmul.f32 0.5, %v6403_v63  ;;  %6416 = vtanh.f32 %v4245_v39  ;;  %v4246_v51 = vmul.f32 0.5, %v4175_v8  ;;  %4896 = vmatmul.mubr.bf16.gmra.mxu1 %v4469_v59  ;;  %v4421_v33 = vadd.f32 0.5, %v4357_v7  ;;  %v4089_v39 = vpop.f32.mrf.mxu0 }
 0x329   :  { %v4179_v38 = vadd.f32 %v4178_v0, %v4066_v12  ;;  %v4180_v15 = vpop.f32.mrf.mxu1  ;;  %v6405_v13 = vpop.eup %6404  ;;  %v4086_v0 = vadd.f32 %v4085_v62, %v7724_v30 }
 0x32a   :  { %v4422_v9 = vadd.f32 0.5, %v4358_v4  ;;  %6418 = vtanh.f32 %v4246_v51  ;;  %v4181_v42 = vadd.f32 %v4180_v15, %v4068_v44  ;;  %v4473_v52 = vpack.c.bf16 %v4421_v33, %v4417_v26 }
 0x32b   :  { %v4249_v47 = vmul.f32 0.5, %v4179_v38  ;;  %v4182_v6 = vpop.f32.mrf.mxu1  ;;  %v6407_v37 = vpop.eup %6406  ;;  %v4361_v53 = vmul.f32 0.5, %v6405_v13  ;;  %v4088_v51 = vadd.f32 %v4087_v27, %v7733_v34  ;;  %v4090_v38 = vadd.f32 %v4089_v39, %v7724_v30 }
 0x32c   :  { %v4250_v31 = vmul.f32 0.5, %v4181_v42  ;;  %v4183_v40 = vadd.f32 %v4182_v6, %v4070_v35  ;;  %v4474_v20 = vpack.c.bf16 %v4422_v9, %v4418_v22  ;;  %v4362_v50 = vmul.f32 0.5, %v6407_v37  ;;  %v4091_v9 = vpop.f32.mrf.mxu0 }
 0x32d   :  { %v6409_v48 = vpop.eup %6408  ;;  %v4184_v17 = vpop.f32.mrf.mxu1  ;;  %v4425_v10 = vadd.f32 0.5, %v4361_v53 }
 0x32e   :  { %v4365_v16 = vmul.f32 0.5, %v6409_v48  ;;  %6420 = vtanh.f32 %v4250_v31  ;;  %v4253_v58 = vmul.f32 0.5, %v4183_v40  ;;  %v4185_v55 = vadd.f32 %v4184_v17, %v4072_v5  ;;  %4903 = vmatprep.mubr.bf16.mxu1 %v4474_v20 }
 0x32f   :  { %v6411_v49 = vpop.eup %6410  ;;  %6422 = vtanh.f32 %v4249_v47  ;;  %v4188_v14 = vpop.f32.mrf.mxu1  ;;  %v4426_v41 = vadd.f32 0.5, %v4362_v50  ;;  %v4092_v17 = vadd.f32 %v4091_v9, %v7733_v34 }
 0x330   :  { %v4366_v61 = vmul.f32 0.5, %v6411_v49  ;;  %6424 = vtanh.f32 %v4253_v58  ;;  %v4254_v57 = vmul.f32 0.5, %v4185_v55  ;;  %4904 = vmatmul.mubr.bf16.gmra.mxu1 %v4473_v52  ;;  %v4429_v24 = vadd.f32 0.5, %v4365_v16 }
 0x331   :  { %v4189_v23 = vadd.f32 %v4188_v14, %v4076_v32  ;;  %v4190_v18 = vpop.f32.mrf.mxu1  ;;  %v6413_v11 = vpop.eup %6412 }
 0x332   :  { %v4430_v19 = vadd.f32 0.5, %v4366_v61  ;;  %6426 = vtanh.f32 %v4254_v57  ;;  %v4191_v29 = vadd.f32 %v4190_v18, %v4078_v43  ;;  %v4477_v7 = vpack.c.bf16 %v4429_v24, %v4425_v10 }
 0x333   :  { %v4257_v21 = vmul.f32 0.5, %v4189_v23  ;;  %v4192_v28 = vpop.f32.mrf.mxu1  ;;  %v6415_v54 = vpop.eup %6414  ;;  %v4369_v44 = vmul.f32 0.5, %v6413_v11 }
 0x334   :  { %v4258_v36 = vmul.f32 0.5, %v4191_v29  ;;  %v4193_v1 = vadd.f32 %v4192_v28, %v4080_v3  ;;  %v4478_v56 = vpack.c.bf16 %v4430_v19, %v4426_v41  ;;  %v4370_v46 = vmul.f32 0.5, %v6415_v54 }
 0x335   :  { %v6417_v59 = vpop.eup %6416  ;;  %v4194_v2 = vpop.f32.mrf.mxu1  ;;  %v4433_v6 = vadd.f32 0.5, %v4369_v44 }
 0x336   :  { %v4373_v8 = vmul.f32 0.5, %v6417_v59  ;;  %6428 = vtanh.f32 %v4258_v36  ;;  %v4261_v63 = vmul.f32 0.5, %v4193_v1  ;;  %v4195_v12 = vadd.f32 %v4194_v2, %v4082_v45  ;;  %4911 = vmatprep.mubr.bf16.mxu1 %v4478_v56 }
 0x337   :  { %v6419_v60 = vpop.eup %6418  ;;  %6430 = vtanh.f32 %v4257_v21  ;;  %v4198_v4 = vpop.f32.mrf.mxu1  ;;  %v4434_v42 = vadd.f32 0.5, %v4370_v46 }
 0x338   :  { %v4374_v35 = vmul.f32 0.5, %v6419_v60  ;;  %6432 = vtanh.f32 %v4261_v63  ;;  %v4262_v33 = vmul.f32 0.5, %v4195_v12  ;;  %4912 = vmatmul.mubr.bf16.gmra.mxu1 %v4477_v7  ;;  %v4437_v15 = vadd.f32 0.5, %v4373_v8 }
 0x339   :  { %v4199_v25 = vadd.f32 %v4198_v4, %v4086_v0  ;;  %v4200_v22 = vpop.f32.mrf.mxu1 }
 0x33a   :  { %v4438_v13 = vadd.f32 0.5, %v4374_v35  ;;  %6434 = vtanh.f32 %v4262_v33  ;;  %v4201_v26 = vadd.f32 %v4200_v22, %v4088_v51  ;;  %v4481_v52 = vpack.c.bf16 %v4437_v15, %v4433_v6 }
 0x33b   :  { %v6421_v47 = vpop.eup %6420  ;;  %v4265_v37 = vmul.f32 0.5, %v4199_v25  ;;  %v4202_v5 = vpop.f32.mrf.mxu1 }
 0x33c   :  { %v6423_v31 = vpop.eup %6422  ;;  %v4266_v40 = vmul.f32 0.5, %v4201_v26  ;;  %v4203_v20 = vadd.f32 %v4202_v5, %v4090_v38  ;;  %v4482_v48 = vpack.c.bf16 %v4438_v13, %v4434_v42  ;;  %v4378_v62 = vmul.f32 0.5, %v6421_v47 }
 0x33d   :  { %v6425_v50 = vpop.eup %6424  ;;  %v4204_v30 = vpop.f32.mrf.mxu1  ;;  %6436 = vtanh.f32 %v4265_v37  ;;  %v4377_v32 = vmul.f32 0.5, %v6423_v31 }
 0x33e   :  { %v4381_v16 = vmul.f32 0.5, %v6425_v50  ;;  %v4269_v58 = vmul.f32 0.5, %v4203_v20  ;;  %4919 = vmatprep.mubr.bf16.mxu1 %v4482_v48  ;;  %6438 = vtanh.f32 %v4266_v40  ;;  %v4205_v49 = vadd.f32 %v4204_v30, %v4092_v17  ;;  %v7818_v50 = vld [vmem:[%s7890_s6] ss:$0 sm:$0xff] }
 0x33f   :  { %v6427_v55 = vpop.eup %6426  ;;  %v4442_v43 = vadd.f32 0.5, %v4378_v62  ;;  %v4441_v24 = vadd.f32 0.5, %v4377_v32 }
 0x340   :  { %v4382_v53 = vmul.f32 0.5, %v6427_v55  ;;  %6440 = vtanh.f32 %v4269_v58  ;;  %4920 = vmatmul.mubr.bf16.gmra.mxu1 %v4481_v52  ;;  %v4270_v14 = vmul.f32 0.5, %v4205_v49  ;;  %v4445_v61 = vadd.f32 0.5, %v4381_v16 }
 0x342   :  { %v4446_v57 = vadd.f32 0.5, %v4382_v53  ;;  %6442 = vtanh.f32 %v4270_v14  ;;  %v4485_v41 = vpack.c.bf16 %v4445_v61, %v4441_v24 }
 0x343   :  { %v6429_v3 = vpop.eup %6428 }
 0x344   :  { %v6431_v34 = vpop.eup %6430  ;;  %v4486_v23 = vpack.c.bf16 %v4446_v57, %v4442_v43  ;;  %v4386_v11 = vmul.f32 0.5, %v6429_v3 }
 0x345   :  { %v6433_v18 = vpop.eup %6432  ;;  %v4385_v29 = vmul.f32 0.5, %v6431_v34 }
 0x346   :  { %v4389_v27 = vmul.f32 0.5, %v6433_v18  ;;  %4927 = vmatprep.mubr.bf16.mxu1 %v4486_v23  ;;  %v4450_v21 = vadd.f32 0.5, %v4386_v11 }
 0x347   :  { %v6435_v19 = vpop.eup %6434  ;;  %v4449_v1 = vadd.f32 0.5, %v4385_v29 }
 0x348   :  { %v4390_v10 = vmul.f32 0.5, %v6435_v19  ;;  %4928 = vmatmul.mubr.bf16.gmra.mxu1 %v4485_v41  ;;  %v4453_v28 = vadd.f32 0.5, %v4389_v27 }
 0x34a   :  { %v4454_v54 = vadd.f32 0.5, %v4390_v10  ;;  %v6437_v45 = vpop.eup %6436  ;;  %v4489_v2 = vpack.c.bf16 %v4453_v28, %v4449_v1 }
 0x34b   :  { %v6439_v36 = vpop.eup %6438  ;;  %v4393_v8 = vmul.f32 0.5, %v6437_v45 }
 0x34c   :  { %v4490_v56 = vpack.c.bf16 %v4454_v54, %v4450_v21  ;;  %v4394_v7 = vmul.f32 0.5, %v6439_v36 }
 0x34d   :  { %v6441_v59 = vpop.eup %6440  ;;  %v4457_v44 = vadd.f32 0.5, %v4393_v8 }
 0x34e   :  { %v4397_v46 = vmul.f32 0.5, %v6441_v59  ;;  %4935 = vmatprep.mubr.bf16.mxu1 %v4490_v56  ;;  %v4458_v60 = vadd.f32 0.5, %v4394_v7 }
 0x34f   :  { %v6443_v39 = vpop.eup %6442 }
 0x350   :  { %4936 = vmatmul.mubr.bf16.gmra.mxu1 %v4489_v2  ;;  %v4398_v63 = vmul.f32 0.5, %v6443_v39  ;;  %v4461_v12 = vadd.f32 0.5, %v4397_v46 }
 0x352   :  { %v4462_v0 = vadd.f32 0.5, %v4398_v63  ;;  %v4493_v51 = vpack.c.bf16 %v4461_v12, %v4457_v44 }
 0x354   :  { %v4494_v4 = vpack.c.bf16 %v4462_v0, %v4458_v60 }
 0x356   :  { %4943 = vmatprep.mubr.bf16.mxu1 %v4494_v4 }
 0x358   :  { %4944 = vmatmul.mubr.bf16.gmra.mxu1 %v4493_v51 }
 0x39e   :  { %v5431_v35 = vpop.f32.mrf.mxu0 }
 0x3a0   :  { %v5432_v33 = vpop.f32.mrf.mxu0 }
 0x3a1   :  { %v5433_v48 = vadd.f32 %v5432_v33, %v5431_v35 }
 0x3a2   :  { %v5434_v38 = vpop.f32.mrf.mxu0 }
 0x3a3   :  { %v4793_v62 = vadd.f32 %v5433_v48, %v7818_v50 }
 0x3a4   :  { %v5435_v15 = vpop.f32.mrf.mxu0 }
 0x3a5   :  { %v5436_v16 = vadd.f32 %v5435_v15, %v5434_v38 }
 0x3a6   :  { %v5437_v25 = vpop.f32.mrf.mxu0 }
 0x3a7   :  { %v4796_v14 = vadd.f32 %v5436_v16, %v7818_v50 }
 0x3a8   :  { %v5438_v22 = vpop.f32.mrf.mxu0 }
 0x3a9   :  { %v5439_v43 = vadd.f32 %v5438_v22, %v5437_v25 }
 0x3aa   :  { %v5440_v9 = vpop.f32.mrf.mxu0 }
 0x3ab   :  { %v4801_v23 = vadd.f32 %v5439_v43, %v7818_v50 }
 0x3ac   :  { %v5441_v42 = vpop.f32.mrf.mxu0 }
 0x3ad   :  { %v5442_v18 = vadd.f32 %v5441_v42, %v5440_v9 }
 0x3af   :  { %v5443_v13 = vpop.f32.mrf.mxu0  ;;  %v4804_v10 = vadd.f32 %v5442_v18, %v7818_v50 }
 0x3b1   :  { %v5444_v26 = vpop.f32.mrf.mxu0 }
 0x3b2   :  { %v5445_v21 = vadd.f32 %v5444_v26, %v5443_v13 }
 0x3b3   :  { %v5446_v47 = vpop.f32.mrf.mxu0 }
 0x3b4   :  { %v4809_v56 = vadd.f32 %v5445_v21, %v7818_v50 }
 0x3b5   :  { %v5447_v6 = vpop.f32.mrf.mxu0 }
 0x3b6   :  { %v5448_v59 = vadd.f32 %v5447_v6, %v5446_v47 }
 0x3b7   :  { %v5449_v37 = vpop.f32.mrf.mxu0 }
 0x3b8   :  { %v4812_v63 = vadd.f32 %v5448_v59, %v7818_v50 }
 0x3b9   :  { %v5450_v5 = vpop.f32.mrf.mxu0 }
 0x3ba   :  { %v5451_v12 = vadd.f32 %v5450_v5, %v5449_v37 }
 0x3bb   :  { %v5452_v31 = vpop.f32.mrf.mxu0 }
 0x3bc   :  { %v4817_v35 = vadd.f32 %v5451_v12, %v7818_v50 }
 0x3bd   :  { %v5453_v40 = vpop.f32.mrf.mxu0 }
 0x3be   :  { %v5454_v33 = vadd.f32 %v5453_v40, %v5452_v31 }
 0x3bf   :  { %v5455_v20 = vpop.f32.mrf.mxu0 }
 0x3c0   :  { %v4820_v42 = vadd.f32 %v5454_v33, %v7818_v50 }
 0x3c1   :  { %v5456_v17 = vpop.f32.mrf.mxu0 }
 0x3c2   :  { %v5457_v13 = vadd.f32 %v5456_v17, %v5455_v20 }
 0x3c3   :  { %v5458_v55 = vpop.f32.mrf.mxu0 }
 0x3c4   :  { %v4825_v31 = vadd.f32 %v5457_v13, %v7818_v50 }
 0x3c5   :  { %v5459_v57 = vpop.f32.mrf.mxu0 }
 0x3c6   :  { %v5460_v40 = vadd.f32 %v5459_v57, %v5458_v55 }
 0x3c7   :  { %v5461_v27 = vpop.f32.mrf.mxu0 }
 0x3c9   :  { %v5462_v54 = vpop.f32.mrf.mxu0 }
 0x3ca   :  { %v5463_v16 = vadd.f32 %v5462_v54, %v5461_v27 }
 0x3cb   :  { %v5464_v2 = vpop.f32.mrf.mxu0 }
 0x3cd   :  { %v5465_v0 = vpop.f32.mrf.mxu0 }
 0x3ce   :  { %v5466_v43 = vadd.f32 %v5465_v0, %v5464_v2 }
 0x3cf   :  { %v5467_v15 = vpop.f32.mrf.mxu0 }
 0x3d1   :  { %v5468_v47 = vpop.f32.mrf.mxu0 }
 0x3d2   :  { %v5469_v18 = vadd.f32 %v5468_v47, %v5467_v15 }
 0x3e0   :  { %v5495_v30 = vpop.f32.mrf.mxu1 }
 0x3e2   :  { %v5496_v52 = vpop.f32.mrf.mxu1 }
 0x3e3   :  { %v5497_v58 = vadd.f32 %v5496_v52, %v5495_v30  ;;  %v5470_v30 = vpop.f32.mrf.mxu0 }
 0x3e4   :  { %v5498_v49 = vpop.f32.mrf.mxu1 }
 0x3e5   :  { %v4890_v32 = vadd.f32 %v5497_v58, %v4793_v62  ;;  %v4828_v62 = vadd.f32 %v5460_v40, %v7818_v50 }
 0x3e6   :  { %v5499_v53 = vpop.f32.mrf.mxu1 }
 0x3e7   :  { %4952 = vst [vmem:[%s7891_s7] sm:$0xff] %v4890_v32  ;;  %v5500_v61 = vadd.f32 %v5499_v53, %v5498_v49  ;;  %v5471_v49 = vpop.f32.mrf.mxu0 }
 0x3e8   :  { %v5501_v3 = vpop.f32.mrf.mxu1  ;;  %v5472_v21 = vadd.f32 %v5471_v49, %v5470_v30 }
 0x3e9   :  { %v4893_v34 = vadd.f32 %v5500_v61, %v4796_v14  ;;  %v4833_v14 = vadd.f32 %v5463_v16, %v7818_v50  ;;  %v5473_v57 = vpop.f32.mrf.mxu0 }
 0x3ea   :  { %v5502_v24 = vpop.f32.mrf.mxu1 }
 0x3eb   :  { %4953 = vst [vmem:[%s7891_s7 + $0x8] sm:$0xff] %v4893_v34  ;;  %v5503_v11 = vadd.f32 %v5502_v24, %v5501_v3  ;;  %v5474_v27 = vpop.f32.mrf.mxu0 }
 0x3ec   :  { %v5504_v41 = vpop.f32.mrf.mxu1  ;;  %v5475_v59 = vadd.f32 %v5474_v27, %v5473_v57 }
 0x3ed   :  { %v4898_v19 = vadd.f32 %v5503_v11, %v4801_v23  ;;  %v4836_v23 = vadd.f32 %v5466_v43, %v7818_v50  ;;  %v5476_v54 = vpop.f32.mrf.mxu0 }
 0x3ee   :  { %v5505_v29 = vpop.f32.mrf.mxu1 }
 0x3ef   :  { %4954 = vst [vmem:[%s7891_s7 + $0x10] sm:$0xff] %v4898_v19  ;;  %v5506_v28 = vadd.f32 %v5505_v29, %v5504_v41  ;;  %v5477_v2 = vpop.f32.mrf.mxu0 }
 0x3f0   :  { %v5507_v45 = vpop.f32.mrf.mxu1  ;;  %v5478_v12 = vadd.f32 %v5477_v2, %v5476_v54 }
 0x3f1   :  { %v4901_v36 = vadd.f32 %v5506_v28, %v4804_v10  ;;  %v4841_v10 = vadd.f32 %v5469_v18, %v7818_v50 }
 0x3f2   :  { %v5508_v1 = vpop.f32.mrf.mxu1 }
 0x3f3   :  { %4955 = vst [vmem:[%s7891_s7 + $0x18] sm:$0xff] %v4901_v36  ;;  %v5509_v46 = vadd.f32 %v5508_v1, %v5507_v45 }
 0x3f4   :  { %v5510_v7 = vpop.f32.mrf.mxu1 }
 0x3f5   :  { %v4906_v39 = vadd.f32 %v5509_v46, %v4809_v56  ;;  %v4844_v56 = vadd.f32 %v5472_v21, %v7818_v50 }
 0x3f6   :  { %v5511_v8 = vpop.f32.mrf.mxu1 }
 0x3f7   :  { %4956 = vst [vmem:[%s7891_s7 + $0x20] sm:$0xff] %v4906_v39  ;;  %v5512_v60 = vadd.f32 %v5511_v8, %v5510_v7 }
 0x3f8   :  { %v5513_v44 = vpop.f32.mrf.mxu1 }
 0x3f9   :  { %v4909_v4 = vadd.f32 %v5512_v60, %v4812_v63  ;;  %v4849_v63 = vadd.f32 %v5475_v59, %v7818_v50 }
 0x3fa   :  { %v5514_v51 = vpop.f32.mrf.mxu1 }
 0x3fb   :  { %4957 = vst [vmem:[%s7891_s7 + $0x28] sm:$0xff] %v4909_v4  ;;  %v5515_v38 = vadd.f32 %v5514_v51, %v5513_v44  ;;  %v4852_v51 = vadd.f32 %v5478_v12, %v7818_v50 }
 0x3fc   :  { %v5516_v25 = vpop.f32.mrf.mxu1 }
 0x3fd   :  { %v4914_v22 = vadd.f32 %v5515_v38, %v4817_v35 }
 0x3fe   :  { %v5517_v9 = vpop.f32.mrf.mxu1 }
 0x3ff   :  { %4958 = vst [vmem:[%s7891_s7 + $0x30] sm:$0xff] %v4914_v22  ;;  %v5518_v26 = vadd.f32 %v5517_v9, %v5516_v25 }
 0x400   :  { %v5519_v6 = vpop.f32.mrf.mxu1 }
 0x401   :  { %v4917_v37 = vadd.f32 %v5518_v26, %v4820_v42 }
 0x402   :  { %v5520_v5 = vpop.f32.mrf.mxu1 }
 0x403   :  { %4959 = vst [vmem:[%s7891_s7 + $0x38] sm:$0xff] %v4917_v37  ;;  %v5521_v48 = vadd.f32 %v5520_v5, %v5519_v6 }
 0x404   :  { %v5522_v52 = vpop.f32.mrf.mxu1 }
 0x405   :  { %v4922_v20 = vadd.f32 %v5521_v48, %v4825_v31 }
 0x406   :  { %v5523_v17 = vpop.f32.mrf.mxu1 }
 0x407   :  { %4960 = vst [vmem:[%s7891_s7 + $0x40] sm:$0xff] %v4922_v20  ;;  %v5524_v58 = vadd.f32 %v5523_v17, %v5522_v52 }
 0x408   :  { %v5525_v32 = vpop.f32.mrf.mxu1 }
 0x409   :  { %v4925_v55 = vadd.f32 %v5524_v58, %v4828_v62 }
 0x40a   :  { %v5526_v53 = vpop.f32.mrf.mxu1 }
 0x40b   :  { %4961 = vst [vmem:[%s7891_s7 + $0x48] sm:$0xff] %v4925_v55  ;;  %v5527_v61 = vadd.f32 %v5526_v53, %v5525_v32 }
 0x40c   :  { %v5528_v3 = vpop.f32.mrf.mxu1 }
 0x40d   :  { %v4930_v34 = vadd.f32 %v5527_v61, %v4833_v14 }
 0x40e   :  { %v5529_v24 = vpop.f32.mrf.mxu1 }
 0x40f   :  { %4962 = vst [vmem:[%s7891_s7 + $0x50] sm:$0xff] %v4930_v34  ;;  %v5530_v11 = vadd.f32 %v5529_v24, %v5528_v3 }
 0x410   :  { %v5531_v41 = vpop.f32.mrf.mxu1 }
 0x411   :  { %v4933_v19 = vadd.f32 %v5530_v11, %v4836_v23 }
 0x412   :  { %v5532_v29 = vpop.f32.mrf.mxu1 }
 0x413   :  { %4963 = vst [vmem:[%s7891_s7 + $0x58] sm:$0xff] %v4933_v19  ;;  %v5533_v28 = vadd.f32 %v5532_v29, %v5531_v41 }
 0x414   :  { %v5534_v45 = vpop.f32.mrf.mxu1 }
 0x415   :  { %v4938_v36 = vadd.f32 %v5533_v28, %v4841_v10 }
 0x416   :  { %v5535_v1 = vpop.f32.mrf.mxu1 }
 0x417   :  { %4964 = vst [vmem:[%s7891_s7 + $0x60] sm:$0xff] %v4938_v36  ;;  %v5536_v46 = vadd.f32 %v5535_v1, %v5534_v45 }
 0x418   :  { %v5537_v7 = vpop.f32.mrf.mxu1 }
 0x419   :  { %v4941_v39 = vadd.f32 %v5536_v46, %v4844_v56 }
 0x41a   :  { %v5538_v8 = vpop.f32.mrf.mxu1 }
 0x41b   :  { %4965 = vst [vmem:[%s7891_s7 + $0x68] sm:$0xff] %v4941_v39  ;;  %v5539_v60 = vadd.f32 %v5538_v8, %v5537_v7 }
 0x41c   :  { %v5540_v0 = vpop.f32.mrf.mxu1 }
 0x41d   :  { %v4946_v44 = vadd.f32 %v5539_v60, %v4849_v63 }
 0x41e   :  { %v5541_v4 = vpop.f32.mrf.mxu1 }
 0x41f   :  { %4966 = vst [vmem:[%s7891_s7 + $0x70] sm:$0xff] %v4946_v44  ;;  %v5542_v35 = vadd.f32 %v5541_v4, %v5540_v0 }
 0x421   :  { %v4949_v33 = vadd.f32 %v5542_v35, %v4852_v51 }
 0x423   :  { %4967 = vst [vmem:[%s7891_s7 + $0x78] sm:$0xff] %v4949_v33 }
 0x424   :  { %4972 = vsyncpa [#allocation3], 1 }
 0x425   :  { %4973 = vsyncpa [#allocation5], 1 }

</bundles_post_ra>
